<compile_context>
chip_gen: v7x
topology: tpu7x:2x2x1
jax: 0.10.0
libtpu: 0.0.40
codegen_flags: <defaults>
</compile_context>

<pallas_src>
import math

import jax
import jax.numpy as jnp
from jax.experimental import pallas as pl
from jax.experimental.pallas import tpu as pltpu

TASKS = ("task_a", "task_b")      # cfg.LORA.TASKS
LORA_R = 4                        # cfg.LORA.R_PER_TASK
LORA_SHARED_SCALE = 1.0           # cfg.LORA.SHARED_SCALE
LORA_TASK_SCALE = 1.0             # cfg.LORA.TASK_SCALE


# --------------------------------------------------------------------------
# Fused Pallas kernel (one grid step per batch element)
# --------------------------------------------------------------------------
def _make_fused_kernel(n_paths):
    bf16 = jnp.bfloat16
    f32 = jnp.float32

    def chan_attn_bf16(feat, w1_io, b1_row, w2_oi, b2_col):
        # SE-style channel attention, channels-first.  All mat-vecs are done
        # as VPU broadcast-multiply + XLU reductions (no N=1 MXU matmuls):
        #   feat:  (C, HW) f32
        #   w1_io: (C, Cm) f32   (in, out) layout -> sublane-reduce gives row
        #   b1_row:(1, Cm) f32
        #   w2_oi: (C, Cm) f32   (out, in) layout -> lane-reduce gives column
        #   b2_col:(C, 1)  f32
        gap = jnp.mean(feat, axis=1, keepdims=True)                      # (C, 1)
        h = jnp.sum(w1_io * gap, axis=0, keepdims=True) + b1_row         # (1, Cm)
        h = jnp.maximum(h, 0.0)
        attn = jax.nn.sigmoid(
            jnp.sum(w2_oi * h, axis=1, keepdims=True) + b2_col)          # (C, 1)
        # bf16 only at the producer boundary (storage / MXU-operand format).
        return (feat * attn).astype(bf16)

    def kernel(z_ref, x_ref,
               pw_w1_ref, pw_b1_ref, pw_w2_ref, pw_b2_ref,
               a1_w_ref, a1_b_ref,
               cm_w1_ref, cm_b1_ref, cm_w2_ref, cm_b2_ref,
               a2_w_ref, a2_b_ref, a2_la_ref, a2_lb_ref,
               *out_refs):
        # ---- pixel-wise correlation (matrix form), channels-first output:
        # corr[q, p] = sum_c kernel[c, q] * search[c, p]   -> (HWz, HWx)
        corr = jnp.dot(z_ref[...], x_ref[...], preferred_element_type=f32)

        # ---- PWCA channel attention (CA=True) -> bf16 (64, HW).
        corr_bf = chan_attn_bf16(corr, pw_w1_ref[...], pw_b1_ref[...],
                                 pw_w2_ref[...], pw_b2_ref[...])

        a1_b = a1_b_ref[...]                                              # (Cmid, 1)
        a2_w = a2_w_ref[...]                                              # (Cout, Cmid) bf16
        a2_b = a2_b_ref[...]                                              # (Cout, 1)

        pre = None
        for p in range(n_paths):          # path 0 = shared, then tasks; end-to-end
            # ---- adj[0]: MTLoRAConv(num_kernel -> mid) with the LoRA adapter
            # already folded into a per-path effective weight (valid because
            # x_tasks[t] == corr_feat here).
            f = jnp.dot(a1_w_ref[p], corr_bf,
                        preferred_element_type=f32) + a1_b               # (Cmid, HW) f32

            # ---- adj[1]: LoRACAModule(mid) with LoRA merged into CA weights.
            g_bf = chan_attn_bf16(f, cm_w1_ref[p], cm_b1_ref[...],
                                  cm_w2_ref[p], cm_b2_ref[...])          # (Cmid, HW) bf16

            # ---- adj[2]: MTLoRAConv(mid -> adj).  Base conv uses the
            # shared-path input (computed once); per-path rank-r LoRA uses
            # each path's own input.
            if p == 0:
                pre = jnp.dot(a2_w, g_bf, preferred_element_type=f32) + a2_b
            u = jnp.dot(a2_la_ref[p], g_bf, preferred_element_type=f32)  # (r, HW)
            lo = jnp.dot(a2_lb_ref[p], u.astype(bf16),
                         preferred_element_type=f32)                     # (Cout, HW)
            out_refs[p][...] = pre + lo          # NCHW-flattened (Cout, HW)

    return kernel


# --------------------------------------------------------------------------
# Weight packing (run ONCE, outside the per-call forward path)
# --------------------------------------------------------------------------
def pack_weights(params):
    bf16 = jnp.bfloat16
    f32 = jnp.float32

    # --- PWCA channel-attention weights (VPU/XLU layouts, kept f32). --------
    pca = params["pwca_ca"]
    pw_w1 = pca["w1"].astype(f32)                       # (C, Cm)   (in, out)
    pw_b1 = pca["b1"].reshape(1, -1).astype(f32)        # (1, Cm)
    pw_w2 = pca["w2"].T.astype(f32)                     # (C, Cm)   (out, in)
    pw_b2 = pca["b2"].reshape(-1, 1).astype(f32)        # (C, 1)

    # --- adj[0]: fold LoRA into per-path effective conv weights. ------------
    a1 = params["adj1"]
    base_t = a1["w"].T                                  # (Cmid, Cin)
    deltas = [a1["s_shared"] * (a1["a_shared"] @ a1["b_shared"])] + \
             [a1["tasks"][t]["s"] * (a1["tasks"][t]["a"] @ a1["tasks"][t]["b"])
              for t in TASKS]
    a1_w = jnp.stack([base_t + d.T for d in deltas]).astype(bf16)   # (P, Cmid, Cin)
    a1_b = a1["b"].reshape(-1, 1).astype(f32)                       # (Cmid, 1)

    # --- adj[1]: LoRACAModule -> per-path merged CA FC weights. -------------
    # TODO(synk): exact LoRACAModule source unavailable; LoRA adapters on the
    # CA FCs are merged as W + s*(A@B), base biases reused.
    cm = params["ca_mid"]

    def merged(q):
        w1e = cm["w1"] + q["s"] * (q["a1"] @ q["b1"])   # (in, out)
        w2e = cm["w2"] + q["s"] * (q["a2"] @ q["b2"])   # (in, out)
        return w1e, w2e.T                               # (in,out), (out,in)

    ms = [merged(cm["shared"])] + [merged(cm["tasks"][t]) for t in TASKS]
    cm_w1 = jnp.stack([m[0] for m in ms]).astype(f32)   # (P, Cmid, Cmid)
    cm_w2 = jnp.stack([m[1] for m in ms]).astype(f32)   # (P, Cmid, Cmid)
    cm_b1 = cm["b1"].reshape(1, -1).astype(f32)         # (1, Cmid)
    cm_b2 = cm["b2"].reshape(-1, 1).astype(f32)         # (Cmid, 1)

    # --- adj[2]: base weight (transposed) + stacked per-path adapters. ------
    a2 = params["adj2"]
    a2_w = a2["w"].T.astype(bf16)                       # (Cout, Cmid)
    a2_b = a2["b"].reshape(-1, 1).astype(f32)           # (Cout, 1)
    a2_la = jnp.stack([a2["a_shared"].T] +
                      [a2["tasks"][t]["a"].T for t in TASKS]).astype(bf16)   # (P, r, Cmid)
    a2_lb = jnp.stack([(a2["s_shared"] * a2["b_shared"]).T] +
                      [(a2["tasks"][t]["s"] * a2["tasks"][t]["b"]).T
                       for t in TASKS]).astype(bf16)                          # (P, Cout, r)

    return (pw_w1, pw_b1, pw_w2, pw_b2,
            a1_w, a1_b,
            cm_w1, cm_b1, cm_w2, cm_b2,
            a2_w, a2_b, a2_la, a2_lb)


# --------------------------------------------------------------------------
# Module forward: one fused pallas_call
# --------------------------------------------------------------------------
def pw_corr_adj_forward(packed, kernel_nchw, search_nchw):
    """Mirrors PW_Corr_adj.forward(kernel, search) -> (corr_feat, x_tasks)."""
    B, C, Hz, Wz = kernel_nchw.shape
    _, _, Hx, Wx = search_nchw.shape
    hwz, hwx = Hz * Wz, Hx * Wx
    bf16 = jnp.bfloat16
    n_paths = 1 + len(TASKS)
    cout = packed[10].shape[0]          # a2_w: (Cout, Cmid)

    # Channels-first inside the kernel; only the small template is transposed.
    z_t = jnp.transpose(kernel_nchw.reshape(B, C, hwz), (0, 2, 1)).astype(bf16)  # (B,HWz,C)
    x_cf = search_nchw.reshape(B, C, hwx).astype(bf16)                           # (B,C,HWx)

    def wspec(w):
        if w.ndim == 3:
            return pl.BlockSpec(w.shape, lambda b: (0, 0, 0))
        return pl.BlockSpec(w.shape, lambda b: (0, 0))

    in_specs = [pl.BlockSpec((None, hwz, C), lambda b: (b, 0, 0)),
                pl.BlockSpec((None, C, hwx), lambda b: (b, 0, 0))] + \
               [wspec(w) for w in packed]
    out_specs = tuple(pl.BlockSpec((None, cout, hwx), lambda b: (b, 0, 0))
                      for _ in range(n_paths))

    # TODO(synk): the original adjust layers use use_norm=False/use_act=False,
    # so there is no BN/ReLU to fuse here; outputs kept f32 (consumer dtype
    # unknown; switch out_shape to bf16 if the downstream head accepts it).
    outs = pl.pallas_call(
        _make_fused_kernel(n_paths),
        out_shape=tuple(jax.ShapeDtypeStruct((B, cout, hwx), jnp.float32)
                        for _ in range(n_paths)),
        grid=(B,),
        in_specs=in_specs,
        out_specs=out_specs,
        compiler_params=pltpu.CompilerParams(
            dimension_semantics=("parallel",)),
    )(z_t, x_cf, *packed)

    # Outputs are already (B, Cout, H*W) in NCHW order: reshape only (free).
    corr_out = outs[0].reshape(B, cout, Hx, Wx)
    x_tasks = {t: outs[i + 1].reshape(B, cout, Hx, Wx)
               for i, t in enumerate(TASKS)}
    return corr_out, x_tasks


# --------------------------------------------------------------------------
# Parameter construction (deterministic, synthetic)
# --------------------------------------------------------------------------
def _normal(key, shape, scale):
    return scale * jax.random.normal(key, shape, dtype=jnp.float32)


def init_ca(key, c):
    ks = jax.random.split(key, 4)
    return {
        "w1": _normal(ks[0], (c, c), 1.0 / math.sqrt(c)),
        "b1": _normal(ks[1], (c,), 0.01),
        "w2": _normal(ks[2], (c, c), 1.0 / math.sqrt(c)),
        "b2": _normal(ks[3], (c,), 0.01),
    }


def init_mtlora_conv(key, cin, cout, r, tasks):
    ks = jax.random.split(key, 4 + 2 * len(tasks))
    # NOTE: LoRA "B" is zero-init for training; small nonzero values here so
    # the adapter path is actually exercised in this synthetic kernel.
    p = {
        "w": _normal(ks[0], (cin, cout), 1.0 / math.sqrt(cin)),
        "b": _normal(ks[1], (cout,), 0.01),
        "a_shared": _normal(ks[2], (cin, r), 1.0 / math.sqrt(cin)),
        "b_shared": _normal(ks[3], (r, cout), 0.02),
        "s_shared": LORA_SHARED_SCALE,
        "tasks": {},
    }
    for i, t in enumerate(tasks):
        p["tasks"][t] = {
            "a": _normal(ks[4 + 2 * i], (cin, r), 1.0 / math.sqrt(cin)),
            "b": _normal(ks[5 + 2 * i], (r, cout), 0.02),
            "s": LORA_TASK_SCALE,
        }
    return p


def init_lora_ca(key, c, r, tasks):
    kbase, kshared, ktasks = jax.random.split(key, 3)
    p = init_ca(kbase, c)
    ks = jax.random.split(kshared, 4)
    p["shared"] = {
        "a1": _normal(ks[0], (c, r), 1.0 / math.sqrt(c)),
        "b1": _normal(ks[1], (r, c), 0.02),
        "a2": _normal(ks[2], (c, r), 1.0 / math.sqrt(c)),
        "b2": _normal(ks[3], (r, c), 0.02),
        "s": LORA_SHARED_SCALE,
    }
    p["tasks"] = {}
    for t, kt in zip(tasks, jax.random.split(ktasks, len(tasks))):
        ks = jax.random.split(kt, 4)
        p["tasks"][t] = {
            "a1": _normal(ks[0], (c, r), 1.0 / math.sqrt(c)),
            "b1": _normal(ks[1], (r, c), 0.02),
            "a2": _normal(ks[2], (c, r), 1.0 / math.sqrt(c)),
            "b2": _normal(ks[3], (r, c), 0.02),
            "s": LORA_TASK_SCALE,
        }
    return p


if __name__ == "__main__":
    key = jax.random.PRNGKey(0)
    kin, ksearch, kparams = jax.random.split(key, 3)

    # Small shapes consistent with the module: template 8x8 -> num_kernel = 64.
    B, C, Hz, Wz, Hx, Wx = 2, 32, 8, 8, 16, 16
    num_kernel = Hz * Wz          # 64 (module default)
    mid_channel = 128             # cat=False -> 128
    adj_channel = 128

    kernel_feat = jax.random.normal(kin, (B, C, Hz, Wz), dtype=jnp.float32)
    search_feat = jax.random.normal(ksearch, (B, C, Hx, Wx), dtype=jnp.float32)

    k1, k2, k3, k4 = jax.random.split(kparams, 4)
    params = {
        "pwca_ca": init_ca(k1, num_kernel),
        "adj1": init_mtlora_conv(k2, num_kernel, mid_channel, LORA_R, TASKS),
        "ca_mid": init_lora_ca(k3, mid_channel, LORA_R, TASKS),
        "adj2": init_mtlora_conv(k4, mid_channel, adj_channel, LORA_R, TASKS),
    }

    # Pack weights ONCE (hoisted out of the per-call forward path).
    packed = pack_weights(params)
    packed = jax.block_until_ready(packed)

    fwd = jax.jit(pw_corr_adj_forward)
    corr_feat, x_tasks = fwd(packed, kernel_feat, search_feat)
    jax.block_until_ready((corr_feat, x_tasks))

    assert corr_feat.shape == (B, adj_channel, Hx, Wx)
    for t in TASKS:
        assert x_tasks[t].shape == (B, adj_channel, Hx, Wx)
    print("KERNEL_OK")
</pallas_src>

<mosaic_0001>
module attributes {stable_mosaic.version = 11 : i64} {
  func.func @kernel(%arg0: i32, %arg1: memref<1x64x32xbf16, #tpu.memory_space<vmem>>, %arg2: memref<1x32x256xbf16, #tpu.memory_space<vmem>>, %arg3: memref<64x64xf32, #tpu.memory_space<vmem>>, %arg4: memref<1x64xf32, #tpu.memory_space<vmem>>, %arg5: memref<64x64xf32, #tpu.memory_space<vmem>>, %arg6: memref<64x1xf32, #tpu.memory_space<vmem>>, %arg7: memref<3x128x64xbf16, #tpu.memory_space<vmem>>, %arg8: memref<128x1xf32, #tpu.memory_space<vmem>>, %arg9: memref<3x128x128xf32, #tpu.memory_space<vmem>>, %arg10: memref<1x128xf32, #tpu.memory_space<vmem>>, %arg11: memref<3x128x128xf32, #tpu.memory_space<vmem>>, %arg12: memref<128x1xf32, #tpu.memory_space<vmem>>, %arg13: memref<128x128xbf16, #tpu.memory_space<vmem>>, %arg14: memref<128x1xf32, #tpu.memory_space<vmem>>, %arg15: memref<3x4x128xbf16, #tpu.memory_space<vmem>>, %arg16: memref<3x128x4xbf16, #tpu.memory_space<vmem>>, %arg17: memref<1x128x256xf32, #tpu.memory_space<vmem>>, %arg18: memref<1x128x256xf32, #tpu.memory_space<vmem>>, %arg19: memref<1x128x256xf32, #tpu.memory_space<vmem>>) attributes {dimension_semantics = [#tpu.dimension_semantics<parallel>], iteration_bounds = array<i64: 2>, scalar_prefetch = 0 : i64, scratch_operands = 0 : i64, tpu.core_type = #tpu.core_type<tc>, window_params = [{transform_indices = @transform_0, window_bounds = array<i64: 1, 64, 32>}, {transform_indices = @transform_1, window_bounds = array<i64: 1, 32, 256>}, {pipeline_mode = #tpu.pipeline_mode<synchronous>, transform_indices = @transform_2, window_bounds = array<i64: 64, 64>}, {pipeline_mode = #tpu.pipeline_mode<synchronous>, transform_indices = @transform_3, window_bounds = array<i64: 1, 64>}, {pipeline_mode = #tpu.pipeline_mode<synchronous>, transform_indices = @transform_4, window_bounds = array<i64: 64, 64>}, {pipeline_mode = #tpu.pipeline_mode<synchronous>, transform_indices = @transform_5, window_bounds = array<i64: 64, 1>}, {pipeline_mode = #tpu.pipeline_mode<synchronous>, transform_indices = @transform_6, window_bounds = array<i64: 3, 128, 64>}, {pipeline_mode = #tpu.pipeline_mode<synchronous>, transform_indices = @transform_7, window_bounds = array<i64: 128, 1>}, {pipeline_mode = #tpu.pipeline_mode<synchronous>, transform_indices = @transform_8, window_bounds = array<i64: 3, 128, 128>}, {pipeline_mode = #tpu.pipeline_mode<synchronous>, transform_indices = @transform_9, window_bounds = array<i64: 1, 128>}, {pipeline_mode = #tpu.pipeline_mode<synchronous>, transform_indices = @transform_10, window_bounds = array<i64: 3, 128, 128>}, {pipeline_mode = #tpu.pipeline_mode<synchronous>, transform_indices = @transform_11, window_bounds = array<i64: 128, 1>}, {pipeline_mode = #tpu.pipeline_mode<synchronous>, transform_indices = @transform_12, window_bounds = array<i64: 128, 128>}, {pipeline_mode = #tpu.pipeline_mode<synchronous>, transform_indices = @transform_13, window_bounds = array<i64: 128, 1>}, {pipeline_mode = #tpu.pipeline_mode<synchronous>, transform_indices = @transform_14, window_bounds = array<i64: 3, 4, 128>}, {pipeline_mode = #tpu.pipeline_mode<synchronous>, transform_indices = @transform_15, window_bounds = array<i64: 3, 128, 4>}, {transform_indices = @transform_16, window_bounds = array<i64: 1, 128, 256>}, {transform_indices = @transform_17, window_bounds = array<i64: 1, 128, 256>}, {transform_indices = @transform_18, window_bounds = array<i64: 1, 128, 256>}]} {
    %c0 = arith.constant 0 : index
    %c0_0 = arith.constant 0 : index
    %c0_1 = arith.constant 0 : index
    %0 = vector.load %arg1[%c0, %c0_0, %c0_1] : memref<1x64x32xbf16, #tpu.memory_space<vmem>>, vector<1x64x32xbf16>
    %1 = vector.shape_cast %0 : vector<1x64x32xbf16> to vector<64x32xbf16>
    %c0_2 = arith.constant 0 : index
    %c0_3 = arith.constant 0 : index
    %c0_4 = arith.constant 0 : index
    %2 = vector.load %arg2[%c0_2, %c0_3, %c0_4] : memref<1x32x256xbf16, #tpu.memory_space<vmem>>, vector<1x32x256xbf16>
    %3 = vector.shape_cast %2 : vector<1x32x256xbf16> to vector<32x256xbf16>
    %cst = arith.constant dense<0.000000e+00> : vector<64x256xf32>
    %4 = tpu.matmul %1, %3, %cst {dimension_numbers = #tpu.dot_dimension_numbers<[1], [0], [0], [1], [0, 0, 1, 1], [], []>} : vector<64x32xbf16>, vector<32x256xbf16>, vector<64x256xf32> -> vector<64x256xf32>
    %c0_5 = arith.constant 0 : index
    %c0_6 = arith.constant 0 : index
    %5 = vector.load %arg3[%c0_5, %c0_6] : memref<64x64xf32, #tpu.memory_space<vmem>>, vector<64x64xf32>
    %c0_7 = arith.constant 0 : index
    %c0_8 = arith.constant 0 : index
    %6 = vector.load %arg4[%c0_7, %c0_8] : memref<1x64xf32, #tpu.memory_space<vmem>>, vector<1x64xf32>
    %c0_9 = arith.constant 0 : index
    %c0_10 = arith.constant 0 : index
    %7 = vector.load %arg5[%c0_9, %c0_10] : memref<64x64xf32, #tpu.memory_space<vmem>>, vector<64x64xf32>
    %c0_11 = arith.constant 0 : index
    %c0_12 = arith.constant 0 : index
    %8 = vector.load %arg6[%c0_11, %c0_12] : memref<64x1xf32, #tpu.memory_space<vmem>>, vector<64x1xf32>
    %cst_13 = arith.constant dense<0.000000e+00> : vector<64xf32>
    %9 = vector.multi_reduction <add>, %4, %cst_13 [1] : vector<64x256xf32> to vector<64xf32>
    %10 = vector.shape_cast %9 : vector<64xf32> to vector<64x1xf32>
    %cst_14 = arith.constant 2.560000e+02 : f32
    %11 = vector.broadcast %cst_14 : f32 to vector<64x1xf32>
    %12 = arith.divf %10, %11 : vector<64x1xf32>
    %13 = vector.broadcast %12 : vector<64x1xf32> to vector<64x64xf32>
    %14 = arith.mulf %5, %13 : vector<64x64xf32>
    %cst_15 = arith.constant dense<0.000000e+00> : vector<64xf32>
    %15 = vector.multi_reduction <add>, %14, %cst_15 [0] : vector<64x64xf32> to vector<64xf32>
    %16 = vector.shape_cast %15 : vector<64xf32> to vector<1x64xf32>
    %17 = arith.addf %16, %6 : vector<1x64xf32>
    %cst_16 = arith.constant 0.000000e+00 : f32
    %18 = vector.broadcast %cst_16 : f32 to vector<1x64xf32>
    %19 = arith.maximumf %17, %18 : vector<1x64xf32>
    %20 = vector.broadcast %19 : vector<1x64xf32> to vector<64x64xf32>
    %21 = arith.mulf %7, %20 : vector<64x64xf32>
    %cst_17 = arith.constant dense<0.000000e+00> : vector<64xf32>
    %22 = vector.multi_reduction <add>, %21, %cst_17 [1] : vector<64x64xf32> to vector<64xf32>
    %23 = vector.shape_cast %22 : vector<64xf32> to vector<64x1xf32>
    %24 = arith.addf %23, %8 : vector<64x1xf32>
    %25 = arith.negf %24 : vector<64x1xf32>
    %26 = math.exp %25 : vector<64x1xf32>
    %cst_18 = arith.constant 1.000000e+00 : f32
    %27 = vector.broadcast %cst_18 : f32 to vector<64x1xf32>
    %28 = arith.addf %27, %26 : vector<64x1xf32>
    %29 = arith.divf %27, %28 : vector<64x1xf32>
    %30 = vector.broadcast %29 : vector<64x1xf32> to vector<64x256xf32>
    %31 = arith.mulf %4, %30 : vector<64x256xf32>
    %32 = arith.truncf %31 : vector<64x256xf32> to vector<64x256xbf16>
    %c0_19 = arith.constant 0 : index
    %c0_20 = arith.constant 0 : index
    %33 = vector.load %arg8[%c0_19, %c0_20] : memref<128x1xf32, #tpu.memory_space<vmem>>, vector<128x1xf32>
    %c0_21 = arith.constant 0 : index
    %c0_22 = arith.constant 0 : index
    %34 = vector.load %arg13[%c0_21, %c0_22] : memref<128x128xbf16, #tpu.memory_space<vmem>>, vector<128x128xbf16>
    %c0_23 = arith.constant 0 : index
    %c0_24 = arith.constant 0 : index
    %35 = vector.load %arg14[%c0_23, %c0_24] : memref<128x1xf32, #tpu.memory_space<vmem>>, vector<128x1xf32>
    %c0_25 = arith.constant 0 : index
    %c0_26 = arith.constant 0 : index
    %c0_27 = arith.constant 0 : index
    %36 = vector.load %arg7[%c0_25, %c0_26, %c0_27] : memref<3x128x64xbf16, #tpu.memory_space<vmem>>, vector<1x128x64xbf16>
    %37 = vector.shape_cast %36 : vector<1x128x64xbf16> to vector<128x64xbf16>
    %cst_28 = arith.constant dense<0.000000e+00> : vector<128x256xf32>
    %38 = tpu.matmul %37, %32, %cst_28 {dimension_numbers = #tpu.dot_dimension_numbers<[1], [0], [0], [1], [0, 0, 1, 1], [], []>} : vector<128x64xbf16>, vector<64x256xbf16>, vector<128x256xf32> -> vector<128x256xf32>
    %39 = vector.broadcast %33 : vector<128x1xf32> to vector<128x256xf32>
    %40 = arith.addf %38, %39 : vector<128x256xf32>
    %c0_29 = arith.constant 0 : index
    %c0_30 = arith.constant 0 : index
    %c0_31 = arith.constant 0 : index
    %41 = vector.load %arg9[%c0_29, %c0_30, %c0_31] : memref<3x128x128xf32, #tpu.memory_space<vmem>>, vector<1x128x128xf32>
    %42 = vector.shape_cast %41 : vector<1x128x128xf32> to vector<128x128xf32>
    %c0_32 = arith.constant 0 : index
    %c0_33 = arith.constant 0 : index
    %43 = vector.load %arg10[%c0_32, %c0_33] : memref<1x128xf32, #tpu.memory_space<vmem>>, vector<1x128xf32>
    %c0_34 = arith.constant 0 : index
    %c0_35 = arith.constant 0 : index
    %c0_36 = arith.constant 0 : index
    %44 = vector.load %arg11[%c0_34, %c0_35, %c0_36] : memref<3x128x128xf32, #tpu.memory_space<vmem>>, vector<1x128x128xf32>
    %45 = vector.shape_cast %44 : vector<1x128x128xf32> to vector<128x128xf32>
    %c0_37 = arith.constant 0 : index
    %c0_38 = arith.constant 0 : index
    %46 = vector.load %arg12[%c0_37, %c0_38] : memref<128x1xf32, #tpu.memory_space<vmem>>, vector<128x1xf32>
    %cst_39 = arith.constant dense<0.000000e+00> : vector<128xf32>
    %47 = vector.multi_reduction <add>, %40, %cst_39 [1] : vector<128x256xf32> to vector<128xf32>
    %48 = vector.shape_cast %47 : vector<128xf32> to vector<128x1xf32>
    %cst_40 = arith.constant 2.560000e+02 : f32
    %49 = vector.broadcast %cst_40 : f32 to vector<128x1xf32>
    %50 = arith.divf %48, %49 : vector<128x1xf32>
    %51 = vector.broadcast %50 : vector<128x1xf32> to vector<128x128xf32>
    %52 = arith.mulf %42, %51 : vector<128x128xf32>
    %cst_41 = arith.constant dense<0.000000e+00> : vector<128xf32>
    %53 = vector.multi_reduction <add>, %52, %cst_41 [0] : vector<128x128xf32> to vector<128xf32>
    %54 = vector.shape_cast %53 : vector<128xf32> to vector<1x128xf32>
    %55 = arith.addf %54, %43 : vector<1x128xf32>
    %cst_42 = arith.constant 0.000000e+00 : f32
    %56 = vector.broadcast %cst_42 : f32 to vector<1x128xf32>
    %57 = arith.maximumf %55, %56 : vector<1x128xf32>
    %58 = vector.broadcast %57 : vector<1x128xf32> to vector<128x128xf32>
    %59 = arith.mulf %45, %58 : vector<128x128xf32>
    %cst_43 = arith.constant dense<0.000000e+00> : vector<128xf32>
    %60 = vector.multi_reduction <add>, %59, %cst_43 [1] : vector<128x128xf32> to vector<128xf32>
    %61 = vector.shape_cast %60 : vector<128xf32> to vector<128x1xf32>
    %62 = arith.addf %61, %46 : vector<128x1xf32>
    %63 = arith.negf %62 : vector<128x1xf32>
    %64 = math.exp %63 : vector<128x1xf32>
    %cst_44 = arith.constant 1.000000e+00 : f32
    %65 = vector.broadcast %cst_44 : f32 to vector<128x1xf32>
    %66 = arith.addf %65, %64 : vector<128x1xf32>
    %67 = arith.divf %65, %66 : vector<128x1xf32>
    %68 = vector.broadcast %67 : vector<128x1xf32> to vector<128x256xf32>
    %69 = arith.mulf %40, %68 : vector<128x256xf32>
    %70 = arith.truncf %69 : vector<128x256xf32> to vector<128x256xbf16>
    %cst_45 = arith.constant dense<0.000000e+00> : vector<128x256xf32>
    %71 = tpu.matmul %34, %70, %cst_45 {dimension_numbers = #tpu.dot_dimension_numbers<[1], [0], [0], [1], [0, 0, 1, 1], [], []>} : vector<128x128xbf16>, vector<128x256xbf16>, vector<128x256xf32> -> vector<128x256xf32>
    %72 = vector.broadcast %35 : vector<128x1xf32> to vector<128x256xf32>
    %73 = arith.addf %71, %72 : vector<128x256xf32>
    %c0_46 = arith.constant 0 : index
    %c0_47 = arith.constant 0 : index
    %c0_48 = arith.constant 0 : index
    %74 = vector.load %arg15[%c0_46, %c0_47, %c0_48] : memref<3x4x128xbf16, #tpu.memory_space<vmem>>, vector<1x4x128xbf16>
    %75 = vector.shape_cast %74 : vector<1x4x128xbf16> to vector<4x128xbf16>
    %cst_49 = arith.constant dense<0.000000e+00> : vector<4x256xf32>
    %76 = tpu.matmul %75, %70, %cst_49 {dimension_numbers = #tpu.dot_dimension_numbers<[1], [0], [0], [1], [0, 0, 1, 1], [], []>} : vector<4x128xbf16>, vector<128x256xbf16>, vector<4x256xf32> -> vector<4x256xf32>
    %c0_50 = arith.constant 0 : index
    %c0_51 = arith.constant 0 : index
    %c0_52 = arith.constant 0 : index
    %77 = vector.load %arg16[%c0_50, %c0_51, %c0_52] : memref<3x128x4xbf16, #tpu.memory_space<vmem>>, vector<1x128x4xbf16>
    %78 = vector.shape_cast %77 : vector<1x128x4xbf16> to vector<128x4xbf16>
    %79 = arith.truncf %76 : vector<4x256xf32> to vector<4x256xbf16>
    %cst_53 = arith.constant dense<0.000000e+00> : vector<128x256xf32>
    %80 = tpu.matmul %78, %79, %cst_53 {dimension_numbers = #tpu.dot_dimension_numbers<[1], [0], [0], [1], [0, 0, 1, 1], [], []>} : vector<128x4xbf16>, vector<4x256xbf16>, vector<128x256xf32> -> vector<128x256xf32>
    %81 = arith.addf %73, %80 : vector<128x256xf32>
    %c0_54 = arith.constant 0 : index
    %c0_55 = arith.constant 0 : index
    %c0_56 = arith.constant 0 : index
    %82 = vector.load %arg17[%c0_54, %c0_55, %c0_56] : memref<1x128x256xf32, #tpu.memory_space<vmem>>, vector<1x128x256xf32>
    %83 = vector.shape_cast %82 : vector<1x128x256xf32> to vector<128x256xf32>
    %84 = vector.shape_cast %81 : vector<128x256xf32> to vector<1x128x256xf32>
    tpu.vector_store %arg17[%c0_54, %c0_55, %c0_56], %84 {strides = array<i32>} : memref<1x128x256xf32, #tpu.memory_space<vmem>>, vector<1x128x256xf32>,
    %c1 = arith.constant 1 : index
    %c0_57 = arith.constant 0 : index
    %c0_58 = arith.constant 0 : index
    %85 = vector.load %arg7[%c1, %c0_57, %c0_58] : memref<3x128x64xbf16, #tpu.memory_space<vmem>>, vector<1x128x64xbf16>
    %86 = vector.shape_cast %85 : vector<1x128x64xbf16> to vector<128x64xbf16>
    %cst_59 = arith.constant dense<0.000000e+00> : vector<128x256xf32>
    %87 = tpu.matmul %86, %32, %cst_59 {dimension_numbers = #tpu.dot_dimension_numbers<[1], [0], [0], [1], [0, 0, 1, 1], [], []>} : vector<128x64xbf16>, vector<64x256xbf16>, vector<128x256xf32> -> vector<128x256xf32>
    %88 = vector.broadcast %33 : vector<128x1xf32> to vector<128x256xf32>
    %89 = arith.addf %87, %88 : vector<128x256xf32>
    %c1_60 = arith.constant 1 : index
    %c0_61 = arith.constant 0 : index
    %c0_62 = arith.constant 0 : index
    %90 = vector.load %arg9[%c1_60, %c0_61, %c0_62] : memref<3x128x128xf32, #tpu.memory_space<vmem>>, vector<1x128x128xf32>
    %91 = vector.shape_cast %90 : vector<1x128x128xf32> to vector<128x128xf32>
    %c0_63 = arith.constant 0 : index
    %c0_64 = arith.constant 0 : index
    %92 = vector.load %arg10[%c0_63, %c0_64] : memref<1x128xf32, #tpu.memory_space<vmem>>, vector<1x128xf32>
    %c1_65 = arith.constant 1 : index
    %c0_66 = arith.constant 0 : index
    %c0_67 = arith.constant 0 : index
    %93 = vector.load %arg11[%c1_65, %c0_66, %c0_67] : memref<3x128x128xf32, #tpu.memory_space<vmem>>, vector<1x128x128xf32>
    %94 = vector.shape_cast %93 : vector<1x128x128xf32> to vector<128x128xf32>
    %c0_68 = arith.constant 0 : index
    %c0_69 = arith.constant 0 : index
    %95 = vector.load %arg12[%c0_68, %c0_69] : memref<128x1xf32, #tpu.memory_space<vmem>>, vector<128x1xf32>
    %cst_70 = arith.constant dense<0.000000e+00> : vector<128xf32>
    %96 = vector.multi_reduction <add>, %89, %cst_70 [1] : vector<128x256xf32> to vector<128xf32>
    %97 = vector.shape_cast %96 : vector<128xf32> to vector<128x1xf32>
    %cst_71 = arith.constant 2.560000e+02 : f32
    %98 = vector.broadcast %cst_71 : f32 to vector<128x1xf32>
    %99 = arith.divf %97, %98 : vector<128x1xf32>
    %100 = vector.broadcast %99 : vector<128x1xf32> to vector<128x128xf32>
    %101 = arith.mulf %91, %100 : vector<128x128xf32>
    %cst_72 = arith.constant dense<0.000000e+00> : vector<128xf32>
    %102 = vector.multi_reduction <add>, %101, %cst_72 [0] : vector<128x128xf32> to vector<128xf32>
    %103 = vector.shape_cast %102 : vector<128xf32> to vector<1x128xf32>
    %104 = arith.addf %103, %92 : vector<1x128xf32>
    %cst_73 = arith.constant 0.000000e+00 : f32
    %105 = vector.broadcast %cst_73 : f32 to vector<1x128xf32>
    %106 = arith.maximumf %104, %105 : vector<1x128xf32>
    %107 = vector.broadcast %106 : vector<1x128xf32> to vector<128x128xf32>
    %108 = arith.mulf %94, %107 : vector<128x128xf32>
    %cst_74 = arith.constant dense<0.000000e+00> : vector<128xf32>
    %109 = vector.multi_reduction <add>, %108, %cst_74 [1] : vector<128x128xf32> to vector<128xf32>
    %110 = vector.shape_cast %109 : vector<128xf32> to vector<128x1xf32>
    %111 = arith.addf %110, %95 : vector<128x1xf32>
    %112 = arith.negf %111 : vector<128x1xf32>
    %113 = math.exp %112 : vector<128x1xf32>
    %cst_75 = arith.constant 1.000000e+00 : f32
    %114 = vector.broadcast %cst_75 : f32 to vector<128x1xf32>
    %115 = arith.addf %114, %113 : vector<128x1xf32>
    %116 = arith.divf %114, %115 : vector<128x1xf32>
    %117 = vector.broadcast %116 : vector<128x1xf32> to vector<128x256xf32>
    %118 = arith.mulf %89, %117 : vector<128x256xf32>
    %119 = arith.truncf %118 : vector<128x256xf32> to vector<128x256xbf16>
    %c1_76 = arith.constant 1 : index
    %c0_77 = arith.constant 0 : index
    %c0_78 = arith.constant 0 : index
    %120 = vector.load %arg15[%c1_76, %c0_77, %c0_78] : memref<3x4x128xbf16, #tpu.memory_space<vmem>>, vector<1x4x128xbf16>
    %121 = vector.shape_cast %120 : vector<1x4x128xbf16> to vector<4x128xbf16>
    %cst_79 = arith.constant dense<0.000000e+00> : vector<4x256xf32>
    %122 = tpu.matmul %121, %119, %cst_79 {dimension_numbers = #tpu.dot_dimension_numbers<[1], [0], [0], [1], [0, 0, 1, 1], [], []>} : vector<4x128xbf16>, vector<128x256xbf16>, vector<4x256xf32> -> vector<4x256xf32>
    %c1_80 = arith.constant 1 : index
    %c0_81 = arith.constant 0 : index
    %c0_82 = arith.constant 0 : index
    %123 = vector.load %arg16[%c1_80, %c0_81, %c0_82] : memref<3x128x4xbf16, #tpu.memory_space<vmem>>, vector<1x128x4xbf16>
    %124 = vector.shape_cast %123 : vector<1x128x4xbf16> to vector<128x4xbf16>
    %125 = arith.truncf %122 : vector<4x256xf32> to vector<4x256xbf16>
    %cst_83 = arith.constant dense<0.000000e+00> : vector<128x256xf32>
    %126 = tpu.matmul %124, %125, %cst_83 {dimension_numbers = #tpu.dot_dimension_numbers<[1], [0], [0], [1], [0, 0, 1, 1], [], []>} : vector<128x4xbf16>, vector<4x256xbf16>, vector<128x256xf32> -> vector<128x256xf32>
    %127 = arith.addf %73, %126 : vector<128x256xf32>
    %c0_84 = arith.constant 0 : index
    %c0_85 = arith.constant 0 : index
    %c0_86 = arith.constant 0 : index
    %128 = vector.load %arg18[%c0_84, %c0_85, %c0_86] : memref<1x128x256xf32, #tpu.memory_space<vmem>>, vector<1x128x256xf32>
    %129 = vector.shape_cast %128 : vector<1x128x256xf32> to vector<128x256xf32>
    %130 = vector.shape_cast %127 : vector<128x256xf32> to vector<1x128x256xf32>
    tpu.vector_store %arg18[%c0_84, %c0_85, %c0_86], %130 {strides = array<i32>} : memref<1x128x256xf32, #tpu.memory_space<vmem>>, vector<1x128x256xf32>,
    %c2 = arith.constant 2 : index
    %c0_87 = arith.constant 0 : index
    %c0_88 = arith.constant 0 : index
    %131 = vector.load %arg7[%c2, %c0_87, %c0_88] : memref<3x128x64xbf16, #tpu.memory_space<vmem>>, vector<1x128x64xbf16>
    %132 = vector.shape_cast %131 : vector<1x128x64xbf16> to vector<128x64xbf16>
    %cst_89 = arith.constant dense<0.000000e+00> : vector<128x256xf32>
    %133 = tpu.matmul %132, %32, %cst_89 {dimension_numbers = #tpu.dot_dimension_numbers<[1], [0], [0], [1], [0, 0, 1, 1], [], []>} : vector<128x64xbf16>, vector<64x256xbf16>, vector<128x256xf32> -> vector<128x256xf32>
    %134 = vector.broadcast %33 : vector<128x1xf32> to vector<128x256xf32>
    %135 = arith.addf %133, %134 : vector<128x256xf32>
    %c2_90 = arith.constant 2 : index
    %c0_91 = arith.constant 0 : index
    %c0_92 = arith.constant 0 : index
    %136 = vector.load %arg9[%c2_90, %c0_91, %c0_92] : memref<3x128x128xf32, #tpu.memory_space<vmem>>, vector<1x128x128xf32>
    %137 = vector.shape_cast %136 : vector<1x128x128xf32> to vector<128x128xf32>
    %c0_93 = arith.constant 0 : index
    %c0_94 = arith.constant 0 : index
    %138 = vector.load %arg10[%c0_93, %c0_94] : memref<1x128xf32, #tpu.memory_space<vmem>>, vector<1x128xf32>
    %c2_95 = arith.constant 2 : index
    %c0_96 = arith.constant 0 : index
    %c0_97 = arith.constant 0 : index
    %139 = vector.load %arg11[%c2_95, %c0_96, %c0_97] : memref<3x128x128xf32, #tpu.memory_space<vmem>>, vector<1x128x128xf32>
    %140 = vector.shape_cast %139 : vector<1x128x128xf32> to vector<128x128xf32>
    %c0_98 = arith.constant 0 : index
    %c0_99 = arith.constant 0 : index
    %141 = vector.load %arg12[%c0_98, %c0_99] : memref<128x1xf32, #tpu.memory_space<vmem>>, vector<128x1xf32>
    %cst_100 = arith.constant dense<0.000000e+00> : vector<128xf32>
    %142 = vector.multi_reduction <add>, %135, %cst_100 [1] : vector<128x256xf32> to vector<128xf32>
    %143 = vector.shape_cast %142 : vector<128xf32> to vector<128x1xf32>
    %cst_101 = arith.constant 2.560000e+02 : f32
    %144 = vector.broadcast %cst_101 : f32 to vector<128x1xf32>
    %145 = arith.divf %143, %144 : vector<128x1xf32>
    %146 = vector.broadcast %145 : vector<128x1xf32> to vector<128x128xf32>
    %147 = arith.mulf %137, %146 : vector<128x128xf32>
    %cst_102 = arith.constant dense<0.000000e+00> : vector<128xf32>
    %148 = vector.multi_reduction <add>, %147, %cst_102 [0] : vector<128x128xf32> to vector<128xf32>
    %149 = vector.shape_cast %148 : vector<128xf32> to vector<1x128xf32>
    %150 = arith.addf %149, %138 : vector<1x128xf32>
    %cst_103 = arith.constant 0.000000e+00 : f32
    %151 = vector.broadcast %cst_103 : f32 to vector<1x128xf32>
    %152 = arith.maximumf %150, %151 : vector<1x128xf32>
    %153 = vector.broadcast %152 : vector<1x128xf32> to vector<128x128xf32>
    %154 = arith.mulf %140, %153 : vector<128x128xf32>
    %cst_104 = arith.constant dense<0.000000e+00> : vector<128xf32>
    %155 = vector.multi_reduction <add>, %154, %cst_104 [1] : vector<128x128xf32> to vector<128xf32>
    %156 = vector.shape_cast %155 : vector<128xf32> to vector<128x1xf32>
    %157 = arith.addf %156, %141 : vector<128x1xf32>
    %158 = arith.negf %157 : vector<128x1xf32>
    %159 = math.exp %158 : vector<128x1xf32>
    %cst_105 = arith.constant 1.000000e+00 : f32
    %160 = vector.broadcast %cst_105 : f32 to vector<128x1xf32>
    %161 = arith.addf %160, %159 : vector<128x1xf32>
    %162 = arith.divf %160, %161 : vector<128x1xf32>
    %163 = vector.broadcast %162 : vector<128x1xf32> to vector<128x256xf32>
    %164 = arith.mulf %135, %163 : vector<128x256xf32>
    %165 = arith.truncf %164 : vector<128x256xf32> to vector<128x256xbf16>
    %c2_106 = arith.constant 2 : index
    %c0_107 = arith.constant 0 : index
    %c0_108 = arith.constant 0 : index
    %166 = vector.load %arg15[%c2_106, %c0_107, %c0_108] : memref<3x4x128xbf16, #tpu.memory_space<vmem>>, vector<1x4x128xbf16>
    %167 = vector.shape_cast %166 : vector<1x4x128xbf16> to vector<4x128xbf16>
    %cst_109 = arith.constant dense<0.000000e+00> : vector<4x256xf32>
    %168 = tpu.matmul %167, %165, %cst_109 {dimension_numbers = #tpu.dot_dimension_numbers<[1], [0], [0], [1], [0, 0, 1, 1], [], []>} : vector<4x128xbf16>, vector<128x256xbf16>, vector<4x256xf32> -> vector<4x256xf32>
    %c2_110 = arith.constant 2 : index
    %c0_111 = arith.constant 0 : index
    %c0_112 = arith.constant 0 : index
    %169 = vector.load %arg16[%c2_110, %c0_111, %c0_112] : memref<3x128x4xbf16, #tpu.memory_space<vmem>>, vector<1x128x4xbf16>
    %170 = vector.shape_cast %169 : vector<1x128x4xbf16> to vector<128x4xbf16>
    %171 = arith.truncf %168 : vector<4x256xf32> to vector<4x256xbf16>
    %cst_113 = arith.constant dense<0.000000e+00> : vector<128x256xf32>
    %172 = tpu.matmul %170, %171, %cst_113 {dimension_numbers = #tpu.dot_dimension_numbers<[1], [0], [0], [1], [0, 0, 1, 1], [], []>} : vector<128x4xbf16>, vector<4x256xbf16>, vector<128x256xf32> -> vector<128x256xf32>
    %173 = arith.addf %73, %172 : vector<128x256xf32>
    %c0_114 = arith.constant 0 : index
    %c0_115 = arith.constant 0 : index
    %c0_116 = arith.constant 0 : index
    %174 = vector.load %arg19[%c0_114, %c0_115, %c0_116] : memref<1x128x256xf32, #tpu.memory_space<vmem>>, vector<1x128x256xf32>
    %175 = vector.shape_cast %174 : vector<1x128x256xf32> to vector<128x256xf32>
    %176 = vector.shape_cast %173 : vector<128x256xf32> to vector<1x128x256xf32>
    tpu.vector_store %arg19[%c0_114, %c0_115, %c0_116], %176 {strides = array<i32>} : memref<1x128x256xf32, #tpu.memory_space<vmem>>, vector<1x128x256xf32>,
    return
  }
  func.func @transform_0(%arg0: i32) -> (i32, i32, i32) {
    %c0_i32 = arith.constant 0 : i32
    %c0_i32_0 = arith.constant 0 : i32
    %c0_i32_1 = arith.constant 0 : i32
    return %arg0, %c0_i32, %c0_i32_0 : i32, i32, i32
  }
  func.func @transform_1(%arg0: i32) -> (i32, i32, i32) {
    %c0_i32 = arith.constant 0 : i32
    %c0_i32_0 = arith.constant 0 : i32
    %c0_i32_1 = arith.constant 0 : i32
    return %arg0, %c0_i32, %c0_i32_0 : i32, i32, i32
  }
  func.func @transform_2(%arg0: i32) -> (i32, i32) {
    %c0_i32 = arith.constant 0 : i32
    %c0_i32_0 = arith.constant 0 : i32
    %c0_i32_1 = arith.constant 0 : i32
    return %c0_i32, %c0_i32_0 : i32, i32
  }
  func.func @transform_3(%arg0: i32) -> (i32, i32) {
    %c0_i32 = arith.constant 0 : i32
    %c0_i32_0 = arith.constant 0 : i32
    %c0_i32_1 = arith.constant 0 : i32
    return %c0_i32, %c0_i32_0 : i32, i32
  }
  func.func @transform_4(%arg0: i32) -> (i32, i32) {
    %c0_i32 = arith.constant 0 : i32
    %c0_i32_0 = arith.constant 0 : i32
    %c0_i32_1 = arith.constant 0 : i32
    return %c0_i32, %c0_i32_0 : i32, i32
  }
  func.func @transform_5(%arg0: i32) -> (i32, i32) {
    %c0_i32 = arith.constant 0 : i32
    %c0_i32_0 = arith.constant 0 : i32
    %c0_i32_1 = arith.constant 0 : i32
    return %c0_i32, %c0_i32_0 : i32, i32
  }
  func.func @transform_6(%arg0: i32) -> (i32, i32, i32) {
    %c0_i32 = arith.constant 0 : i32
    %c0_i32_0 = arith.constant 0 : i32
    %c0_i32_1 = arith.constant 0 : i32
    %c0_i32_2 = arith.constant 0 : i32
    return %c0_i32, %c0_i32_0, %c0_i32_1 : i32, i32, i32
  }
  func.func @transform_7(%arg0: i32) -> (i32, i32) {
    %c0_i32 = arith.constant 0 : i32
    %c0_i32_0 = arith.constant 0 : i32
    %c0_i32_1 = arith.constant 0 : i32
    return %c0_i32, %c0_i32_0 : i32, i32
  }
  func.func @transform_8(%arg0: i32) -> (i32, i32, i32) {
    %c0_i32 = arith.constant 0 : i32
    %c0_i32_0 = arith.constant 0 : i32
    %c0_i32_1 = arith.constant 0 : i32
    %c0_i32_2 = arith.constant 0 : i32
    return %c0_i32, %c0_i32_0, %c0_i32_1 : i32, i32, i32
  }
  func.func @transform_9(%arg0: i32) -> (i32, i32) {
    %c0_i32 = arith.constant 0 : i32
    %c0_i32_0 = arith.constant 0 : i32
    %c0_i32_1 = arith.constant 0 : i32
    return %c0_i32, %c0_i32_0 : i32, i32
  }
  func.func @transform_10(%arg0: i32) -> (i32, i32, i32) {
    %c0_i32 = arith.constant 0 : i32
    %c0_i32_0 = arith.constant 0 : i32
    %c0_i32_1 = arith.constant 0 : i32
    %c0_i32_2 = arith.constant 0 : i32
    return %c0_i32, %c0_i32_0, %c0_i32_1 : i32, i32, i32
  }
  func.func @transform_11(%arg0: i32) -> (i32, i32) {
    %c0_i32 = arith.constant 0 : i32
    %c0_i32_0 = arith.constant 0 : i32
    %c0_i32_1 = arith.constant 0 : i32
    return %c0_i32, %c0_i32_0 : i32, i32
  }
  func.func @transform_12(%arg0: i32) -> (i32, i32) {
    %c0_i32 = arith.constant 0 : i32
    %c0_i32_0 = arith.constant 0 : i32
    %c0_i32_1 = arith.constant 0 : i32
    return %c0_i32, %c0_i32_0 : i32, i32
  }
  func.func @transform_13(%arg0: i32) -> (i32, i32) {
    %c0_i32 = arith.constant 0 : i32
    %c0_i32_0 = arith.constant 0 : i32
    %c0_i32_1 = arith.constant 0 : i32
    return %c0_i32, %c0_i32_0 : i32, i32
  }
  func.func @transform_14(%arg0: i32) -> (i32, i32, i32) {
    %c0_i32 = arith.constant 0 : i32
    %c0_i32_0 = arith.constant 0 : i32
    %c0_i32_1 = arith.constant 0 : i32
    %c0_i32_2 = arith.constant 0 : i32
    return %c0_i32, %c0_i32_0, %c0_i32_1 : i32, i32, i32
  }
  func.func @transform_15(%arg0: i32) -> (i32, i32, i32) {
    %c0_i32 = arith.constant 0 : i32
    %c0_i32_0 = arith.constant 0 : i32
    %c0_i32_1 = arith.constant 0 : i32
    %c0_i32_2 = arith.constant 0 : i32
    return %c0_i32, %c0_i32_0, %c0_i32_1 : i32, i32, i32
  }
  func.func @transform_16(%arg0: i32) -> (i32, i32, i32) {
    %c0_i32 = arith.constant 0 : i32
    %c0_i32_0 = arith.constant 0 : i32
    %c0_i32_1 = arith.constant 0 : i32
    return %arg0, %c0_i32, %c0_i32_0 : i32, i32, i32
  }
  func.func @transform_17(%arg0: i32) -> (i32, i32, i32) {
    %c0_i32 = arith.constant 0 : i32
    %c0_i32_0 = arith.constant 0 : i32
    %c0_i32_1 = arith.constant 0 : i32
    return %arg0, %c0_i32, %c0_i32_0 : i32, i32, i32
  }
  func.func @transform_18(%arg0: i32) -> (i32, i32, i32) {
    %c0_i32 = arith.constant 0 : i32
    %c0_i32_0 = arith.constant 0 : i32
    %c0_i32_1 = arith.constant 0 : i32
    return %arg0, %c0_i32, %c0_i32_0 : i32, i32, i32
  }
}

</mosaic_0001>

<bundles_post_ra>
// kernel: pw_corr_adj_forward.1
= control target key start
LH: loop header
LB: loop body
LE: loop exit
PB: predicated region body
PF: predicated region fallthrough
CT: control target
= control target key end

     0   :  { %s5116_s27 = smov 0   ;;  %s7297_s0 = inlined_call_operand.vmem [shape: bf16[2,64,32], index: 0, kind: input, shape index: {}]   ;;  %s7298_s1 = inlined_call_operand.vmem [shape: bf16[2,32,256], index: 1, kind: input, shape index: {}]   ;;  %s7299_s2 = inlined_call_operand.vmem [shape: f32[64,64], index: 2, kind: input, shape index: {}]   ;;  %s7300_s3 = inlined_call_operand.vmem [shape: f32[1,64], index: 3, kind: input, shape index: {}]   ;;  %s7301_s4 = inlined_call_operand.vmem [shape: f32[64,64], index: 4, kind: input, shape index: {}]   ;;  %s7302_s5 = inlined_call_operand.vmem [shape: f32[64,1], index: 5, kind: input, shape index: {}]   ;;  %s7303_s6 = inlined_call_operand.vmem [shape: bf16[3,128,64], index: 6, kind: input, shape index: {}]   ;;  %s7304_s7 = inlined_call_operand.vmem [shape: f32[128,1], index: 7, kind: input, shape index: {}]   ;;  %s7305_s8 = inlined_call_operand.vmem [shape: f32[3,128,128], index: 8, kind: input, shape index: {}]   ;;  %s7306_s9 = inlined_call_operand.vmem [shape: f32[1,128], index: 9, kind: input, shape index: {}]   ;;  %s7307_s10 = inlined_call_operand.vmem [shape: f32[3,128,128], index: 10, kind: input, shape index: {}]   ;;  %s7308_s11 = inlined_call_operand.vmem [shape: f32[128,1], index: 11, kind: input, shape index: {}]   ;;  %s7309_s12 = inlined_call_operand.vmem [shape: bf16[128,128], index: 12, kind: input, shape index: {}]   ;;  %s7310_s13 = inlined_call_operand.vmem [shape: f32[128,1], index: 13, kind: input, shape index: {}]   ;;  %s7311_s14 = inlined_call_operand.vmem [shape: bf16[3,4,128], index: 14, kind: input, shape index: {}]   ;;  %s7312_s15 = inlined_call_operand.vmem [shape: bf16[3,128,4], index: 15, kind: input, shape index: {}]   ;;  %s7313_s16 = inlined_call_operand.vmem [shape: f32[2,128,256], index: 16, kind: output, shape index: {0}]   ;;  %s7314_s17 = inlined_call_operand.vmem [shape: f32[2,128,256], index: 17, kind: output, shape index: {1}]   ;;  %s7315_s18 = inlined_call_operand.vmem [shape: f32[2,128,256], index: 18, kind: output, shape index: {2}]  }
   0x1   :  { %7381 = sst [smem:[#allocation73_spill]] %s7297_s0 }
   0x2   :  { %7382 = sst [smem:[#allocation74_spill]] %s7298_s1 }
   0x3   :  { %7383 = sst [smem:[#allocation75_spill]] %s7299_s2 }
   0x4 LB: > { %s4352_s28 = sadd.s32 4294967295, %s5018_s27   ;;  %p4356_p0 = scmp.ge.s32.totalorder %s5018_s27, 1  ;;  %s5018_s27 = sphi %s5116_s27, %s29_s27  }
   0x5   : > { %p527_p1 = scmp.lt.s32.totalorder %s5018_s27, 3 }
   0x7   : > { %p528_p2 = pnand %p4356_p0, %p527_p1 }
   0x9   : > { %531 = sbr.rel (%p528_p2) target bundleno = 3292 (0xcdc), region = 84 }
  0x10   : > { %p596_p3 = scmp.lt.s32.totalorder %s4352_s28, 1  ;;  %v7317_v0 = vmov 0   ;;  %s7384_s19 = sld [smem:[#allocation74_spill]]  ;;  %vm674_vm0 = vcmask 261120   ;;  %vm826_vm1 = vcmask 523264   ;;  %vm2137_vm2 = vcmask 1041408  }
  0x11   : > { %719 = vmatprep.mubr.bf16.mxu0 %v7317_v0  ;;  %4705 = vset.pattern.permute.xlu1 %v7317_v0  ;;  %s7385_s22 = sld [smem:[#allocation73_spill]]  ;;  %s7386_s25 = sld [smem:[#allocation75_spill]]  ;;  %vm2112_vm3 = vcmask 31744  }
  0x12   : > { %s7595_s28 = smov (!%p596_p3, %s4352_s28), 1  ;;  %4704 = vset.pattern.permute.xlu0 %v7317_v0  ;;  %1246 = vmatprep.mubr.bf16.mxu1 %v7317_v0 }
  0x13   : > { %s4674_s29 = sshll.u32 %s7595_s28, 5  ;;  %s6910_s30 = sshll.u32 %s7595_s28, 8 }
  0x14   : > { %s6938_s21 = scalar_lea.vmem %s7314_s17, %s6910_s30 }
  0x16   : > { %s605_s1 = scalar_lea.vmem %s7384_s19, %s4674_s29 }
  0x17   : > { %v4706_v1 = vld [vmem:[%s605_s1 + $0x4] ss:$8 sps:$4 sm:$0xff]   ;;  %s600_s2 = scalar_lea.vmem %s7385_s22, %s4674_s29  ;;  %v4708_v2 = vld [vmem:[%s605_s1] ss:$8 sps:$4 sm:$0xff]   ;;  %v4709_v3 = vld [vmem:[%s605_s1 + $0x14] ss:$8 sps:$4 sm:$0xff]  }
  0x18   : > { %687 = vmatprep.subr.bf16.mxu0 %v4706_v1  ;;  %v4711_v4 = vld [vmem:[%s605_s1 + $0x10] ss:$8 sps:$4 sm:$0xff]   ;;  %v4712_v5 = vld [vmem:[%s600_s2] sm:$0xff]   ;;  %v4713_v6 = vld [vmem:[%s600_s2 + $0x8] sm:$0xff]   ;;  %s6922_s1 = scalar_lea.vmem %s7313_s16, %s6910_s30 }
  0x19   : > { %688 = vmatpush1.bf16.msra.mxu0 %v4708_v2  ;;  %v4714_v7 = vld [vmem:[%s600_s2 + $0x10] sm:$0xff]   ;;  %v4715_v8 = vld [vmem:[%s600_s2 + $0x18] sm:$0xff]   ;;  %v761_v36 = vld [vmem:[%s7386_s25 + $0x8] sm:$0xff] }
  0x1a   : > { %689 = vmatprep.subr.bf16.mxu0 %v4709_v3  ;;  %v760_v40 = vld [vmem:[%s7386_s25] sm:$0xff]  ;;  %v762_v41 = vld [vmem:[%s7386_s25 + $0x10] sm:$0xff]  ;;  %v763_v43 = vld [vmem:[%s7386_s25 + $0x18] sm:$0xff] }
  0x1b   : > { %v764_v50 = vld [vmem:[%s7386_s25 + $0x20] sm:$0xff]  ;;  %v765_v56 = vld [vmem:[%s7386_s25 + $0x28] sm:$0xff]  ;;  %v766_v3 = vld [vmem:[%s7386_s25 + $0x30] sm:$0xff] }
  0x1d   : > { %690 = vmatpush1.bf16.msra.mxu0 %v4711_v4 }
  0x20   : > { %4375 = vmatmul.mubr.msk.bf16.vlgmr.msra.gmra.mrb[0].mxu0 %vm674_vm0, %v4712_v5 }
  0x21   : > { %729 = vmatprep.mubr.bf16.mxu0 %v7317_v0 }
  0x28   : > { %4376 = vmatmul.mubr.msk.bf16.gmra.mrb[4].mxu0 %vm674_vm0, %v4713_v6 }
  0x29   : > { %739 = vmatprep.mubr.bf16.mxu0 %v7317_v0 }
  0x30   : > { %4377 = vmatmul.mubr.msk.bf16.gmra.mrb[8].mxu0 %vm674_vm0, %v4714_v7  ;;  %v767_v7 = vld [vmem:[%s7386_s25 + $0x38] sm:$0xff] }
  0x31   : > { %749 = vmatprep.mubr.bf16.mxu0 %v7317_v0 }
  0x38   : > { %4378 = vmatmul.mubr.msk.bf16.gmra.mrb[12].mxu0 %vm674_vm0, %v4715_v8 }
  0x39   : > { %1931 = vmatprep.mubr.bf16.mxu0 %v7317_v0 }
  0xf3   : > { %v5141_v9 = vpop.f32.mrb[0].mxu0 }
  0xf4   : > { %v5143_v10 = vpop.f32.mrb[1].mxu0 }
  0xf5   : > { %v5145_v11 = vpop.f32.mrb[2].mxu0  ;;  %v785_v12 = vadd.f32 %v5143_v10, %v5141_v9 }
  0xf6   : > { %v5149_v13 = vpop.f32.mrb[3].mxu0 }
  0xf7   : > { %786 = vadd.xlane.f32.xlu0 %v785_v12  ;;  %v788_v14 = vadd.f32 %v5149_v13, %v5145_v11 }
  0xfb   : > { %789 = vadd.xlane.f32.xlu0 %v788_v14  ;;  %v5153_v15 = vpop.f32.mrb[4].mxu0 }
  0xfc   : > { %v5155_v16 = vpop.f32.mrb[5].mxu0 }
  0xfd   : > { %v5157_v17 = vpop.f32.mrb[6].mxu0  ;;  %v791_v18 = vadd.f32 %v5155_v16, %v5153_v15 }
  0xfe   : > { %v5161_v19 = vpop.f32.mrb[7].mxu0 }
  0xff   : > { %792 = vadd.xlane.f32.xlu1 %v791_v18  ;;  %v794_v20 = vadd.f32 %v5161_v19, %v5157_v17 }
 0x103   : > { %795 = vadd.xlane.f32.xlu1 %v794_v20  ;;  %v5165_v21 = vpop.f32.mrb[8].mxu0 }
 0x104   : > { %v5167_v22 = vpop.f32.mrb[9].mxu0 }
 0x105   : > { %v5169_v23 = vpop.f32.mrb[10].mxu0  ;;  %v797_v24 = vadd.f32 %v5167_v22, %v5165_v21 }
 0x106   : > { %v5173_v25 = vpop.f32.mrb[11].mxu0 }
 0x107   : > { %798 = vadd.xlane.f32.xlu0 %v797_v24  ;;  %v800_v26 = vadd.f32 %v5173_v25, %v5169_v23 }
 0x109   : > { %801 = vadd.xlane.f32.xlu1 %v800_v26 }
 0x10b   : > { %v5177_v27 = vpop.f32.mrb[12].mxu0 }
 0x10c   : > { %v5179_v28 = vpop.f32.mrb[13].mxu0 }
 0x10d   : > { %v5181_v29 = vpop.f32.mrb[14].mxu0  ;;  %v803_v30 = vadd.f32 %v5179_v28, %v5177_v27 }
 0x10e   : > { %v5185_v31 = vpop.f32.mrb[15].mxu0 }
 0x10f   : > { %804 = vadd.xlane.f32.xlu0 %v803_v30  ;;  %v806_v32 = vadd.f32 %v5185_v31, %v5181_v29 }
 0x111   : > { %807 = vadd.xlane.f32.xlu1 %v806_v32 }
 0x184   : > { %v787_v33 = vpop.xlane.xlu0 %786 }
 0x185   : > { %v810_v38 = vmul.f32 0.00390625, %v787_v33 }
 0x187   : > { %v818_v45 = vmul.f32 %v810_v38, %v760_v40  ;;  %v768_v40 = vld [vmem:[%s7300_s3] sm:$0x1] }
 0x188   : > { %v790_v34 = vpop.xlane.xlu0 %789 }
 0x189   : > { %v811_v35 = vmul.f32 0.00390625, %v790_v34  ;;  %v827_v52 = vsel %vm826_vm1, %v818_v45, 0.0  ;;  %v770_v45 = vld [vmem:[%s7301_s4 + $0x8] sm:$0xff] }
 0x18b   : > { %v819_v42 = vmul.f32 %v811_v35, %v761_v36  ;;  %v850_v35 = vlaneseq }
 0x18c   : > { %v793_v37 = vpop.xlane.xlu1 %792 }
 0x18d   : > { %v812_v39 = vmul.f32 0.00390625, %v793_v37  ;;  %v828_v48 = vsel %vm826_vm1, %v819_v42, 0.0  ;;  %v851_v38 = vshrl.u32 %v850_v35, 7 }
 0x18e   : > { %v829_v55 = vadd.f32 %v828_v48, %v827_v52  ;;  %v772_v48 = vld [vmem:[%s7301_s4 + $0x18] sm:$0xff] }
 0x18f   : > { %v820_v46 = vmul.f32 %v812_v39, %v762_v41  ;;  %v5224_v42 = vsub.s32 0, %v851_v38  ;;  %v781_v38 = vld [vmem:[%s7302_s5 + $0x20] sm:$0xff] }
 0x190   : > { %v796_v44 = vpop.xlane.xlu1 %795 }
 0x191   : > { %v813_v47 = vmul.f32 0.00390625, %v796_v44  ;;  %v830_v53 = vsel %vm826_vm1, %v820_v46, 0.0  ;;  %v769_v46 = vld [vmem:[%s7301_s4] sm:$0xff] }
 0x192   : > { %v831_v61 = vadd.f32 %v830_v53, %v829_v55 }
 0x193   : > { %v821_v49 = vmul.f32 %v813_v47, %v763_v43 }
 0x194   : > { %v799_v51 = vpop.xlane.xlu0 %798 }
 0x195   : > { %v814_v54 = vmul.f32 0.00390625, %v799_v51  ;;  %v832_v58 = vsel %vm826_vm1, %v821_v49, 0.0  ;;  %v771_v49 = vld [vmem:[%s7301_s4 + $0x10] sm:$0xff] }
 0x196   : > { %v802_v57 = vpop.xlane.xlu1 %801  ;;  %v833_v1 = vadd.f32 %v832_v58, %v831_v61 }
 0x197   : > { %v822_v59 = vmul.f32 %v814_v54, %v764_v50  ;;  %v815_v60 = vmul.f32 0.00390625, %v802_v57  ;;  %v773_v57 = vld [vmem:[%s7301_s4 + $0x20] sm:$0xff] }
 0x199   : > { %v834_v62 = vsel %vm826_vm1, %v822_v59, 0.0  ;;  %v823_v63 = vmul.f32 %v815_v60, %v765_v56  ;;  %v774_v56 = vld [vmem:[%s7301_s4 + $0x28] sm:$0xff] }
 0x19a   : > { %v835_v2 = vadd.f32 %v834_v62, %v833_v1  ;;  %v776_v62 = vld [vmem:[%s7301_s4 + $0x38] sm:$0xff] }
 0x19b   : > { %v836_v5 = vsel %vm826_vm1, %v823_v63, 0.0  ;;  %v775_v63 = vld [vmem:[%s7301_s4 + $0x30] sm:$0xff] }
 0x19c   : > { %v805_v4 = vpop.xlane.xlu0 %804  ;;  %v837_v18 = vadd.f32 %v836_v5, %v835_v2 }
 0x19d   : > { %v816_v6 = vmul.f32 0.00390625, %v805_v4 }
 0x19e   : > { %v808_v8 = vpop.xlane.xlu1 %807 }
 0x19f   : > { %v824_v12 = vmul.f32 %v816_v6, %v766_v3  ;;  %v817_v14 = vmul.f32 0.00390625, %v808_v8  ;;  %v777_v8 = vld [vmem:[%s7302_s5] sm:$0xff] }
 0x1a1   : > { %v838_v20 = vsel %vm826_vm1, %v824_v12, 0.0  ;;  %v825_v24 = vmul.f32 %v817_v14, %v767_v7  ;;  %v778_v7 = vld [vmem:[%s7302_s5 + $0x8] sm:$0xff] }
 0x1a2   : > { %v839_v26 = vadd.f32 %v838_v20, %v837_v18 }
 0x1a3   : > { %v840_v30 = vsel %vm826_vm1, %v825_v24, 0.0  ;;  %v780_v24 = vld [vmem:[%s7302_s5 + $0x18] sm:$0xff] }
 0x1a4   : > { %v841_v32 = vadd.f32 %v840_v30, %v839_v26  ;;  %v779_v26 = vld [vmem:[%s7302_s5 + $0x10] sm:$0xff] }
 0x1a6   : > { %v842_v33 = vrot.slane %v841_v32, 4 }
 0x1a8   : > { %v843_v34 = vadd.f32 %v842_v33, %v841_v32 }
 0x1aa   : > { %v844_v36 = vrot.slane %v843_v34, 2 }
 0x1ac   : > { %v845_v37 = vadd.f32 %v844_v36, %v843_v34 }
 0x1ae   : > { %v846_v39 = vrot.slane %v845_v37, 1 }
 0x1b0   : > { %v847_v41 = vadd.f32 %v846_v39, %v845_v37  ;;  %v782_v37 = vld [vmem:[%s7302_s5 + $0x28] sm:$0xff] }
 0x1b2   : > { %v848_v43 = vadd.f32 %v847_v41, %v768_v40 }
 0x1b4   : > { %v849_v44 = vmax.f32 %v848_v43, 0.0 }
 0x1b6   : > { %v853_v47 = vrot.slane %v849_v44, %v5224_v42 }
 0x1b8   : > { %v855_v50 = vmul.f32 %v853_v47, %v770_v45  ;;  %v854_v51 = vmul.f32 %v853_v47, %v769_v46  ;;  %v857_v54 = vmul.f32 %v853_v47, %v772_v48  ;;  %v856_v55 = vmul.f32 %v853_v47, %v771_v49 }
 0x1b9   : > { %v859_v60 = vmul.f32 %v853_v47, %v774_v56  ;;  %v858_v61 = vmul.f32 %v853_v47, %v773_v57  ;;  %v861_v3 = vmul.f32 %v853_v47, %v776_v62  ;;  %v860_v4 = vmul.f32 %v853_v47, %v775_v63  ;;  %v783_v47 = vld [vmem:[%s7302_s5 + $0x30] sm:$0xff] }
 0x1ba   : > { %v865_v52 = vsel %vm826_vm1, %v855_v50, 0.0  ;;  %v862_v53 = vsel %vm826_vm1, %v854_v51, 0.0  ;;  %v871_v58 = vsel %vm826_vm1, %v857_v54, 0.0  ;;  %v868_v59 = vsel %vm826_vm1, %v856_v55, 0.0 }
 0x1bb   : > { %866 = vadd.xlane.f32.xlu1 %v865_v52  ;;  %863 = vadd.xlane.f32.xlu0 %v862_v53  ;;  %v877_v1 = vsel %vm826_vm1, %v859_v60, 0.0  ;;  %v874_v2 = vsel %vm826_vm1, %v858_v61, 0.0  ;;  %v883_v5 = vsel %vm826_vm1, %v861_v3, 0.0  ;;  %v880_v6 = vsel %vm826_vm1, %v860_v4, 0.0  ;;  %v784_v52 = vld [vmem:[%s7302_s5 + $0x38] sm:$0xff] }
 0x1bf   : > { %872 = vadd.xlane.f32.xlu1 %v871_v58  ;;  %869 = vadd.xlane.f32.xlu0 %v868_v59 }
 0x1c3   : > { %878 = vadd.xlane.f32.xlu1 %v877_v1  ;;  %875 = vadd.xlane.f32.xlu0 %v874_v2 }
 0x1c7   : > { %884 = vadd.xlane.f32.xlu1 %v883_v5  ;;  %881 = vadd.xlane.f32.xlu0 %v880_v6 }
 0x248   : > { %v867_v12 = vpop.xlane.xlu1 %866  ;;  %v864_v14 = vpop.xlane.xlu0 %863 }
 0x249   : > { %v887_v18 = vadd.f32 %v867_v12, %v778_v7  ;;  %v886_v20 = vadd.f32 %v864_v14, %v777_v8  ;;  %v1007_v7 = vld [vmem:[%s7304_s7 + $0x8] sm:$0xff] }
 0x24b   : > { %v4380_v30 = vmul.f32 -1.442695, %v887_v18  ;;  %v4379_v32 = vmul.f32 -1.442695, %v886_v20  ;;  %v1009_v18 = vld [vmem:[%s7304_s7 + $0x18] sm:$0xff] }
 0x24c   : > { %v873_v33 = vpop.xlane.xlu1 %872  ;;  %v870_v34 = vpop.xlane.xlu0 %869 }
 0x24d   : > { %4772 = vpow2.f32 %v4380_v30  ;;  %v889_v35 = vadd.f32 %v873_v33, %v780_v24  ;;  %v888_v36 = vadd.f32 %v870_v34, %v779_v26  ;;  %v1011_v30 = vld [vmem:[%s7304_s7 + $0x28] sm:$0xff]  ;;  %v1013_v33 = vld [vmem:[%s7304_s7 + $0x38] sm:$0xff] }
 0x24e   : > { %4774 = vpow2.f32 %v4379_v32 }
 0x24f   : > { %v4382_v39 = vmul.f32 -1.442695, %v889_v35  ;;  %v4381_v40 = vmul.f32 -1.442695, %v888_v36  ;;  %v1015_v35 = vld [vmem:[%s7304_s7 + $0x48] sm:$0xff] }
 0x250   : > { %v879_v41 = vpop.xlane.xlu1 %878  ;;  %v876_v43 = vpop.xlane.xlu0 %875 }
 0x251   : > { %4776 = vpow2.f32 %v4382_v39  ;;  %v891_v44 = vadd.f32 %v879_v41, %v782_v37  ;;  %v890_v45 = vadd.f32 %v876_v43, %v781_v38  ;;  %v1017_v37 = vld [vmem:[%s7304_s7 + $0x58] sm:$0xff]  ;;  %v1019_v39 = vld [vmem:[%s7304_s7 + $0x68] sm:$0xff]  ;;  %v1008_v43 = vld [vmem:[%s7304_s7 + $0x10] sm:$0xff] }
 0x252   : > { %4778 = vpow2.f32 %v4381_v40  ;;  %v1006_v40 = vld [vmem:[%s7304_s7] sm:$0xff]  ;;  %v1021_v41 = vld [vmem:[%s7304_s7 + $0x78] sm:$0xff] }
 0x253   : > { %v4383_v46 = vmul.f32 -1.442695, %v890_v45  ;;  %v4384_v49 = vmul.f32 -1.442695, %v891_v44  ;;  %v1010_v44 = vld [vmem:[%s7304_s7 + $0x20] sm:$0xff]  ;;  %v1012_v45 = vld [vmem:[%s7304_s7 + $0x30] sm:$0xff] }
 0x254   : > { %v882_v48 = vpop.xlane.xlu0 %881  ;;  %v885_v53 = vpop.xlane.xlu1 %884 }
 0x255   : > { %4780 = vpow2.f32 %v4383_v46  ;;  %v892_v50 = vadd.f32 %v882_v48, %v783_v47  ;;  %v893_v57 = vadd.f32 %v885_v53, %v784_v52  ;;  %v1014_v46 = vld [vmem:[%s7304_s7 + $0x40] sm:$0xff]  ;;  %v1016_v47 = vld [vmem:[%s7304_s7 + $0x50] sm:$0xff] }
 0x256   : > { %4782 = vpow2.f32 %v4384_v49  ;;  %v1018_v48 = vld [vmem:[%s7304_s7 + $0x60] sm:$0xff]  ;;  %v1020_v49 = vld [vmem:[%s7304_s7 + $0x70] sm:$0xff] }
 0x257   : > { %v4773_v51 = vpop.eup %4772  ;;  %v4385_v58 = vmul.f32 -1.442695, %v892_v50  ;;  %v4386_v62 = vmul.f32 -1.442695, %v893_v57 }
 0x258   : > { %v4775_v54 = vpop.eup %4774  ;;  %v919_v55 = vadd.f32 1.0, %v4773_v51 }
 0x259   : > { %v918_v56 = vadd.f32 1.0, %v4775_v54 }
 0x25a   : > { %4784 = vrcp.f32 %v919_v55 }
 0x25b   : > { %v4777_v59 = vpop.eup %4776  ;;  %4786 = vrcp.f32 %v918_v56 }
 0x25c   : > { %v4779_v60 = vpop.eup %4778  ;;  %4788 = vpow2.f32 %v4385_v58  ;;  %v921_v63 = vadd.f32 1.0, %v4777_v59 }
 0x25d   : > { %v920_v61 = vadd.f32 1.0, %v4779_v60 }
 0x25f   : > { %4790 = vrcp.f32 %v920_v61  ;;  %v4781_v1 = vpop.eup %4780 }
 0x260   : > { %4792 = vpow2.f32 %v4386_v62  ;;  %v4783_v2 = vpop.eup %4782  ;;  %v922_v3 = vadd.f32 1.0, %v4781_v1 }
 0x261   : > { %4794 = vrcp.f32 %v921_v63  ;;  %v923_v6 = vadd.f32 1.0, %v4783_v2 }
 0x262   : > { %4796 = vrcp.f32 %v922_v3 }
 0x263   : > { %4798 = vrcp.f32 %v923_v6 }
 0x264   : > { %v4785_v4 = vpop.eup %4784 }
 0x265   : > { %v4787_v5 = vpop.eup %4786  ;;  %949 = vperm.xlu1 %4705, %v4785_v4  }
 0x266   : > { %944 = vperm.xlu0 %4704, %v4787_v5   ;;  %v4789_v8 = vpop.eup %4788 }
 0x267   : > { %v924_v14 = vadd.f32 1.0, %v4789_v8  ;;  %v4721_v8 = vld [vmem:[%s7303_s6 + $0x28] sm:$0xff]  }
 0x269   : > { %v4791_v12 = vpop.eup %4790  ;;  %4800 = vrcp.f32 %v924_v14  ;;  %v4723_v14 = vld [vmem:[%s7303_s6 + $0x38] sm:$0xff]  }
 0x26a   : > { %1077 = vperm.xlu0 %4704, %v1007_v7   ;;  %954 = vperm.xlu1 %4705, %v4791_v12   ;;  %v4793_v20 = vpop.eup %4792  ;;  %v4716_v7 = vld [vmem:[%s7303_s6] sm:$0xff]   ;;  %v4722_v12 = vld [vmem:[%s7303_s6 + $0x30] sm:$0xff]  }
 0x26b   : > { %v4795_v24 = vpop.eup %4794  ;;  %v925_v26 = vadd.f32 1.0, %v4793_v20 }
 0x26c   : > { %v4797_v32 = vpop.eup %4796 }
 0x26d   : > { %4802 = vrcp.f32 %v925_v26  ;;  %v4799_v34 = vpop.eup %4798 }
 0x26e   : > { %1087 = vperm.xlu0 %4704, %v1009_v18   ;;  %959 = vperm.xlu1 %4705, %v4795_v24  }
 0x272   : > { %1097 = vperm.xlu0 %4704, %v1011_v30   ;;  %964 = vperm.xlu1 %4705, %v4797_v32  }
 0x273   : > { %v4801_v36 = vpop.eup %4800 }
 0x276   : > { %1107 = vperm.xlu0 %4704, %v1013_v33   ;;  %969 = vperm.xlu1 %4705, %v4799_v34  }
 0x277   : > { %v4803_v38 = vpop.eup %4802 }
 0x27a   : > { %1117 = vperm.xlu0 %4704, %v1015_v35   ;;  %974 = vperm.xlu1 %4705, %v4801_v36  }
 0x27e   : > { %1127 = vperm.xlu0 %4704, %v1017_v37   ;;  %979 = vperm.xlu1 %4705, %v4803_v38  }
 0x282   : > { %1137 = vperm.xlu0 %4704, %v1019_v39   ;;  %1072 = vperm.xlu1 %4705, %v1006_v40  }
 0x286   : > { %1147 = vperm.xlu0 %4704, %v1021_v41   ;;  %1082 = vperm.xlu1 %4705, %v1008_v43  }
 0x28a   : > { %1092 = vperm.xlu1 %4705, %v1010_v44  }
 0x28e   : > { %1102 = vperm.xlu1 %4705, %v1012_v45  }
 0x292   : > { %1112 = vperm.xlu1 %4705, %v1014_v46  }
 0x296   : > { %1122 = vperm.xlu1 %4705, %v1016_v47  }
 0x29a   : > { %1132 = vperm.xlu1 %4705, %v1018_v48  }
 0x29e   : > { %1142 = vperm.xlu1 %4705, %v1020_v49  }
 0x2e4   : > { %v950_v50 = vpop.permute.xlu1 %949 }
 0x2e5   : > { %v984_v51 = vmul.f32 %v950_v50, %v5145_v11  ;;  %v985_v52 = vmul.f32 %v950_v50, %v5149_v13  ;;  %v945_v53 = vpop.permute.xlu0 %944 }
 0x2e6   : > { %v982_v54 = vmul.f32 %v945_v53, %v5141_v9  ;;  %v983_v55 = vmul.f32 %v945_v53, %v5143_v10 }
 0x2e8   : > { %v5335_v56 = vpack.c.bf16 %v985_v52, %v983_v55  ;;  %v5337_v57 = vpack.c.bf16 %v984_v51, %v982_v54 }
 0x2e9   : > { %v955_v58 = vpop.permute.xlu1 %954  ;;  %v5416_v30 = vpop.permute.xlu0 %1077 }
 0x2ea   : > { %1214 = vmatprep.subr.bf16.mxu1 %v5335_v56  ;;  %v986_v60 = vmul.f32 %v955_v58, %v5153_v15  ;;  %v987_v11 = vmul.f32 %v955_v58, %v5155_v16 }
 0x2eb   : > { %1215 = vmatpush1.bf16.msra.mxu1 %v5337_v57 }
 0x2ed   : > { %v960_v59 = vpop.permute.xlu1 %959  ;;  %v5436_v44 = vpop.permute.xlu0 %1087 }
 0x2ee   : > { %v988_v13 = vmul.f32 %v960_v59, %v5157_v17  ;;  %v989_v9 = vmul.f32 %v960_v59, %v5161_v19  ;;  %7388 = vst [vmem:[#allocation3_spill] sm:$0xff] %v5436_v44 }
 0x2f0   : > { %v5345_v61 = vpack.c.bf16 %v989_v9, %v987_v11  ;;  %v5347_v10 = vpack.c.bf16 %v988_v13, %v986_v60 }
 0x2f1   : > { %v965_v62 = vpop.permute.xlu1 %964  ;;  %v5456_v58 = vpop.permute.xlu0 %1097 }
 0x2f2   : > { %1216 = vmatprep.subr.bf16.mxu1 %v5345_v61  ;;  %v990_v1 = vmul.f32 %v965_v62, %v5165_v21  ;;  %v991_v15 = vmul.f32 %v965_v62, %v5167_v22  ;;  %7390 = vst [vmem:[#allocation5_spill] sm:$0xff] %v5456_v58 }
 0x2f3   : > { %1217 = vmatpush1.bf16.msra.mxu1 %v5347_v10 }
 0x2f5   : > { %v970_v63 = vpop.permute.xlu1 %969 }
 0x2f6   : > { %v992_v16 = vmul.f32 %v970_v63, %v5169_v23  ;;  %v993_v17 = vmul.f32 %v970_v63, %v5173_v25 }
 0x2f8   : > { %v5355_v2 = vpack.c.bf16 %v993_v17, %v991_v15  ;;  %v5357_v19 = vpack.c.bf16 %v992_v16, %v990_v1 }
 0x2f9   : > { %v975_v3 = vpop.permute.xlu1 %974 }
 0x2fa   : > { %1218 = vmatprep.subr.bf16.mxu1 %v5355_v2  ;;  %v994_v5 = vmul.f32 %v975_v3, %v5177_v27  ;;  %v995_v21 = vmul.f32 %v975_v3, %v5179_v28  ;;  %v4717_v27 = vld [vmem:[%s7303_s6 + $0x8] sm:$0xff]   ;;  %v4718_v28 = vld [vmem:[%s7303_s6 + $0x10] sm:$0xff]   ;;  %v5476_v3 = vpop.permute.xlu0 %1107 }
 0x2fb   : > { %1219 = vmatpush1.bf16.msra.mxu1 %v5357_v19  ;;  %7392 = vst [vmem:[#allocation7_spill] sm:$0xff] %v5476_v3 }
 0x2fd   : > { %v980_v4 = vpop.permute.xlu1 %979 }
 0x2fe   : > { %v996_v22 = vmul.f32 %v980_v4, %v5181_v29  ;;  %v997_v23 = vmul.f32 %v980_v4, %v5185_v31  ;;  %v4719_v29 = vld [vmem:[%s7303_s6 + $0x18] sm:$0xff]   ;;  %v4720_v31 = vld [vmem:[%s7303_s6 + $0x20] sm:$0xff]  }
 0x300   : > { %v5365_v6 = vpack.c.bf16 %v997_v23, %v995_v21  ;;  %v5367_v25 = vpack.c.bf16 %v996_v22, %v994_v5 }
 0x301   : > { %v5411_v18 = vpop.permute.xlu1 %1072 }
 0x302   : > { %1220 = vmatprep.subr.bf16.mxu1 %v5365_v6 }
 0x303   : > { %1221 = vmatpush1.bf16.msra.mxu1 %v5367_v25 }
 0x305   : > { %v5431_v39 = vpop.permute.xlu1 %1082 }
 0x306   : > { %4395 = vmatmul.mubr.msk.bf16.vlgmr.msra.gmra.mrb[0].mxu1 %vm826_vm1, %v4716_v7  ;;  %7387 = vst [vmem:[#allocation2_spill] sm:$0xff] %v5431_v39 }
 0x307   : > { %1256 = vmatprep.mubr.bf16.mxu1 %v7317_v0 }
 0x309   : > { %v5451_v52 = vpop.permute.xlu1 %1092 }
 0x30a   : > { %7389 = vst [vmem:[#allocation4_spill] sm:$0xff] %v5451_v52 }
 0x30d   : > { %v5471_v1 = vpop.permute.xlu1 %1102 }
 0x30e   : > { %4396 = vmatmul.mubr.msk.bf16.gmra.mrb[4].mxu1 %vm826_vm1, %v4717_v27  ;;  %7391 = vst [vmem:[#allocation6_spill] sm:$0xff] %v5471_v1 }
 0x30f   : > { %1266 = vmatprep.mubr.bf16.mxu1 %v7317_v0 }
 0x316   : > { %4397 = vmatmul.mubr.msk.bf16.gmra.mrb[8].mxu1 %vm826_vm1, %v4718_v28  ;;  %v5491_v28 = vpop.permute.xlu1 %1112 }
 0x317   : > { %1276 = vmatprep.mubr.bf16.mxu1 %v7317_v0  ;;  %7393 = vst [vmem:[#allocation8_spill] sm:$0xff] %v5491_v28 }
 0x31e   : > { %4398 = vmatmul.mubr.msk.bf16.gmra.mrb[12].mxu1 %vm826_vm1, %v4719_v29 }
 0x31f   : > { %1286 = vmatprep.mubr.bf16.mxu1 %v7317_v0 }
 0x326   : > { %4399 = vmatmul.mubr.msk.bf16.gmra.mrb[16].mxu1 %vm826_vm1, %v4720_v31 }
 0x327   : > { %1296 = vmatprep.mubr.bf16.mxu1 %v7317_v0 }
 0x32e   : > { %4400 = vmatmul.mubr.msk.bf16.gmra.mrb[20].mxu1 %vm826_vm1, %v4721_v8 }
 0x32f   : > { %1306 = vmatprep.mubr.bf16.mxu1 %v7317_v0 }
 0x336   : > { %4401 = vmatmul.mubr.msk.bf16.gmra.mrb[24].mxu1 %vm826_vm1, %v4722_v12  ;;  %v5496_v12 = vpop.permute.xlu0 %1117 }
 0x337   : > { %1316 = vmatprep.mubr.bf16.mxu1 %v7317_v0  ;;  %7394 = vst [vmem:[#allocation9_spill] sm:$0xff] %v5496_v12 }
 0x33e   : > { %4402 = vmatmul.mubr.msk.bf16.gmra.mrb[28].mxu1 %vm826_vm1, %v4723_v14 }
 0x33f   : > { %1971 = vmatprep.mubr.bf16.mxu1 %v7317_v0 }
 0x3d9   : > { %v1248_v20 = vpop.f32.mrb[0].mxu1 }
 0x3da   : > { %v5414_v24 = vadd.f32 %v1248_v20, %v5411_v18  ;;  %v1250_v26 = vpop.f32.mrb[1].mxu1 }
 0x3db   : > { %v5419_v32 = vadd.f32 %v1250_v26, %v5411_v18  ;;  %v1252_v33 = vpop.f32.mrb[2].mxu1 }
 0x3dc   : > { %v5422_v34 = vadd.f32 %v1252_v33, %v5416_v30  ;;  %v1254_v35 = vpop.f32.mrb[3].mxu1 }
 0x3dd   : > { %v5425_v36 = vadd.f32 %v1254_v35, %v5416_v30  ;;  %v1376_v37 = vadd.f32 %v5419_v32, %v5414_v24 }
 0x3df   : > { %1377 = vadd.xlane.f32.xlu1 %v1376_v37  ;;  %v1379_v38 = vadd.f32 %v5425_v36, %v5422_v34 }
 0x3e1   : > { %v1258_v40 = vpop.f32.mrb[4].mxu1  ;;  %1380 = vadd.xlane.f32.xlu0 %v1379_v38 }
 0x3e2   : > { %v5434_v41 = vadd.f32 %v1258_v40, %v5431_v39  ;;  %v1260_v43 = vpop.f32.mrb[5].mxu1  ;;  %v5511_v40 = vpop.permute.xlu1 %1122 }
 0x3e3   : > { %v5439_v45 = vadd.f32 %v1260_v43, %v5431_v39  ;;  %v1262_v46 = vpop.f32.mrb[6].mxu1  ;;  %7395 = vst [vmem:[#allocation10_spill] sm:$0xff] %v5511_v40 }
 0x3e4   : > { %v5442_v47 = vadd.f32 %v1262_v46, %v5436_v44  ;;  %v1264_v48 = vpop.f32.mrb[7].mxu1 }
 0x3e5   : > { %v5445_v49 = vadd.f32 %v1264_v48, %v5436_v44  ;;  %v1382_v50 = vadd.f32 %v5439_v45, %v5434_v41 }
 0x3e7   : > { %1383 = vadd.xlane.f32.xlu0 %v1382_v50  ;;  %v1385_v51 = vadd.f32 %v5445_v49, %v5442_v47  ;;  %v5516_v50 = vpop.permute.xlu0 %1127 }
 0x3e8   : > { %7396 = vst [vmem:[#allocation11_spill] sm:$0xff] %v5516_v50 }
 0x3e9   : > { %v1268_v53 = vpop.f32.mrb[8].mxu1  ;;  %1386 = vadd.xlane.f32.xlu1 %v1385_v51 }
 0x3ea   : > { %v5454_v54 = vadd.f32 %v1268_v53, %v5451_v52  ;;  %v1270_v55 = vpop.f32.mrb[9].mxu1 }
 0x3eb   : > { %v5459_v59 = vadd.f32 %v1270_v55, %v5451_v52  ;;  %v1272_v60 = vpop.f32.mrb[10].mxu1 }
 0x3ec   : > { %v5462_v11 = vadd.f32 %v1272_v60, %v5456_v58  ;;  %v1274_v13 = vpop.f32.mrb[11].mxu1 }
 0x3ed   : > { %v5465_v9 = vadd.f32 %v1274_v13, %v5456_v58  ;;  %v1388_v62 = vadd.f32 %v5459_v59, %v5454_v54 }
 0x3ef   : > { %1389 = vadd.xlane.f32.xlu0 %v1388_v62  ;;  %v1391_v63 = vadd.f32 %v5465_v9, %v5462_v11 }
 0x3f1   : > { %v1278_v15 = vpop.f32.mrb[12].mxu1  ;;  %1392 = vadd.xlane.f32.xlu1 %v1391_v63 }
 0x3f2   : > { %v5474_v16 = vadd.f32 %v1278_v15, %v5471_v1  ;;  %v1280_v17 = vpop.f32.mrb[13].mxu1  ;;  %v5531_v15 = vpop.permute.xlu1 %1132 }
 0x3f3   : > { %v5479_v4 = vadd.f32 %v1280_v17, %v5471_v1  ;;  %v1282_v5 = vpop.f32.mrb[14].mxu1  ;;  %7397 = vst [vmem:[#allocation12_spill] sm:$0xff] %v5531_v15 }
 0x3f4   : > { %v5482_v21 = vadd.f32 %v1282_v5, %v5476_v3  ;;  %v1284_v22 = vpop.f32.mrb[15].mxu1 }
 0x3f5   : > { %v5485_v23 = vadd.f32 %v1284_v22, %v5476_v3  ;;  %v1394_v7 = vadd.f32 %v5479_v4, %v5474_v16  ;;  %v1331_v3 = vld [vmem:[%s7305_s8 + $0x20] sm:$0xff] }
 0x3f7   : > { %1395 = vadd.xlane.f32.xlu0 %v1394_v7  ;;  %v1397_v27 = vadd.f32 %v5485_v23, %v5482_v21  ;;  %v5536_v7 = vpop.permute.xlu0 %1137 }
 0x3f8   : > { %7398 = vst [vmem:[#allocation13_spill] sm:$0xff] %v5536_v7 }
 0x3f9   : > { %v1288_v29 = vpop.f32.mrb[16].mxu1  ;;  %1398 = vadd.xlane.f32.xlu1 %v1397_v27 }
 0x3fa   : > { %v5494_v31 = vadd.f32 %v1288_v29, %v5491_v28  ;;  %v1290_v8 = vpop.f32.mrb[17].mxu1 }
 0x3fb   : > { %v5499_v14 = vadd.f32 %v1290_v8, %v5491_v28  ;;  %v1292_v20 = vpop.f32.mrb[18].mxu1  ;;  %v1330_v28 = vld [vmem:[%s7305_s8 + $0x18] sm:$0xff] }
 0x3fc   : > { %v5502_v26 = vadd.f32 %v1292_v20, %v5496_v12  ;;  %v1294_v33 = vpop.f32.mrb[19].mxu1 }
 0x3fd   : > { %v5505_v35 = vadd.f32 %v1294_v33, %v5496_v12  ;;  %v1400_v37 = vadd.f32 %v5499_v14, %v5494_v31 }
 0x3ff   : > { %1401 = vadd.xlane.f32.xlu0 %v1400_v37  ;;  %v1403_v38 = vadd.f32 %v5505_v35, %v5502_v26 }
 0x401   : > { %v1298_v43 = vpop.f32.mrb[20].mxu1  ;;  %1404 = vadd.xlane.f32.xlu1 %v1403_v38 }
 0x402   : > { %v5514_v46 = vadd.f32 %v1298_v43, %v5511_v40  ;;  %v1300_v48 = vpop.f32.mrb[21].mxu1  ;;  %v5551_v43 = vpop.permute.xlu1 %1142 }
 0x403   : > { %v5519_v51 = vadd.f32 %v1300_v48, %v5511_v40  ;;  %v1302_v53 = vpop.f32.mrb[22].mxu1  ;;  %7399 = vst [vmem:[#allocation14_spill] sm:$0xff] %v5551_v43 }
 0x404   : > { %v5522_v55 = vadd.f32 %v1302_v53, %v5516_v50  ;;  %v1304_v60 = vpop.f32.mrb[23].mxu1 }
 0x405   : > { %v5525_v13 = vadd.f32 %v1304_v60, %v5516_v50  ;;  %v1406_v62 = vadd.f32 %v5519_v51, %v5514_v46 }
 0x407   : > { %1407 = vadd.xlane.f32.xlu0 %v1406_v62  ;;  %v1409_v63 = vadd.f32 %v5525_v13, %v5522_v55  ;;  %v5556_v62 = vpop.permute.xlu0 %1147 }
 0x408   : > { %7400 = vst [vmem:[#allocation15_spill] sm:$0xff] %v5556_v62 }
 0x409   : > { %v1308_v17 = vpop.f32.mrb[24].mxu1  ;;  %1410 = vadd.xlane.f32.xlu1 %v1409_v63 }
 0x40a   : > { %v5534_v5 = vadd.f32 %v1308_v17, %v5531_v15  ;;  %v1310_v22 = vpop.f32.mrb[25].mxu1 }
 0x40b   : > { %v5539_v27 = vadd.f32 %v1310_v22, %v5531_v15  ;;  %v1312_v29 = vpop.f32.mrb[26].mxu1 }
 0x40c   : > { %v5542_v8 = vadd.f32 %v1312_v29, %v5536_v7  ;;  %v1314_v20 = vpop.f32.mrb[27].mxu1 }
 0x40d   : > { %v5545_v33 = vadd.f32 %v1314_v20, %v5536_v7  ;;  %v1412_v37 = vadd.f32 %v5539_v27, %v5534_v5 }
 0x40f   : > { %1413 = vadd.xlane.f32.xlu0 %v1412_v37  ;;  %v1415_v38 = vadd.f32 %v5545_v33, %v5542_v8 }
 0x411   : > { %v1318_v48 = vpop.f32.mrb[28].mxu1  ;;  %1416 = vadd.xlane.f32.xlu1 %v1415_v38 }
 0x412   : > { %v5554_v53 = vadd.f32 %v1318_v48, %v5551_v43  ;;  %v1320_v60 = vpop.f32.mrb[29].mxu1 }
 0x413   : > { %v5559_v63 = vadd.f32 %v1320_v60, %v5551_v43  ;;  %v1322_v17 = vpop.f32.mrb[30].mxu1 }
 0x414   : > { %v5562_v22 = vadd.f32 %v1322_v17, %v5556_v62  ;;  %v1324_v29 = vpop.f32.mrb[31].mxu1  ;;  %v1328_v17 = vld [vmem:[%s7305_s8 + $0x8] sm:$0xff] }
 0x415   : > { %v5565_v20 = vadd.f32 %v1324_v29, %v5556_v62  ;;  %v1418_v37 = vadd.f32 %v5559_v63, %v5554_v53  ;;  %v1327_v29 = vld [vmem:[%s7305_s8] sm:$0xff] }
 0x417   : > { %1419 = vadd.xlane.f32.xlu0 %v1418_v37  ;;  %v1421_v38 = vadd.f32 %v5565_v20, %v5562_v22  ;;  %v1329_v37 = vld [vmem:[%s7305_s8 + $0x10] sm:$0xff] }
 0x419   : > { %1422 = vadd.xlane.f32.xlu1 %v1421_v38 }
 0x46c   : > { %v1378_v0 = vpop.xlane.xlu1 %1377 }
 0x46d   : > { %v1424_v7 = vmul.f32 0.00390625, %v1378_v0 }
 0x46e   : > { %v1381_v48 = vpop.xlane.xlu0 %1380 }
 0x46f   : > { %v1425_v43 = vmul.f32 0.00390625, %v1381_v48  ;;  %v1440_v40 = vmul.f32 %v1424_v7, %v1327_v29 }
 0x471   : > { %v1441_v38 = vmul.f32 %v1425_v43, %v1328_v17 }
 0x473   : > { %v1456_v0 = vadd.f32 %v1441_v38, %v1440_v40  ;;  %v1333_v40 = vld [vmem:[%s7305_s8 + $0x30] sm:$0xff] }
 0x474   : > { %v1384_v60 = vpop.xlane.xlu0 %1383 }
 0x475   : > { %v1426_v15 = vmul.f32 0.00390625, %v1384_v60 }
 0x476   : > { %v1387_v62 = vpop.xlane.xlu1 %1386 }
 0x477   : > { %v1442_v12 = vmul.f32 %v1426_v15, %v1329_v37  ;;  %v1427_v48 = vmul.f32 0.00390625, %v1387_v62  ;;  %v1332_v15 = vld [vmem:[%s7305_s8 + $0x28] sm:$0xff] }
 0x479   : > { %v1457_v58 = vadd.f32 %v1456_v0, %v1442_v12  ;;  %v1443_v52 = vmul.f32 %v1427_v48, %v1330_v28 }
 0x47b   : > { %v1458_v7 = vadd.f32 %v1457_v58, %v1443_v52 }
 0x47c   : > { %v1390_v50 = vpop.xlane.xlu0 %1389 }
 0x47d   : > { %v1428_v60 = vmul.f32 0.00390625, %v1390_v50 }
 0x47e   : > { %v1393_v1 = vpop.xlane.xlu1 %1392 }
 0x47f   : > { %v1444_v39 = vmul.f32 %v1428_v60, %v1331_v3  ;;  %v1429_v43 = vmul.f32 0.00390625, %v1393_v1  ;;  %v1334_v1 = vld [vmem:[%s7305_s8 + $0x38] sm:$0xff] }
 0x481   : > { %v1459_v17 = vadd.f32 %v1458_v7, %v1444_v39  ;;  %v1445_v29 = vmul.f32 %v1429_v43, %v1332_v15  ;;  %v1336_v39 = vld [vmem:[%s7305_s8 + $0x48] sm:$0xff] }
 0x483   : > { %v1460_v3 = vadd.f32 %v1459_v17, %v1445_v29 }
 0x484   : > { %v1396_v44 = vpop.xlane.xlu0 %1395 }
 0x485   : > { %v1430_v62 = vmul.f32 0.00390625, %v1396_v44  ;;  %v1335_v44 = vld [vmem:[%s7305_s8 + $0x40] sm:$0xff] }
 0x486   : > { %v1399_v50 = vpop.xlane.xlu1 %1398 }
 0x487   : > { %v1446_v38 = vmul.f32 %v1430_v62, %v1333_v40  ;;  %v1431_v12 = vmul.f32 0.00390625, %v1399_v50  ;;  %v1337_v62 = vld [vmem:[%s7305_s8 + $0x50] sm:$0xff] }
 0x489   : > { %v1461_v58 = vadd.f32 %v1460_v3, %v1446_v38  ;;  %v1447_v48 = vmul.f32 %v1431_v12, %v1334_v1  ;;  %v1338_v38 = vld [vmem:[%s7305_s8 + $0x58] sm:$0xff]  ;;  %v1339_v1 = vld [vmem:[%s7305_s8 + $0x60] sm:$0xff] }
 0x48b   : > { %v1462_v15 = vadd.f32 %v1461_v58, %v1447_v48 }
 0x48c   : > { %v1402_v37 = vpop.xlane.xlu0 %1401 }
 0x48d   : > { %v1432_v28 = vmul.f32 0.00390625, %v1402_v37 }
 0x48e   : > { %v1405_v52 = vpop.xlane.xlu1 %1404 }
 0x48f   : > { %v1448_v0 = vmul.f32 %v1432_v28, %v1335_v44  ;;  %v1433_v60 = vmul.f32 0.00390625, %v1405_v52 }
 0x491   : > { %v1463_v50 = vadd.f32 %v1462_v15, %v1448_v0  ;;  %v1449_v17 = vmul.f32 %v1433_v60, %v1336_v39  ;;  %v1340_v0 = vld [vmem:[%s7305_s8 + $0x68] sm:$0xff] }
 0x493   : > { %v1464_v12 = vadd.f32 %v1463_v50, %v1449_v17  ;;  %v1342_v50 = vld [vmem:[%s7305_s8 + $0x78] sm:$0xff] }
 0x494   : > { %v1408_v43 = vpop.xlane.xlu0 %1407 }
 0x495   : > { %v1434_v7 = vmul.f32 0.00390625, %v1408_v43 }
 0x496   : > { %v1411_v40 = vpop.xlane.xlu1 %1410 }
 0x497   : > { %v1450_v29 = vmul.f32 %v1434_v7, %v1337_v62  ;;  %v1435_v37 = vmul.f32 0.00390625, %v1411_v40  ;;  %v1341_v7 = vld [vmem:[%s7305_s8 + $0x70] sm:$0xff] }
 0x499   : > { %v1465_v28 = vadd.f32 %v1464_v12, %v1450_v29  ;;  %v1451_v44 = vmul.f32 %v1435_v37, %v1338_v38 }
 0x49b   : > { %v1466_v60 = vadd.f32 %v1465_v28, %v1451_v44 }
 0x49c   : > { %v1414_v3 = vpop.xlane.xlu0 %1413 }
 0x49d   : > { %v1436_v52 = vmul.f32 0.00390625, %v1414_v3 }
 0x49e   : > { %v1417_v58 = vpop.xlane.xlu1 %1416 }
 0x49f   : > { %v1452_v48 = vmul.f32 %v1436_v52, %v1339_v1  ;;  %v1437_v43 = vmul.f32 0.00390625, %v1417_v58 }
 0x4a1   : > { %v1467_v39 = vadd.f32 %v1466_v60, %v1452_v48  ;;  %v1453_v15 = vmul.f32 %v1437_v43, %v1340_v0  ;;  %v1343_v43 = vld [vmem:[%s7306_s9] sm:$0x1] }
 0x4a3   : > { %v1468_v29 = vadd.f32 %v1467_v39, %v1453_v15  ;;  %v1345_v39 = vld [vmem:[%s7307_s10 + $0x8] sm:$0xff]  ;;  %v1344_v15 = vld [vmem:[%s7307_s10] sm:$0xff] }
 0x4a4   : > { %v1420_v62 = vpop.xlane.xlu0 %1419 }
 0x4a5   : > { %v1438_v40 = vmul.f32 0.00390625, %v1420_v62 }
 0x4a6   : > { %v1423_v17 = vpop.xlane.xlu1 %1422 }
 0x4a7   : > { %v1454_v37 = vmul.f32 %v1438_v40, %v1341_v7  ;;  %v1439_v38 = vmul.f32 0.00390625, %v1423_v17  ;;  %v1347_v17 = vld [vmem:[%s7307_s10 + $0x18] sm:$0xff] }
 0x4a9   : > { %v1469_v12 = vadd.f32 %v1468_v29, %v1454_v37  ;;  %v1455_v1 = vmul.f32 %v1439_v38, %v1342_v50  ;;  %v1346_v29 = vld [vmem:[%s7307_s10 + $0x10] sm:$0xff] }
 0x4ab   : > { %v1470_v3 = vadd.f32 %v1469_v12, %v1455_v1  ;;  %v1349_v12 = vld [vmem:[%s7307_s10 + $0x28] sm:$0xff]  ;;  %v1348_v1 = vld [vmem:[%s7307_s10 + $0x20] sm:$0xff] }
 0x4ad   : > { %v1471_v28 = vrot.slane %v1470_v3, 4 }
 0x4af   : > { %v1472_v44 = vadd.f32 %v1471_v28, %v1470_v3 }
 0x4b1   : > { %v1473_v52 = vrot.slane %v1472_v44, 2 }
 0x4b3   : > { %v1474_v58 = vadd.f32 %v1473_v52, %v1472_v44  ;;  %v1351_v44 = vld [vmem:[%s7307_s10 + $0x38] sm:$0xff]  ;;  %v1350_v52 = vld [vmem:[%s7307_s10 + $0x30] sm:$0xff] }
 0x4b5   : > { %v1475_v48 = vrot.slane %v1474_v58, 1 }
 0x4b7   : > { %v1476_v0 = vadd.f32 %v1475_v48, %v1474_v58 }
 0x4b9   : > { %v1477_v60 = vadd.f32 %v1476_v0, %v1343_v43  ;;  %v1353_v43 = vld [vmem:[%s7307_s10 + $0x48] sm:$0xff]  ;;  %v1352_v0 = vld [vmem:[%s7307_s10 + $0x40] sm:$0xff] }
 0x4bb   : > { %v1478_v62 = vmax.f32 %v1477_v60, 0.0 }
 0x4bd   : > { %v1482_v7 = vrot.slane %v1478_v62, %v5224_v42 }
 0x4bf   : > { %v1484_v40 = vmul.f32 %v1482_v7, %v1345_v39  ;;  %v1483_v50 = vmul.f32 %v1482_v7, %v1344_v15  ;;  %v1486_v37 = vmul.f32 %v1482_v7, %v1347_v17  ;;  %v1485_v38 = vmul.f32 %v1482_v7, %v1346_v29  ;;  %v1355_v39 = vld [vmem:[%s7307_s10 + $0x58] sm:$0xff]  ;;  %v1354_v15 = vld [vmem:[%s7307_s10 + $0x50] sm:$0xff]  ;;  %v1357_v17 = vld [vmem:[%s7307_s10 + $0x68] sm:$0xff] }
 0x4c0   : > { %v1488_v3 = vmul.f32 %v1482_v7, %v1349_v12  ;;  %v1487_v28 = vmul.f32 %v1482_v7, %v1348_v1  ;;  %v1490_v58 = vmul.f32 %v1482_v7, %v1351_v44  ;;  %v1489_v48 = vmul.f32 %v1482_v7, %v1350_v52  ;;  %v1356_v29 = vld [vmem:[%s7307_s10 + $0x60] sm:$0xff]  ;;  %v1359_v12 = vld [vmem:[%s7307_s10 + $0x78] sm:$0xff]  ;;  %v1358_v1 = vld [vmem:[%s7307_s10 + $0x70] sm:$0xff] }
 0x4c1   : > { %1501 = vadd.xlane.f32.xlu1 %v1484_v40  ;;  %1499 = vadd.xlane.f32.xlu0 %v1483_v50  ;;  %v1492_v60 = vmul.f32 %v1482_v7, %v1353_v43  ;;  %v1491_v62 = vmul.f32 %v1482_v7, %v1352_v0  ;;  %v1494_v40 = vmul.f32 %v1482_v7, %v1355_v39  ;;  %v1361_v44 = vld [vmem:[%s7308_s11 + $0x8] sm:$0xff]  ;;  %v1360_v52 = vld [vmem:[%s7308_s11] sm:$0xff] }
 0x4c2   : > { %v1493_v50 = vmul.f32 %v1482_v7, %v1354_v15 }
 0x4c5   : > { %1505 = vadd.xlane.f32.xlu1 %v1486_v37  ;;  %1503 = vadd.xlane.f32.xlu0 %v1485_v38  ;;  %v1496_v37 = vmul.f32 %v1482_v7, %v1357_v17  ;;  %v1495_v38 = vmul.f32 %v1482_v7, %v1356_v29  ;;  %v1365_v29 = vld [vmem:[%s7308_s11 + $0x28] sm:$0xff] }
 0x4c9   : > { %1509 = vadd.xlane.f32.xlu1 %v1488_v3  ;;  %1507 = vadd.xlane.f32.xlu0 %v1487_v28  ;;  %v1498_v3 = vmul.f32 %v1482_v7, %v1359_v12  ;;  %v1497_v28 = vmul.f32 %v1482_v7, %v1358_v1  ;;  %v1362_v7 = vld [vmem:[%s7308_s11 + $0x10] sm:$0xff] }
 0x4cd   : > { %1513 = vadd.xlane.f32.xlu1 %v1490_v58  ;;  %1511 = vadd.xlane.f32.xlu0 %v1489_v48 }
 0x4d1   : > { %1517 = vadd.xlane.f32.xlu1 %v1492_v60  ;;  %1515 = vadd.xlane.f32.xlu0 %v1491_v62  ;;  %v1363_v60 = vld [vmem:[%s7308_s11 + $0x18] sm:$0xff] }
 0x4d5   : > { %1521 = vadd.xlane.f32.xlu1 %v1494_v40  ;;  %1519 = vadd.xlane.f32.xlu0 %v1493_v50 }
 0x4d9   : > { %1525 = vadd.xlane.f32.xlu1 %v1496_v37  ;;  %1523 = vadd.xlane.f32.xlu0 %v1495_v38  ;;  %v1364_v37 = vld [vmem:[%s7308_s11 + $0x20] sm:$0xff] }
 0x4dd   : > { %1529 = vadd.xlane.f32.xlu1 %v1498_v3  ;;  %1527 = vadd.xlane.f32.xlu0 %v1497_v28 }
 0x54e   : > { %v1502_v58 = vpop.xlane.xlu1 %1501  ;;  %v1500_v48 = vpop.xlane.xlu0 %1499 }
 0x54f   : > { %v1532_v43 = vadd.f32 %v1502_v58, %v1361_v44  ;;  %v1531_v0 = vadd.f32 %v1500_v48, %v1360_v52  ;;  %v1367_v52 = vld [vmem:[%s7308_s11 + $0x38] sm:$0xff]  ;;  %v1366_v58 = vld [vmem:[%s7308_s11 + $0x30] sm:$0xff] }
 0x551   : > { %v4404_v62 = vmul.f32 -1.442695, %v1532_v43  ;;  %v4403_v39 = vmul.f32 -1.442695, %v1531_v0 }
 0x552   : > { %v1506_v15 = vpop.xlane.xlu1 %1505  ;;  %v1504_v40 = vpop.xlane.xlu0 %1503 }
 0x553   : > { %4804 = vpow2.f32 %v4404_v62  ;;  %v1534_v50 = vadd.f32 %v1506_v15, %v1363_v60  ;;  %v1533_v17 = vadd.f32 %v1504_v40, %v1362_v7  ;;  %v1368_v15 = vld [vmem:[%s7308_s11 + $0x40] sm:$0xff] }
 0x554   : > { %4806 = vpow2.f32 %v4403_v39  ;;  %v1369_v39 = vld [vmem:[%s7308_s11 + $0x48] sm:$0xff] }
 0x555   : > { %v4406_v38 = vmul.f32 -1.442695, %v1534_v50  ;;  %v4405_v12 = vmul.f32 -1.442695, %v1533_v17 }
 0x556   : > { %v1510_v1 = vpop.xlane.xlu1 %1509  ;;  %v1508_v3 = vpop.xlane.xlu0 %1507 }
 0x557   : > { %4808 = vpow2.f32 %v4406_v38  ;;  %v1536_v28 = vadd.f32 %v1510_v1, %v1365_v29  ;;  %v1535_v44 = vadd.f32 %v1508_v3, %v1364_v37 }
 0x558   : > { %4810 = vpow2.f32 %v4405_v12 }
 0x559   : > { %v4408_v48 = vmul.f32 -1.442695, %v1536_v28  ;;  %v4407_v43 = vmul.f32 -1.442695, %v1535_v44  ;;  %v1371_v44 = vld [vmem:[%s7308_s11 + $0x58] sm:$0xff] }
 0x55a   : > { %v1514_v0 = vpop.xlane.xlu1 %1513  ;;  %v1512_v60 = vpop.xlane.xlu0 %1511 }
 0x55b   : > { %4812 = vpow2.f32 %v4408_v48  ;;  %v1538_v7 = vadd.f32 %v1514_v0, %v1367_v52  ;;  %v1537_v62 = vadd.f32 %v1512_v60, %v1366_v58  ;;  %v1370_v52 = vld [vmem:[%s7308_s11 + $0x50] sm:$0xff] }
 0x55c   : > { %4814 = vpow2.f32 %v4407_v43 }
 0x55d   : > { %v4805_v40 = vpop.eup %4804  ;;  %v4410_v50 = vmul.f32 -1.442695, %v1538_v7  ;;  %v4409_v37 = vmul.f32 -1.442695, %v1537_v62 }
 0x55e   : > { %v4807_v17 = vpop.eup %4806  ;;  %v1596_v29 = vadd.f32 1.0, %v4805_v40  ;;  %v1518_v38 = vpop.xlane.xlu1 %1517 }
 0x55f   : > { %v1516_v12 = vpop.xlane.xlu0 %1515  ;;  %v1595_v1 = vadd.f32 1.0, %v4807_v17  ;;  %4816 = vpow2.f32 %v4410_v50  ;;  %v1540_v3 = vadd.f32 %v1518_v38, %v1369_v39  ;;  %v1373_v50 = vld [vmem:[%s7308_s11 + $0x68] sm:$0xff]  ;;  %v1372_v17 = vld [vmem:[%s7308_s11 + $0x60] sm:$0xff] }
 0x560   : > { %v1539_v28 = vadd.f32 %v1516_v12, %v1368_v15  ;;  %4818 = vrcp.f32 %v1596_v29 }
 0x561   : > { %v4809_v58 = vpop.eup %4808  ;;  %4820 = vrcp.f32 %v1595_v1  ;;  %v4412_v48 = vmul.f32 -1.442695, %v1540_v3 }
 0x562   : > { %v4811_v43 = vpop.eup %4810  ;;  %v1598_v0 = vadd.f32 1.0, %v4809_v58  ;;  %4822 = vpow2.f32 %v4409_v37  ;;  %v4411_v60 = vmul.f32 -1.442695, %v1539_v28  ;;  %v1522_v7 = vpop.xlane.xlu1 %1521 }
 0x563   : > { %v1520_v62 = vpop.xlane.xlu0 %1519  ;;  %v1597_v39 = vadd.f32 1.0, %v4811_v43  ;;  %4824 = vpow2.f32 %v4412_v48  ;;  %v1542_v15 = vadd.f32 %v1522_v7, %v1371_v44  ;;  %v1375_v48 = vld [vmem:[%s7308_s11 + $0x78] sm:$0xff]  ;;  %v1374_v43 = vld [vmem:[%s7308_s11 + $0x70] sm:$0xff] }
 0x564   : > { %v1541_v40 = vadd.f32 %v1520_v62, %v1370_v52  ;;  %4826 = vrcp.f32 %v1598_v0 }
 0x565   : > { %v4813_v29 = vpop.eup %4812  ;;  %4828 = vrcp.f32 %v1597_v39  ;;  %v4414_v38 = vmul.f32 -1.442695, %v1542_v15 }
 0x566   : > { %v4815_v37 = vpop.eup %4814  ;;  %v1600_v12 = vadd.f32 1.0, %v4813_v29  ;;  %4830 = vpow2.f32 %v4411_v60  ;;  %v4413_v1 = vmul.f32 -1.442695, %v1541_v40  ;;  %v1526_v3 = vpop.xlane.xlu1 %1525 }
 0x567   : > { %v1524_v28 = vpop.xlane.xlu0 %1523  ;;  %v1599_v44 = vadd.f32 1.0, %v4815_v37  ;;  %4832 = vpow2.f32 %v4414_v38  ;;  %v1544_v52 = vadd.f32 %v1526_v3, %v1373_v50 }
 0x568   : > { %v1543_v58 = vadd.f32 %v1524_v28, %v1372_v17  ;;  %4834 = vrcp.f32 %v1600_v12 }
 0x569   : > { %v4817_v0 = vpop.eup %4816  ;;  %4836 = vrcp.f32 %v1599_v44  ;;  %v4416_v7 = vmul.f32 -1.442695, %v1544_v52 }
 0x56a   : > { %v4415_v60 = vmul.f32 -1.442695, %v1543_v58  ;;  %v4819_v62 = vpop.eup %4818  ;;  %v1602_v39 = vadd.f32 1.0, %v4817_v0  ;;  %4838 = vpow2.f32 %v4413_v1  ;;  %v1530_v15 = vpop.xlane.xlu1 %1529 }
 0x56b   : > { %v1528_v40 = vpop.xlane.xlu0 %1527  ;;  %v4821_v50 = vpop.eup %4820  ;;  %4840 = vpow2.f32 %v4416_v7  ;;  %v1546_v17 = vadd.f32 %v1530_v15, %v1375_v48  ;;  %1650 = vperm.xlu1 %4705, %v4819_v62  }
 0x56c   : > { %v1545_v29 = vadd.f32 %v1528_v40, %v1374_v43  ;;  %v4823_v38 = vpop.eup %4822  ;;  %4842 = vrcp.f32 %v1602_v39  ;;  %1645 = vperm.xlu0 %4704, %v4821_v50  }
 0x56d   : > { %v4825_v37 = vpop.eup %4824  ;;  %v1601_v12 = vadd.f32 1.0, %v4823_v38  ;;  %4844 = vpow2.f32 %v4415_v60  ;;  %v4418_v3 = vmul.f32 -1.442695, %v1546_v17 }
 0x56e   : > { %v4827_v28 = vpop.eup %4826  ;;  %v1604_v44 = vadd.f32 1.0, %v4825_v37  ;;  %v4417_v52 = vmul.f32 -1.442695, %v1545_v29 }
 0x56f   : > { %v4829_v58 = vpop.eup %4828  ;;  %4846 = vrcp.f32 %v1601_v12 }
 0x570   : > { %v4831_v1 = vpop.eup %4830  ;;  %4848 = vrcp.f32 %v1604_v44  ;;  %1660 = vperm.xlu0 %4704, %v4827_v28   ;;  %1655 = vperm.xlu1 %4705, %v4829_v58  }
 0x571   : > { %v4833_v0 = vpop.eup %4832  ;;  %v1603_v48 = vadd.f32 1.0, %v4831_v1  ;;  %4850 = vpow2.f32 %v4418_v3 }
 0x572   : > { %v4835_v43 = vpop.eup %4834  ;;  %v1606_v7 = vadd.f32 1.0, %v4833_v0  ;;  %4852 = vpow2.f32 %v4417_v52 }
 0x573   : > { %v4837_v62 = vpop.eup %4836  ;;  %4854 = vrcp.f32 %v1603_v48 }
 0x574   : > { %v4839_v39 = vpop.eup %4838  ;;  %4856 = vrcp.f32 %v1606_v7  ;;  %1670 = vperm.xlu0 %4704, %v4835_v43   ;;  %1665 = vperm.xlu1 %4705, %v4837_v62  }
 0x575   : > { %v4841_v60 = vpop.eup %4840  ;;  %v1605_v15 = vadd.f32 1.0, %v4839_v39 }
 0x576   : > { %v4843_v40 = vpop.eup %4842  ;;  %v1608_v50 = vadd.f32 1.0, %v4841_v60 }
 0x577   : > { %v4845_v17 = vpop.eup %4844  ;;  %4858 = vrcp.f32 %v1605_v15 }
 0x578   : > { %4860 = vrcp.f32 %v1608_v50  ;;  %v1607_v29 = vadd.f32 1.0, %v4845_v17  ;;  %1680 = vperm.xlu0 %4704, %v4843_v40  }
 0x579   : > { %v4847_v38 = vpop.eup %4846 }
 0x57a   : > { %v4849_v37 = vpop.eup %4848  ;;  %4862 = vrcp.f32 %v1607_v29  ;;  %1675 = vperm.xlu1 %4705, %v4847_v38  }
 0x57b   : > { %v4851_v12 = vpop.eup %4850 }
 0x57c   : > { %v4853_v3 = vpop.eup %4852  ;;  %v1610_v28 = vadd.f32 1.0, %v4851_v12  ;;  %1690 = vperm.xlu0 %4704, %v4849_v37  }
 0x57d   : > { %v4855_v44 = vpop.eup %4854  ;;  %v1609_v52 = vadd.f32 1.0, %v4853_v3 }
 0x57e   : > { %v4857_v58 = vpop.eup %4856  ;;  %4864 = vrcp.f32 %v1610_v28  ;;  %1685 = vperm.xlu1 %4705, %v4855_v44  }
 0x57f   : > { %4866 = vrcp.f32 %v1609_v52 }
 0x580   : > { %1700 = vperm.xlu0 %4704, %v4857_v58  }
 0x581   : > { %v4859_v1 = vpop.eup %4858 }
 0x582   : > { %v4861_v0 = vpop.eup %4860  ;;  %1695 = vperm.xlu1 %4705, %v4859_v1  }
 0x584   : > { %v4863_v48 = vpop.eup %4862  ;;  %1710 = vperm.xlu0 %4704, %v4861_v0  }
 0x586   : > { %1705 = vperm.xlu1 %4705, %v4863_v48  }
 0x588   : > { %v4865_v43 = vpop.eup %4864 }
 0x589   : > { %v4867_v7 = vpop.eup %4866  ;;  %1720 = vperm.xlu0 %4704, %v4865_v43  }
 0x58a   : > { %1715 = vperm.xlu1 %4705, %v4867_v7  }
 0x5ea   : > { %v1651_v62 = vpop.permute.xlu1 %1650 }
 0x5eb   : > { %v1725_v39 = vmul.f32 %v1651_v62, %v5422_v34  ;;  %v1726_v60 = vmul.f32 %v1651_v62, %v5425_v36  ;;  %v1646_v15 = vpop.permute.xlu0 %1645 }
 0x5ec   : > { %v1723_v40 = vmul.f32 %v1646_v15, %v5414_v24  ;;  %v1724_v50 = vmul.f32 %v1646_v15, %v5419_v32 }
 0x5ee   : > { %v5723_v17 = vpack.c.bf16 %v1725_v39, %v1723_v40  ;;  %v5725_v29 = vpack.c.bf16 %v1726_v60, %v1724_v50 }
 0x5ef   : > { %v1656_v38 = vpop.permute.xlu1 %1655  ;;  %v1661_v37 = vpop.permute.xlu0 %1660 }
 0x5f0   : > { %v1727_v12 = vmul.f32 %v1656_v38, %v5434_v41  ;;  %v1728_v3 = vmul.f32 %v1656_v38, %v5439_v45  ;;  %v1729_v28 = vmul.f32 %v1661_v37, %v5442_v47  ;;  %v1730_v34 = vmul.f32 %v1661_v37, %v5445_v49  ;;  %1899 = vmatprep.subr.bf16.mxu0 %v5725_v29 }
 0x5f1   : > { %4679 = vmatprep.subr.bf16.mxu1 %v5725_v29  ;;  %1900 = vmatpush1.bf16.msra.mxu0 %v5723_v17 }
 0x5f2   : > { %v5734_v24 = vpack.c.bf16 %v1729_v28, %v1727_v12  ;;  %4687 = vmatpush1.bf16.msra.mxu1 %v5723_v17  ;;  %v5737_v32 = vpack.c.bf16 %v1730_v34, %v1728_v3 }
 0x5f3   : > { %v1666_v36 = vpop.permute.xlu1 %1665  ;;  %v1671_v41 = vpop.permute.xlu0 %1670 }
 0x5f4   : > { %v1731_v45 = vmul.f32 %v1666_v36, %v5454_v54  ;;  %v1732_v47 = vmul.f32 %v1666_v36, %v5459_v59  ;;  %v1733_v49 = vmul.f32 %v1671_v41, %v5462_v11  ;;  %v1734_v44 = vmul.f32 %v1671_v41, %v5465_v9  ;;  %1901 = vmatprep.subr.bf16.mxu0 %v5737_v32 }
 0x5f5   : > { %4680 = vmatprep.subr.bf16.mxu1 %v5737_v32  ;;  %1902 = vmatpush1.bf16.msra.mxu0 %v5734_v24 }
 0x5f6   : > { %v5746_v52 = vpack.c.bf16 %v1733_v49, %v1731_v45  ;;  %4688 = vmatpush1.bf16.msra.mxu1 %v5734_v24  ;;  %v5749_v58 = vpack.c.bf16 %v1734_v44, %v1732_v47  ;;  %v4724_v47 = vld [vmem:[%s7309_s12] sm:$0xff]   ;;  %v4740_v49 = vld [vmem:[%s7303_s6 + $0x98] sm:$0xff]  }
 0x5f7   : > { %v1681_v1 = vpop.permute.xlu0 %1680  ;;  %v4741_v44 = vld [vmem:[%s7303_s6 + $0xa0] sm:$0xff]  }
 0x5f8   : > { %v1737_v54 = vmul.f32 %v1681_v1, %v5482_v21  ;;  %v1738_v59 = vmul.f32 %v1681_v1, %v5485_v23  ;;  %1903 = vmatprep.subr.bf16.mxu0 %v5749_v58  ;;  %4681 = vmatprep.subr.bf16.mxu1 %v5749_v58  ;;  %v4744_v1 = vld [vmem:[%s7303_s6 + $0xb8] sm:$0xff]  }
 0x5f9   : > { %v1676_v11 = vpop.permute.xlu1 %1675  ;;  %1904 = vmatpush1.bf16.msra.mxu0 %v5746_v52 }
 0x5fa   : > { %v1735_v9 = vmul.f32 %v1676_v11, %v5474_v16  ;;  %v1736_v0 = vmul.f32 %v1676_v11, %v5479_v4  ;;  %4689 = vmatpush1.bf16.msra.mxu1 %v5746_v52 }
 0x5fb   : > { %v1691_v48 = vpop.permute.xlu0 %1690 }
 0x5fc   : > { %v5759_v43 = vpack.c.bf16 %v1737_v54, %v1735_v9  ;;  %v1741_v21 = vmul.f32 %v1691_v48, %v5502_v26  ;;  %v1742_v23 = vmul.f32 %v1691_v48, %v5505_v35  ;;  %v5763_v7 = vpack.c.bf16 %v1738_v59, %v1736_v0 }
 0x5fd   : > { %v1686_v62 = vpop.permute.xlu1 %1685 }
 0x5fe   : > { %v1739_v39 = vmul.f32 %v1686_v62, %v5494_v31  ;;  %v1740_v60 = vmul.f32 %v1686_v62, %v5499_v14  ;;  %1905 = vmatprep.subr.bf16.mxu0 %v5763_v7  ;;  %4682 = vmatprep.subr.bf16.mxu1 %v5763_v7 }
 0x5ff   : > { %1906 = vmatpush1.bf16.msra.mxu0 %v5759_v43  ;;  %4690 = vmatpush1.bf16.msra.mxu1 %v5759_v43  ;;  %v1701_v16 = vpop.permute.xlu0 %1700 }
 0x600   : > { %v5771_v4 = vpack.c.bf16 %v1741_v21, %v1739_v39  ;;  %v1745_v26 = vmul.f32 %v1701_v16, %v5522_v55  ;;  %v1746_v35 = vmul.f32 %v1701_v16, %v5525_v13  ;;  %v5775_v15 = vpack.c.bf16 %v1742_v23, %v1740_v60 }
 0x601   : > { %v1696_v31 = vpop.permute.xlu1 %1695 }
 0x602   : > { %v1743_v14 = vmul.f32 %v1696_v31, %v5514_v46  ;;  %v1744_v40 = vmul.f32 %v1696_v31, %v5519_v51  ;;  %1907 = vmatprep.subr.bf16.mxu0 %v5775_v15  ;;  %4683 = vmatprep.subr.bf16.mxu1 %v5775_v15 }
 0x603   : > { %1908 = vmatpush1.bf16.msra.mxu0 %v5771_v4  ;;  %4691 = vmatpush1.bf16.msra.mxu1 %v5771_v4  ;;  %v1711_v50 = vpop.permute.xlu0 %1710 }
 0x604   : > { %v1765_v38 = vpack.c.bf16 %v1745_v26, %v1743_v14  ;;  %v1749_v55 = vmul.f32 %v1711_v50, %v5542_v8  ;;  %v1750_v13 = vmul.f32 %v1711_v50, %v5545_v33  ;;  %v1766_v37 = vpack.c.bf16 %v1746_v35, %v1744_v40 }
 0x605   : > { %v1706_v12 = vpop.permute.xlu1 %1705 }
 0x606   : > { %v1747_v46 = vmul.f32 %v1706_v12, %v5534_v5  ;;  %v1748_v51 = vmul.f32 %v1706_v12, %v5539_v27  ;;  %1909 = vmatprep.subr.bf16.mxu0 %v1766_v37  ;;  %4684 = vmatprep.subr.bf16.mxu1 %v1766_v37 }
 0x607   : > { %1910 = vmatpush1.bf16.msra.mxu0 %v1765_v38  ;;  %4692 = vmatpush1.bf16.msra.mxu1 %v1765_v38 }
 0x608   : > { %v1767_v3 = vpack.c.bf16 %v1749_v55, %v1747_v46  ;;  %v1721_v28 = vpop.permute.xlu0 %1720  ;;  %v1768_v34 = vpack.c.bf16 %v1750_v13, %v1748_v51  ;;  %v7422_v46 = vld [vmem:[#allocation2_spill] sm:$0xff] }
 0x609   : > { %v1716_v36 = vpop.permute.xlu1 %1715  ;;  %v1753_v41 = vmul.f32 %v1721_v28, %v5562_v22  ;;  %v1754_v8 = vmul.f32 %v1721_v28, %v5565_v20  ;;  %v4725_v22 = vld [vmem:[%s7309_s12 + $0x20] sm:$0xff]   ;;  %v4727_v20 = vld [vmem:[%s7309_s12 + $0x10] sm:$0xff]  }
 0x60a   : > { %v1751_v33 = vmul.f32 %v1716_v36, %v5554_v53  ;;  %v1752_v45 = vmul.f32 %v1716_v36, %v5559_v63  ;;  %1911 = vmatprep.subr.bf16.mxu0 %v1768_v34  ;;  %4685 = vmatprep.subr.bf16.mxu1 %v1768_v34  ;;  %v7401_v53 = vmov 0   ;;  %v4726_v63 = vld [vmem:[%s7309_s12 + $0x8] sm:$0xff]  }
 0x60b   : > { %1912 = vmatpush1.bf16.msra.mxu0 %v1767_v3  ;;  %4693 = vmatpush1.bf16.msra.mxu1 %v1767_v3  ;;  %v7425_v36 = vld [vmem:[#allocation3_spill] sm:$0xff] }
 0x60c   : > { %v1769_v5 = vpack.c.bf16 %v1753_v41, %v1751_v33  ;;  %v1770_v27 = vpack.c.bf16 %v1754_v8, %v1752_v45 }
 0x60e   : > { %1913 = vmatprep.subr.bf16.mxu0 %v1770_v27  ;;  %4686 = vmatprep.subr.bf16.mxu1 %v1770_v27 }
 0x60f   : > { %1914 = vmatpush1.bf16.msra.mxu0 %v1769_v5  ;;  %4694 = vmatpush1.bf16.msra.mxu1 %v1769_v5 }
 0x610   : > { %2013 = vmatprep.subr.bf16.mxu1 %v5725_v29  ;;  %2402 = vmatprep.subr.bf16.mxu0 %v5335_v56  ;;  %v4730_v29 = vld [vmem:[%s7303_s6 + $0x48] sm:$0xff]  }
 0x612   : > { %1932 = vmatmul.mubr.bf16.vlgmr.msra.gmra.mrb[16].mxu0 %v4724_v47  ;;  %1972 = vmatmul.mubr.bf16.vlgmr.msra.gmra.mrb[32].mxu1 %v4725_v22  ;;  %v7428_v47 = vld [vmem:[#allocation4_spill] sm:$0xff] }
 0x613   : > { %2014 = vmatpush1.bf16.msra.mxu1 %v5723_v17  ;;  %2403 = vmatpush1.bf16.msra.mxu0 %v5337_v57  ;;  %v4728_v17 = vld [vmem:[%s7309_s12 + $0x18] sm:$0xff]  }
 0x614   : > { %2015 = vmatprep.subr.bf16.mxu1 %v5737_v32  ;;  %2404 = vmatprep.subr.bf16.mxu0 %v5345_v61  ;;  %v4739_v32 = vld [vmem:[%s7303_s6 + $0x90] sm:$0xff]  }
 0x615   : > { %1941 = vmatprep.mubr.bf16.mxu0 %v7401_v53  ;;  %1981 = vmatprep.mubr.bf16.mxu1 %v7401_v53 }
 0x617   : > { %2016 = vmatpush1.bf16.msra.mxu1 %v5734_v24  ;;  %2405 = vmatpush1.bf16.msra.mxu0 %v5347_v10  ;;  %v4738_v24 = vld [vmem:[%s7303_s6 + $0x88] sm:$0xff]  }
 0x618   : > { %2017 = vmatprep.subr.bf16.mxu1 %v5749_v58  ;;  %2406 = vmatprep.subr.bf16.mxu0 %v5355_v2  ;;  %v4743_v58 = vld [vmem:[%s7303_s6 + $0xb0] sm:$0xff]  }
 0x61a   : > { %1942 = vmatmul.mubr.bf16.gmra.mrb[20].mxu0 %v4726_v63 }
 0x61b   : > { %2018 = vmatpush1.bf16.msra.mxu1 %v5746_v52  ;;  %2407 = vmatpush1.bf16.msra.mxu0 %v5357_v19  ;;  %v4742_v52 = vld [vmem:[%s7303_s6 + $0xa8] sm:$0xff]  }
 0x61c   : > { %2019 = vmatprep.subr.bf16.mxu1 %v5763_v7  ;;  %2408 = vmatprep.subr.bf16.mxu0 %v5365_v6 }
 0x61d   : > { %1951 = vmatprep.mubr.bf16.mxu0 %v7401_v53 }
 0x61f   : > { %2020 = vmatpush1.bf16.msra.mxu1 %v5759_v43  ;;  %2409 = vmatpush1.bf16.msra.mxu0 %v5367_v25 }
 0x620   : > { %2021 = vmatprep.subr.bf16.mxu1 %v5775_v15  ;;  %3351 = vmatprep.subr.bf16.mxu0 %v5335_v56  ;;  %v4729_v56 = vld [vmem:[%s7303_s6 + $0x40] sm:$0xff]  }
 0x622   : > { %1952 = vmatmul.mubr.bf16.gmra.mrb[24].mxu0 %v4727_v20 }
 0x623   : > { %2022 = vmatpush1.bf16.msra.mxu1 %v5771_v4  ;;  %1961 = vmatprep.mubr.bf16.mxu0 %v7401_v53 }
 0x624   : > { %2023 = vmatprep.subr.bf16.mxu1 %v1766_v37 }
 0x627   : > { %2024 = vmatpush1.bf16.msra.mxu1 %v1765_v38 }
 0x628   : > { %2025 = vmatprep.subr.bf16.mxu1 %v1768_v34 }
 0x62a   : > { %1962 = vmatmul.mubr.bf16.gmra.mrb[28].mxu0 %v4728_v17 }
 0x62b   : > { %2026 = vmatpush1.bf16.msra.mxu1 %v1767_v3  ;;  %2434 = vmatprep.mubr.bf16.mxu0 %v7401_v53 }
 0x62c   : > { %2027 = vmatprep.subr.bf16.mxu1 %v1770_v27 }
 0x62f   : > { %2028 = vmatpush1.bf16.msra.mxu1 %v1769_v5 }
 0x632   : > { %4468 = vmatmul.mubr.msk.bf16.vlgmr.msra.gmra.mrb[32].mxu0 %vm826_vm1, %v4729_v56  ;;  %v7431_v56 = vld [vmem:[#allocation5_spill] sm:$0xff] }
 0x633   : > { %3352 = vmatpush1.bf16.msra.mxu0 %v5337_v57  ;;  %2444 = vmatprep.mubr.bf16.mxu0 %v7401_v53  ;;  %v4731_v57 = vld [vmem:[%s7303_s6 + $0x50] sm:$0xff]  }
 0x634   : > { %3353 = vmatprep.subr.bf16.mxu0 %v5345_v61  ;;  %v4732_v61 = vld [vmem:[%s7303_s6 + $0x58] sm:$0xff]  }
 0x637   : > { %3354 = vmatpush1.bf16.msra.mxu0 %v5347_v10  ;;  %v4733_v10 = vld [vmem:[%s7303_s6 + $0x60] sm:$0xff]  }
 0x638   : > { %3355 = vmatprep.subr.bf16.mxu0 %v5355_v2  ;;  %v4734_v2 = vld [vmem:[%s7303_s6 + $0x68] sm:$0xff]  }
 0x63a   : > { %4469 = vmatmul.mubr.msk.bf16.gmra.mrb[36].mxu0 %vm826_vm1, %v4730_v29 }
 0x63b   : > { %3356 = vmatpush1.bf16.msra.mxu0 %v5357_v19  ;;  %2454 = vmatprep.mubr.bf16.mxu0 %v7401_v53  ;;  %v4735_v19 = vld [vmem:[%s7303_s6 + $0x70] sm:$0xff]  }
 0x63c   : > { %3357 = vmatprep.subr.bf16.mxu0 %v5365_v6  ;;  %v4736_v6 = vld [vmem:[%s7303_s6 + $0x78] sm:$0xff]  }
 0x63f   : > { %3358 = vmatpush1.bf16.msra.mxu0 %v5367_v25  ;;  %v4737_v25 = vld [vmem:[%s7303_s6 + $0x80] sm:$0xff]  }
 0x642   : > { %4470 = vmatmul.mubr.msk.bf16.gmra.mrb[40].mxu0 %vm826_vm1, %v4731_v57 }
 0x643   : > { %2464 = vmatprep.mubr.bf16.mxu0 %v7401_v53 }
 0x64a   : > { %4471 = vmatmul.mubr.msk.bf16.gmra.mrb[44].mxu0 %vm826_vm1, %v4732_v61 }
 0x64b   : > { %2474 = vmatprep.mubr.bf16.mxu0 %v7401_v53 }
 0x652   : > { %4472 = vmatmul.mubr.msk.bf16.gmra.mrb[48].mxu0 %vm826_vm1, %v4733_v10 }
 0x653   : > { %2484 = vmatprep.mubr.bf16.mxu0 %v7401_v53 }
 0x65a   : > { %4473 = vmatmul.mubr.msk.bf16.gmra.mrb[52].mxu0 %vm826_vm1, %v4734_v2 }
 0x65b   : > { %2494 = vmatprep.mubr.bf16.mxu0 %v7401_v53 }
 0x662   : > { %4474 = vmatmul.mubr.msk.bf16.gmra.mrb[56].mxu0 %vm826_vm1, %v4735_v19 }
 0x663   : > { %2504 = vmatprep.mubr.bf16.mxu0 %v7401_v53 }
 0x66a   : > { %4475 = vmatmul.mubr.msk.bf16.gmra.mrb[60].mxu0 %vm826_vm1, %v4736_v6  ;;  %v7434_v6 = vld [vmem:[#allocation6_spill] sm:$0xff] }
 0x66b   : > { %3383 = vmatprep.mubr.bf16.mxu0 %v7401_v53 }
 0x672   : > { %4582 = vmatmul.mubr.msk.bf16.vlgmr.msra.gmra.mrb[64].mxu0 %vm826_vm1, %v4737_v25 }
 0x673   : > { %3393 = vmatprep.mubr.bf16.mxu0 %v7401_v53 }
 0x67a   : > { %4583 = vmatmul.mubr.msk.bf16.gmra.mrb[68].mxu0 %vm826_vm1, %v4738_v24 }
 0x67b   : > { %3403 = vmatprep.mubr.bf16.mxu0 %v7401_v53 }
 0x682   : > { %4584 = vmatmul.mubr.msk.bf16.gmra.mrb[72].mxu0 %vm826_vm1, %v4739_v32 }
 0x683   : > { %3413 = vmatprep.mubr.bf16.mxu0 %v7401_v53 }
 0x68a   : > { %4585 = vmatmul.mubr.msk.bf16.gmra.mrb[76].mxu0 %vm826_vm1, %v4740_v49 }
 0x68b   : > { %3423 = vmatprep.mubr.bf16.mxu0 %v7401_v53 }
 0x692   : > { %4586 = vmatmul.mubr.msk.bf16.gmra.mrb[80].mxu0 %vm826_vm1, %v4741_v44  ;;  %v7437_v44 = vld [vmem:[#allocation7_spill] sm:$0xff] }
 0x693   : > { %3433 = vmatprep.mubr.bf16.mxu0 %v7401_v53 }
 0x69a   : > { %4587 = vmatmul.mubr.msk.bf16.gmra.mrb[84].mxu0 %vm826_vm1, %v4742_v52 }
 0x69b   : > { %3443 = vmatprep.mubr.bf16.mxu0 %v7401_v53 }
 0x6a2   : > { %4588 = vmatmul.mubr.msk.bf16.gmra.mrb[88].mxu0 %vm826_vm1, %v4743_v58 }
 0x6a3   : > { %3453 = vmatprep.mubr.bf16.mxu0 %v7401_v53 }
 0x6aa   : > { %4589 = vmatmul.mubr.msk.bf16.gmra.mrb[92].mxu0 %vm826_vm1, %v4744_v1 }
 0x6ab   : > { %4074 = vmatprep.mubr.bf16.mxu0 %v7401_v53 }
 0x6e5   : > { %v5917_v54 = vpop.f32.mrb[16].mxu0 }
 0x6e6   : > { %7402 = vst [vmem:[#allocation16_spill] sm:$0xff] %v5917_v54  ;;  %v5919_v59 = vpop.f32.mrb[17].mxu0 }
 0x6e7   : > { %7403 = vst [vmem:[#allocation17_spill] sm:$0xff] %v5919_v59  ;;  %v5921_v11 = vpop.f32.mrb[18].mxu0 }
 0x6e8   : > { %7404 = vst [vmem:[#allocation18_spill] sm:$0xff] %v5921_v11  ;;  %v5923_v9 = vpop.f32.mrb[19].mxu0 }
 0x6e9   : > { %7405 = vst [vmem:[#allocation19_spill] sm:$0xff] %v5923_v9 }
 0x6ed   : > { %v5925_v0 = vpop.f32.mrb[20].mxu0 }
 0x6ee   : > { %7406 = vst [vmem:[#allocation20_spill] sm:$0xff] %v5925_v0  ;;  %v5927_v48 = vpop.f32.mrb[21].mxu0 }
 0x6ef   : > { %7407 = vst [vmem:[#allocation21_spill] sm:$0xff] %v5927_v48  ;;  %v5929_v43 = vpop.f32.mrb[22].mxu0 }
 0x6f0   : > { %7408 = vst [vmem:[#allocation22_spill] sm:$0xff] %v5929_v43  ;;  %v5931_v21 = vpop.f32.mrb[23].mxu0 }
 0x6f1   : > { %7409 = vst [vmem:[#allocation23_spill] sm:$0xff] %v5931_v21 }
 0x6f5   : > { %v5933_v23 = vpop.f32.mrb[24].mxu0 }
 0x6f6   : > { %7410 = vst [vmem:[#allocation24_spill] sm:$0xff] %v5933_v23  ;;  %v5935_v7 = vpop.f32.mrb[25].mxu0  ;;  %v7461_v23 = vld [vmem:[#allocation15_spill] sm:$0xff] }
 0x6f7   : > { %7411 = vst [vmem:[#allocation25_spill] sm:$0xff] %v5935_v7  ;;  %v5937_v62 = vpop.f32.mrb[26].mxu0 }
 0x6f8   : > { %7412 = vst [vmem:[#allocation26_spill] sm:$0xff] %v5937_v62  ;;  %v5939_v39 = vpop.f32.mrb[27].mxu0 }
 0x6f9   : > { %7413 = vst [vmem:[#allocation27_spill] sm:$0xff] %v5939_v39 }
 0x6fd   : > { %v5941_v60 = vpop.f32.mrb[28].mxu0 }
 0x6fe   : > { %7414 = vst [vmem:[#allocation28_spill] sm:$0xff] %v5941_v60  ;;  %v5943_v16 = vpop.f32.mrb[29].mxu0 }
 0x6ff   : > { %7415 = vst [vmem:[#allocation29_spill] sm:$0xff] %v5943_v16  ;;  %v5945_v4 = vpop.f32.mrb[30].mxu0 }
 0x700   : > { %7416 = vst [vmem:[#allocation30_spill] sm:$0xff] %v5945_v4  ;;  %v5947_v26 = vpop.f32.mrb[31].mxu0 }
 0x701   : > { %7417 = vst [vmem:[#allocation31_spill] sm:$0xff] %v5947_v26  ;;  %v7458_v26 = vld [vmem:[#allocation14_spill] sm:$0xff] }
 0x705   : > { %v2436_v35 = vpop.f32.mrb[32].mxu0 }
 0x706   : > { %v5950_v15 = vadd.f32 %v2436_v35, %v5411_v18  ;;  %v2438_v31 = vpop.f32.mrb[33].mxu0 }
 0x707   : > { %v5953_v14 = vadd.f32 %v2438_v31, %v5411_v18  ;;  %v2440_v40 = vpop.f32.mrb[34].mxu0 }
 0x708   : > { %7418 = vst [vmem:[#allocation32_spill] sm:$0xff] %v5950_v15  ;;  %v5956_v50 = vadd.f32 %v2440_v40, %v5416_v30  ;;  %v2442_v38 = vpop.f32.mrb[35].mxu0 }
 0x709   : > { %7419 = vst [vmem:[#allocation33_spill] sm:$0xff] %v5953_v14  ;;  %v5959_v55 = vadd.f32 %v2442_v38, %v5416_v30  ;;  %v2566_v13 = vadd.f32 %v5953_v14, %v5950_v15  ;;  %v7440_v38 = vld [vmem:[#allocation8_spill] sm:$0xff] }
 0x70a   : > { %7420 = vst [vmem:[#allocation34_spill] sm:$0xff] %v5956_v50 }
 0x70b   : > { %7421 = vst [vmem:[#allocation35_spill] sm:$0xff] %v5959_v55  ;;  %2567 = vadd.xlane.f32.xlu1 %v2566_v13  ;;  %v2569_v37 = vadd.f32 %v5959_v55, %v5956_v50 }
 0x70d   : > { %v2446_v12 = vpop.f32.mrb[36].mxu0  ;;  %2570 = vadd.xlane.f32.xlu0 %v2569_v37 }
 0x70e   : > { %v5966_v51 = vadd.f32 %v2446_v12, %v7422_v46  ;;  %v2448_v3 = vpop.f32.mrb[37].mxu0 }
 0x70f   : > { %v5969_v28 = vadd.f32 %v2448_v3, %v7422_v46  ;;  %v2450_v34 = vpop.f32.mrb[38].mxu0 }
 0x710   : > { %7423 = vst [vmem:[#allocation2_spill] sm:$0xff] %v5966_v51  ;;  %v5972_v41 = vadd.f32 %v2450_v34, %v7425_v36  ;;  %v2452_v8 = vpop.f32.mrb[39].mxu0  ;;  %v7443_v34 = vld [vmem:[#allocation9_spill] sm:$0xff] }
 0x711   : > { %7424 = vst [vmem:[#allocation36_spill] sm:$0xff] %v5969_v28  ;;  %v5975_v33 = vadd.f32 %v2452_v8, %v7425_v36  ;;  %v2572_v45 = vadd.f32 %v5969_v28, %v5966_v51 }
 0x712   : > { %7426 = vst [vmem:[#allocation3_spill] sm:$0xff] %v5972_v41 }
 0x713   : > { %7427 = vst [vmem:[#allocation37_spill] sm:$0xff] %v5975_v33  ;;  %2573 = vadd.xlane.f32.xlu0 %v2572_v45  ;;  %v2575_v5 = vadd.f32 %v5975_v33, %v5972_v41  ;;  %v4477_v33 = vld [vmem:[%s7305_s8 + $0x88] sm:$0xff] }
 0x715   : > { %v2456_v27 = vpop.f32.mrb[40].mxu0  ;;  %2576 = vadd.xlane.f32.xlu1 %v2575_v5 }
 0x716   : > { %v5982_v22 = vadd.f32 %v2456_v27, %v7428_v47  ;;  %v2458_v63 = vpop.f32.mrb[41].mxu0 }
 0x717   : > { %v5985_v20 = vadd.f32 %v2458_v63, %v7428_v47  ;;  %v2460_v17 = vpop.f32.mrb[42].mxu0 }
 0x718   : > { %7429 = vst [vmem:[#allocation4_spill] sm:$0xff] %v5982_v22  ;;  %v5988_v29 = vadd.f32 %v2460_v17, %v7431_v56  ;;  %v2462_v57 = vpop.f32.mrb[43].mxu0 }
 0x719   : > { %7430 = vst [vmem:[#allocation38_spill] sm:$0xff] %v5985_v20  ;;  %v5991_v61 = vadd.f32 %v2462_v57, %v7431_v56  ;;  %v2578_v10 = vadd.f32 %v5985_v20, %v5982_v22  ;;  %v7446_v57 = vld [vmem:[#allocation10_spill] sm:$0xff] }
 0x71a   : > { %7432 = vst [vmem:[#allocation5_spill] sm:$0xff] %v5988_v29 }
 0x71b   : > { %7433 = vst [vmem:[#allocation39_spill] sm:$0xff] %v5991_v61  ;;  %v2581_v2 = vadd.f32 %v5991_v61, %v5988_v29  ;;  %2579 = vadd.xlane.f32.xlu0 %v2578_v10  ;;  %v4747_v61 = vld [vmem:[%s7309_s12 + $0x38] sm:$0xff]  }
 0x71d   : > { %v2466_v19 = vpop.f32.mrb[44].mxu0  ;;  %2582 = vadd.xlane.f32.xlu1 %v2581_v2 }
 0x71e   : > { %v5998_v25 = vadd.f32 %v2466_v19, %v7434_v6  ;;  %v2468_v24 = vpop.f32.mrb[45].mxu0 }
 0x71f   : > { %v6001_v32 = vadd.f32 %v2468_v24, %v7434_v6  ;;  %v2470_v49 = vpop.f32.mrb[46].mxu0 }
 0x720   : > { %7435 = vst [vmem:[#allocation6_spill] sm:$0xff] %v5998_v25  ;;  %v6004_v52 = vadd.f32 %v2470_v49, %v7437_v44  ;;  %v2472_v58 = vpop.f32.mrb[47].mxu0  ;;  %v7449_v49 = vld [vmem:[#allocation11_spill] sm:$0xff] }
 0x721   : > { %7436 = vst [vmem:[#allocation40_spill] sm:$0xff] %v6001_v32  ;;  %v6007_v1 = vadd.f32 %v2472_v58, %v7437_v44  ;;  %v2584_v35 = vadd.f32 %v6001_v32, %v5998_v25 }
 0x722   : > { %7438 = vst [vmem:[#allocation7_spill] sm:$0xff] %v6004_v52 }
 0x723   : > { %7439 = vst [vmem:[#allocation41_spill] sm:$0xff] %v6007_v1  ;;  %v2587_v31 = vadd.f32 %v6007_v1, %v6004_v52  ;;  %2585 = vadd.xlane.f32.xlu0 %v2584_v35  ;;  %v4745_v1 = vld [vmem:[%s7309_s12 + $0x28] sm:$0xff]   ;;  %v4746_v52 = vld [vmem:[%s7309_s12 + $0x30] sm:$0xff]  }
 0x724   : > { %1982 = vmatmul.mubr.bf16.gmra.mrb[36].mxu1 %v4745_v1  ;;  %v2012_v1 = vld [vmem:[%s7311_s14] sm:$0x3] }
 0x725   : > { %v2476_v40 = vpop.f32.mrb[48].mxu0  ;;  %2588 = vadd.xlane.f32.xlu1 %v2587_v31  ;;  %1991 = vmatprep.mubr.bf16.mxu1 %v7401_v53 }
 0x726   : > { %v6014_v13 = vadd.f32 %v2476_v40, %v7440_v38  ;;  %v2478_v37 = vpop.f32.mrb[49].mxu0 }
 0x727   : > { %v6017_v12 = vadd.f32 %v2478_v37, %v7440_v38  ;;  %v2480_v3 = vpop.f32.mrb[50].mxu0 }
 0x728   : > { %7441 = vst [vmem:[#allocation8_spill] sm:$0xff] %v6014_v13  ;;  %v6020_v8 = vadd.f32 %v2480_v3, %v7443_v34  ;;  %v2482_v45 = vpop.f32.mrb[51].mxu0 }
 0x729   : > { %7442 = vst [vmem:[#allocation42_spill] sm:$0xff] %v6017_v12  ;;  %v6023_v5 = vadd.f32 %v2482_v45, %v7443_v34  ;;  %v2590_v27 = vadd.f32 %v6017_v12, %v6014_v13  ;;  %v7452_v45 = vld [vmem:[#allocation12_spill] sm:$0xff] }
 0x72a   : > { %7444 = vst [vmem:[#allocation9_spill] sm:$0xff] %v6020_v8 }
 0x72b   : > { %7445 = vst [vmem:[#allocation43_spill] sm:$0xff] %v6023_v5  ;;  %v2593_v63 = vadd.f32 %v6023_v5, %v6020_v8  ;;  %2591 = vadd.xlane.f32.xlu0 %v2590_v27 }
 0x72c   : > { %1992 = vmatmul.mubr.bf16.gmra.mrb[40].mxu1 %v4746_v52 }
 0x72d   : > { %v2486_v17 = vpop.f32.mrb[52].mxu0  ;;  %2594 = vadd.xlane.f32.xlu1 %v2593_v63  ;;  %2001 = vmatprep.mubr.bf16.mxu1 %v7401_v53 }
 0x72e   : > { %v6030_v10 = vadd.f32 %v2486_v17, %v7446_v57  ;;  %v2488_v2 = vpop.f32.mrb[53].mxu0 }
 0x72f   : > { %v6033_v19 = vadd.f32 %v2488_v2, %v7446_v57  ;;  %v2490_v24 = vpop.f32.mrb[54].mxu0 }
 0x730   : > { %7447 = vst [vmem:[#allocation10_spill] sm:$0xff] %v6030_v10  ;;  %v6036_v58 = vadd.f32 %v2490_v24, %v7449_v49  ;;  %v2492_v35 = vpop.f32.mrb[55].mxu0  ;;  %v7455_v24 = vld [vmem:[#allocation13_spill] sm:$0xff] }
 0x731   : > { %7448 = vst [vmem:[#allocation44_spill] sm:$0xff] %v6033_v19  ;;  %v6039_v31 = vadd.f32 %v2492_v35, %v7449_v49  ;;  %v2596_v40 = vadd.f32 %v6033_v19, %v6030_v10 }
 0x732   : > { %7450 = vst [vmem:[#allocation11_spill] sm:$0xff] %v6036_v58 }
 0x733   : > { %7451 = vst [vmem:[#allocation45_spill] sm:$0xff] %v6039_v31  ;;  %v2599_v37 = vadd.f32 %v6039_v31, %v6036_v58  ;;  %2597 = vadd.xlane.f32.xlu0 %v2596_v40 }
 0x734   : > { %2002 = vmatmul.mubr.bf16.gmra.mrb[44].mxu1 %v4747_v61  ;;  %v4476_v61 = vld [vmem:[%s7305_s8 + $0x80] sm:$0xff] }
 0x735   : > { %v2496_v3 = vpop.f32.mrb[56].mxu0  ;;  %2600 = vadd.xlane.f32.xlu1 %v2599_v37  ;;  %2045 = vmatprep.mubr.bf16.mxu1 %v7401_v53 }
 0x736   : > { %v6046_v27 = vadd.f32 %v2496_v3, %v7452_v45  ;;  %v2498_v63 = vpop.f32.mrb[57].mxu0 }
 0x737   : > { %v6049_v17 = vadd.f32 %v2498_v63, %v7452_v45  ;;  %v2500_v2 = vpop.f32.mrb[58].mxu0 }
 0x738   : > { %7453 = vst [vmem:[#allocation12_spill] sm:$0xff] %v6046_v27  ;;  %v6052_v35 = vadd.f32 %v2500_v2, %v7455_v24  ;;  %v2502_v16 = vpop.f32.mrb[59].mxu0 }
 0x739   : > { %7454 = vst [vmem:[#allocation46_spill] sm:$0xff] %v6049_v17  ;;  %v6055_v60 = vadd.f32 %v2502_v16, %v7455_v24  ;;  %v2602_v40 = vadd.f32 %v6049_v17, %v6046_v27 }
 0x73a   : > { %7456 = vst [vmem:[#allocation47_spill] sm:$0xff] %v6052_v35 }
 0x73b   : > { %7457 = vst [vmem:[#allocation48_spill] sm:$0xff] %v6055_v60  ;;  %v2605_v37 = vadd.f32 %v6055_v60, %v6052_v35  ;;  %2603 = vadd.xlane.f32.xlu0 %v2602_v40 }
 0x73c   : > { %2046 = vmatmul.mubr.bf16.vlgmr.msra.gmra.mrb[48].mxu1 %v2012_v1  ;;  %v4478_v1 = vld [vmem:[%s7305_s8 + $0x90] sm:$0xff] }
 0x73d   : > { %v2506_v3 = vpop.f32.mrb[60].mxu0  ;;  %2606 = vadd.xlane.f32.xlu1 %v2605_v37  ;;  %2176 = vmatprep.mubr.bf16.mxu1 %v7401_v53 }
 0x73e   : > { %v6062_v63 = vadd.f32 %v2506_v3, %v7458_v26  ;;  %v2508_v4 = vpop.f32.mrb[61].mxu0 }
 0x73f   : > { %v6065_v2 = vadd.f32 %v2508_v4, %v7458_v26  ;;  %v2510_v7 = vpop.f32.mrb[62].mxu0 }
 0x740   : > { %7459 = vst [vmem:[#allocation14_spill] sm:$0xff] %v6062_v63  ;;  %v6068_v16 = vadd.f32 %v2510_v7, %v7461_v23  ;;  %v2512_v39 = vpop.f32.mrb[63].mxu0 }
 0x741   : > { %7460 = vst [vmem:[#allocation49_spill] sm:$0xff] %v6065_v2  ;;  %v6071_v62 = vadd.f32 %v2512_v39, %v7461_v23  ;;  %v2608_v40 = vadd.f32 %v6065_v2, %v6062_v63 }
 0x742   : > { %7462 = vst [vmem:[#allocation50_spill] sm:$0xff] %v6068_v16 }
 0x743   : > { %7463 = vst [vmem:[#allocation51_spill] sm:$0xff] %v6071_v62  ;;  %v2611_v37 = vadd.f32 %v6071_v62, %v6068_v16  ;;  %2609 = vadd.xlane.f32.xlu0 %v2608_v40 }
 0x745   : > { %v6077_v3 = vpop.f32.mrb[64].mxu0  ;;  %2612 = vadd.xlane.f32.xlu1 %v2611_v37 }
 0x746   : > { %v6079_v4 = vpop.f32.mrb[65].mxu0 }
 0x747   : > { %v6081_v48 = vpop.f32.mrb[66].mxu0 }
 0x748   : > { %v6083_v7 = vpop.f32.mrb[67].mxu0 }
 0x74d   : > { %v6085_v0 = vpop.f32.mrb[68].mxu0 }
 0x74e   : > { %v6087_v39 = vpop.f32.mrb[69].mxu0 }
 0x74f   : > { %v6089_v21 = vpop.f32.mrb[70].mxu0 }
 0x750   : > { %v6091_v43 = vpop.f32.mrb[71].mxu0 }
 0x755   : > { %v6093_v59 = vpop.f32.mrb[72].mxu0 }
 0x756   : > { %v6095_v40 = vpop.f32.mrb[73].mxu0 }
 0x757   : > { %v6097_v54 = vpop.f32.mrb[74].mxu0 }
 0x758   : > { %v6099_v37 = vpop.f32.mrb[75].mxu0 }
 0x75d   : > { %v6101_v9 = vpop.f32.mrb[76].mxu0 }
 0x75e   : > { %v6103_v11 = vpop.f32.mrb[77].mxu0 }
 0x75f   : > { %v6105_v2 = vpop.f32.mrb[78].mxu0 }
 0x760   : > { %v6107_v63 = vpop.f32.mrb[79].mxu0 }
 0x765   : > { %v6109_v62 = vpop.f32.mrb[80].mxu0 }
 0x766   : > { %v6111_v16 = vpop.f32.mrb[81].mxu0 }
 0x767   : > { %v6113_v17 = vpop.f32.mrb[82].mxu0 }
 0x768   : > { %v6115_v27 = vpop.f32.mrb[83].mxu0 }
 0x76d   : > { %v6117_v60 = vpop.f32.mrb[84].mxu0 }
 0x76e   : > { %v6119_v35 = vpop.f32.mrb[85].mxu0 }
 0x76f   : > { %v6121_v19 = vpop.f32.mrb[86].mxu0 }
 0x770   : > { %v6123_v10 = vpop.f32.mrb[87].mxu0 }
 0x775   : > { %v6125_v31 = vpop.f32.mrb[88].mxu0 }
 0x776   : > { %v6127_v58 = vpop.f32.mrb[89].mxu0 }
 0x777   : > { %v6129_v12 = vpop.f32.mrb[90].mxu0 }
 0x778   : > { %7464 = vst [vmem:[#allocation52_spill] sm:$0xff] %v6129_v12  ;;  %v6131_v13 = vpop.f32.mrb[91].mxu0 }
 0x779   : > { %7465 = vst [vmem:[#allocation53_spill] sm:$0xff] %v6131_v13 }
 0x77d   : > { %v6133_v5 = vpop.f32.mrb[92].mxu0 }
 0x77e   : > { %v6135_v8 = vpop.f32.mrb[93].mxu0 }
 0x77f   : > { %7466 = vst [vmem:[#allocation54_spill] sm:$0xff] %v6135_v8  ;;  %v6137_v32 = vpop.f32.mrb[94].mxu0 }
 0x780   : > { %7467 = vst [vmem:[#allocation55_spill] sm:$0xff] %v6137_v32  ;;  %v6139_v25 = vpop.f32.mrb[95].mxu0  ;;  %v4480_v32 = vld [vmem:[%s7305_s8 + $0xa0] sm:$0xff] }
 0x781   : > { %7468 = vst [vmem:[#allocation56_spill] sm:$0xff] %v6139_v25  ;;  %v4479_v25 = vld [vmem:[%s7305_s8 + $0x98] sm:$0xff] }
 0x798   : > { %v2568_v20 = vpop.xlane.xlu1 %2567 }
 0x799   : > { %v2614_v41 = vmul.f32 0.00390625, %v2568_v20 }
 0x79a   : > { %v2571_v29 = vpop.xlane.xlu0 %2570 }
 0x79b   : > { %v2615_v52 = vmul.f32 0.00390625, %v2571_v29  ;;  %v2630_v55 = vmul.f32 %v4476_v61, %v2614_v41 }
 0x79d   : > { %v2631_v14 = vmul.f32 %v4477_v33, %v2615_v52 }
 0x79f   : > { %v2646_v20 = vadd.f32 %v2631_v14, %v2630_v55 }
 0x7a0   : > { %v2574_v22 = vpop.xlane.xlu0 %2573 }
 0x7a1   : > { %v2616_v28 = vmul.f32 0.00390625, %v2574_v22 }
 0x7a2   : > { %v2577_v51 = vpop.xlane.xlu1 %2576 }
 0x7a3   : > { %v2632_v50 = vmul.f32 %v4478_v1, %v2616_v28  ;;  %v2617_v29 = vmul.f32 0.00390625, %v2577_v51  ;;  %v4481_v51 = vld [vmem:[%s7305_s8 + $0xa8] sm:$0xff] }
 0x7a5   : > { %v2647_v13 = vadd.f32 %v2646_v20, %v2632_v50  ;;  %v2633_v12 = vmul.f32 %v4479_v25, %v2617_v29 }
 0x7a7   : > { %v2648_v28 = vadd.f32 %v2647_v13, %v2633_v12  ;;  %v4484_v13 = vld [vmem:[%s7305_s8 + $0xc0] sm:$0xff] }
 0x7a8   : > { %v2580_v15 = vpop.xlane.xlu0 %2579 }
 0x7a9   : > { %v2618_v22 = vmul.f32 0.00390625, %v2580_v15  ;;  %v4482_v15 = vld [vmem:[%s7305_s8 + $0xb0] sm:$0xff] }
 0x7aa   : > { %v2583_v23 = vpop.xlane.xlu1 %2582 }
 0x7ab   : > { %v2634_v8 = vmul.f32 %v4480_v32, %v2618_v22  ;;  %v2619_v33 = vmul.f32 0.00390625, %v2583_v23  ;;  %v4483_v23 = vld [vmem:[%s7305_s8 + $0xb8] sm:$0xff] }
 0x7ad   : > { %v2649_v55 = vadd.f32 %v2648_v28, %v2634_v8  ;;  %v2635_v52 = vmul.f32 %v4481_v51, %v2619_v33  ;;  %v4485_v8 = vld [vmem:[%s7305_s8 + $0xc8] sm:$0xff] }
 0x7af   : > { %v2650_v25 = vadd.f32 %v2649_v55, %v2635_v52 }
 0x7b0   : > { %v2586_v24 = vpop.xlane.xlu0 %2585 }
 0x7b1   : > { %v2620_v41 = vmul.f32 0.00390625, %v2586_v24 }
 0x7b2   : > { %v2589_v14 = vpop.xlane.xlu1 %2588 }
 0x7b3   : > { %v2636_v1 = vmul.f32 %v4482_v15, %v2620_v41  ;;  %v2621_v50 = vmul.f32 0.00390625, %v2589_v14  ;;  %v4486_v41 = vld [vmem:[%s7305_s8 + $0xd0] sm:$0xff] }
 0x7b5   : > { %v2651_v24 = vadd.f32 %v2650_v25, %v2636_v1  ;;  %v2637_v29 = vmul.f32 %v4483_v23, %v2621_v50  ;;  %v4487_v1 = vld [vmem:[%s7305_s8 + $0xd8] sm:$0xff]  ;;  %v4488_v23 = vld [vmem:[%s7305_s8 + $0xe0] sm:$0xff] }
 0x7b7   : > { %v2652_v51 = vadd.f32 %v2651_v24, %v2637_v29 }
 0x7b8   : > { %v2592_v61 = vpop.xlane.xlu0 %2591 }
 0x7b9   : > { %v2622_v32 = vmul.f32 0.00390625, %v2592_v61 }
 0x7ba   : > { %v2595_v12 = vpop.xlane.xlu1 %2594 }
 0x7bb   : > { %v2638_v20 = vmul.f32 %v4484_v13, %v2622_v32  ;;  %v2623_v22 = vmul.f32 0.00390625, %v2595_v12 }
 0x7bd   : > { %v2653_v14 = vadd.f32 %v2652_v51, %v2638_v20  ;;  %v2639_v55 = vmul.f32 %v4485_v8, %v2623_v22  ;;  %v4489_v20 = vld [vmem:[%s7305_s8 + $0xe8] sm:$0xff] }
 0x7bf   : > { %v2654_v50 = vadd.f32 %v2653_v14, %v2639_v55  ;;  %v4491_v14 = vld [vmem:[%s7305_s8 + $0xf8] sm:$0xff] }
 0x7c0   : > { %v2598_v33 = vpop.xlane.xlu0 %2597 }
 0x7c1   : > { %v2624_v28 = vmul.f32 0.00390625, %v2598_v33 }
 0x7c2   : > { %v2601_v15 = vpop.xlane.xlu1 %2600 }
 0x7c3   : > { %v2640_v52 = vmul.f32 %v4486_v41, %v2624_v28  ;;  %v2625_v61 = vmul.f32 0.00390625, %v2601_v15  ;;  %v4490_v28 = vld [vmem:[%s7305_s8 + $0xf0] sm:$0xff] }
 0x7c5   : > { %v2655_v32 = vadd.f32 %v2654_v50, %v2640_v52  ;;  %v2641_v13 = vmul.f32 %v4487_v1, %v2625_v61 }
 0x7c7   : > { %v2656_v22 = vadd.f32 %v2655_v32, %v2641_v13 }
 0x7c8   : > { %v2604_v25 = vpop.xlane.xlu0 %2603 }
 0x7c9   : > { %v2626_v12 = vmul.f32 0.00390625, %v2604_v25 }
 0x7ca   : > { %v2607_v24 = vpop.xlane.xlu1 %2606 }
 0x7cb   : > { %v2642_v29 = vmul.f32 %v4488_v23, %v2626_v12  ;;  %v2627_v33 = vmul.f32 0.00390625, %v2607_v24 }
 0x7cd   : > { %v2657_v8 = vadd.f32 %v2656_v22, %v2642_v29  ;;  %v2643_v51 = vmul.f32 %v4489_v20, %v2627_v33  ;;  %v2532_v33 = vld [vmem:[%s7306_s9] sm:$0x1] }
 0x7cf   : > { %v2658_v52 = vadd.f32 %v2657_v8, %v2643_v51  ;;  %v4493_v8 = vld [vmem:[%s7307_s10 + $0x88] sm:$0xff]  ;;  %v4492_v51 = vld [vmem:[%s7307_s10 + $0x80] sm:$0xff] }
 0x7d0   : > { %v2610_v41 = vpop.xlane.xlu0 %2609 }
 0x7d1   : > { %v2628_v15 = vmul.f32 0.00390625, %v2610_v41 }
 0x7d2   : > { %v2613_v55 = vpop.xlane.xlu1 %2612 }
 0x7d3   : > { %v2644_v61 = vmul.f32 %v4490_v28, %v2628_v15  ;;  %v2629_v1 = vmul.f32 0.00390625, %v2613_v55  ;;  %v4495_v55 = vld [vmem:[%s7307_s10 + $0x98] sm:$0xff] }
 0x7d5   : > { %v2659_v50 = vadd.f32 %v2658_v52, %v2644_v61  ;;  %v2645_v23 = vmul.f32 %v4491_v14, %v2629_v1  ;;  %v4494_v52 = vld [vmem:[%s7307_s10 + $0x90] sm:$0xff] }
 0x7d7   : > { %v2660_v25 = vadd.f32 %v2659_v50, %v2645_v23  ;;  %v4497_v50 = vld [vmem:[%s7307_s10 + $0xa8] sm:$0xff]  ;;  %v4496_v23 = vld [vmem:[%s7307_s10 + $0xa0] sm:$0xff] }
 0x7d9   : > { %v2661_v32 = vrot.slane %v2660_v25, 4 }
 0x7db   : > { %v2662_v13 = vadd.f32 %v2661_v32, %v2660_v25 }
 0x7dd   : > { %v2663_v12 = vrot.slane %v2662_v13, 2 }
 0x7df   : > { %v2664_v24 = vadd.f32 %v2663_v12, %v2662_v13  ;;  %v4499_v13 = vld [vmem:[%s7307_s10 + $0xb8] sm:$0xff]  ;;  %v4498_v12 = vld [vmem:[%s7307_s10 + $0xb0] sm:$0xff] }
 0x7e1   : > { %v2665_v29 = vrot.slane %v2664_v24, 1 }
 0x7e3   : > { %v2666_v20 = vadd.f32 %v2665_v29, %v2664_v24 }
 0x7e5   : > { %v2667_v22 = vadd.f32 %v2666_v20, %v2532_v33  ;;  %v4501_v33 = vld [vmem:[%s7307_s10 + $0xc8] sm:$0xff]  ;;  %v4500_v20 = vld [vmem:[%s7307_s10 + $0xc0] sm:$0xff] }
 0x7e7   : > { %v2668_v41 = vmax.f32 %v2667_v22, 0.0 }
 0x7e9   : > { %v2672_v28 = vrot.slane %v2668_v41, %v5224_v42 }
 0x7eb   : > { %v2674_v15 = vmul.f32 %v4493_v8, %v2672_v28  ;;  %v2673_v14 = vmul.f32 %v4492_v51, %v2672_v28  ;;  %v2676_v61 = vmul.f32 %v4495_v55, %v2672_v28  ;;  %v2675_v1 = vmul.f32 %v4494_v52, %v2672_v28  ;;  %v4503_v8 = vld [vmem:[%s7307_s10 + $0xd8] sm:$0xff]  ;;  %v4502_v51 = vld [vmem:[%s7307_s10 + $0xd0] sm:$0xff]  ;;  %v4505_v55 = vld [vmem:[%s7307_s10 + $0xe8] sm:$0xff] }
 0x7ec   : > { %v2678_v25 = vmul.f32 %v4497_v50, %v2672_v28  ;;  %v2677_v32 = vmul.f32 %v4496_v23, %v2672_v28  ;;  %v2680_v24 = vmul.f32 %v4499_v13, %v2672_v28  ;;  %v2679_v29 = vmul.f32 %v4498_v12, %v2672_v28  ;;  %v4504_v52 = vld [vmem:[%s7307_s10 + $0xe0] sm:$0xff]  ;;  %v4507_v50 = vld [vmem:[%s7307_s10 + $0xf8] sm:$0xff]  ;;  %v4506_v23 = vld [vmem:[%s7307_s10 + $0xf0] sm:$0xff]  ;;  %v6257_v13 = vpop.f32.mrb[32].mxu1 }
 0x7ed   : > { %2691 = vadd.xlane.f32.xlu1 %v2674_v15  ;;  %2689 = vadd.xlane.f32.xlu0 %v2673_v14  ;;  %v2682_v22 = vmul.f32 %v4501_v33, %v2672_v28  ;;  %v2681_v41 = vmul.f32 %v4500_v20, %v2672_v28  ;;  %v2684_v15 = vmul.f32 %v4503_v8, %v2672_v28  ;;  %v6259_v12 = vpop.f32.mrb[33].mxu1 }
 0x7ee   : > { %v2683_v14 = vmul.f32 %v4502_v51, %v2672_v28  ;;  %7469 = vst [vmem:[#allocation57_spill] sm:$0xff] %v6257_v13  ;;  %7470 = vst [vmem:[#allocation58_spill] sm:$0xff] %v6259_v12 }
 0x7f1   : > { %2695 = vadd.xlane.f32.xlu1 %v2676_v61  ;;  %2693 = vadd.xlane.f32.xlu0 %v2675_v1  ;;  %v2686_v61 = vmul.f32 %v4505_v55, %v2672_v28  ;;  %v2685_v1 = vmul.f32 %v4504_v52, %v2672_v28 }
 0x7f5   : > { %2699 = vadd.xlane.f32.xlu1 %v2678_v25  ;;  %2697 = vadd.xlane.f32.xlu0 %v2677_v32  ;;  %v2688_v25 = vmul.f32 %v4507_v50, %v2672_v28  ;;  %v2687_v32 = vmul.f32 %v4506_v23, %v2672_v28 }
 0x7f9   : > { %2703 = vadd.xlane.f32.xlu1 %v2680_v24  ;;  %2701 = vadd.xlane.f32.xlu0 %v2679_v29  ;;  %v6261_v24 = vpop.f32.mrb[34].mxu1 }
 0x7fa   : > { %7471 = vst [vmem:[#allocation59_spill] sm:$0xff] %v6261_v24  ;;  %v6263_v29 = vpop.f32.mrb[35].mxu1 }
 0x7fb   : > { %7472 = vst [vmem:[#allocation60_spill] sm:$0xff] %v6263_v29  ;;  %v6265_v33 = vpop.f32.mrb[36].mxu1 }
 0x7fc   : > { %7473 = vst [vmem:[#allocation61_spill] sm:$0xff] %v6265_v33  ;;  %v6267_v20 = vpop.f32.mrb[37].mxu1 }
 0x7fd   : > { %2707 = vadd.xlane.f32.xlu1 %v2682_v22  ;;  %2705 = vadd.xlane.f32.xlu0 %v2681_v41  ;;  %7474 = vst [vmem:[#allocation62_spill] sm:$0xff] %v6267_v20  ;;  %v6269_v22 = vpop.f32.mrb[38].mxu1 }
 0x7fe   : > { %7475 = vst [vmem:[#allocation63_spill] sm:$0xff] %v6269_v22  ;;  %v6271_v41 = vpop.f32.mrb[39].mxu1 }
 0x7ff   : > { %7476 = vst [vmem:[#allocation64_spill] sm:$0xff] %v6271_v41  ;;  %v6273_v8 = vpop.f32.mrb[40].mxu1  ;;  %v2561_v41 = vld [vmem:[%s7308_s11 + $0x58] sm:$0xff] }
 0x800   : > { %7477 = vst [vmem:[#allocation65_spill] sm:$0xff] %v6273_v8  ;;  %v6275_v28 = vpop.f32.mrb[41].mxu1 }
 0x801   : > { %2711 = vadd.xlane.f32.xlu1 %v2684_v15  ;;  %2709 = vadd.xlane.f32.xlu0 %v2683_v14  ;;  %7478 = vst [vmem:[#allocation66_spill] sm:$0xff] %v6275_v28  ;;  %v6277_v51 = vpop.f32.mrb[42].mxu1  ;;  %v2551_v28 = vld [vmem:[%s7308_s11 + $0x8] sm:$0xff] }
 0x802   : > { %7479 = vst [vmem:[#allocation67_spill] sm:$0xff] %v6277_v51  ;;  %v6279_v15 = vpop.f32.mrb[43].mxu1 }
 0x803   : > { %7480 = vst [vmem:[#allocation68_spill] sm:$0xff] %v6279_v15  ;;  %v2553_v15 = vld [vmem:[%s7308_s11 + $0x18] sm:$0xff] }
 0x805   : > { %2715 = vadd.xlane.f32.xlu1 %v2686_v61  ;;  %2713 = vadd.xlane.f32.xlu0 %v2685_v1 }
 0x807   : > { %v6281_v14 = vpop.f32.mrb[44].mxu1 }
 0x808   : > { %7481 = vst [vmem:[#allocation69_spill] sm:$0xff] %v6281_v14  ;;  %v6283_v55 = vpop.f32.mrb[45].mxu1  ;;  %v2550_v14 = vld [vmem:[%s7308_s11] sm:$0xff] }
 0x809   : > { %2719 = vadd.xlane.f32.xlu1 %v2688_v25  ;;  %2717 = vadd.xlane.f32.xlu0 %v2687_v32  ;;  %7482 = vst [vmem:[#allocation70_spill] sm:$0xff] %v6283_v55  ;;  %v6285_v52 = vpop.f32.mrb[46].mxu1 }
 0x80a   : > { %7483 = vst [vmem:[#allocation71_spill] sm:$0xff] %v6285_v52  ;;  %v6287_v61 = vpop.f32.mrb[47].mxu1 }
 0x80b   : > { %7484 = vst [vmem:[#allocation72_spill] sm:$0xff] %v6287_v61 }
 0x80f   : > { %v2047_v1 = vpop.f32.mrb[48].mxu1 }
 0x810   : > { %v2070_v50 = vpack.c.bf16 %v2047_v1, %v2047_v1  ;;  %v2049_v23 = vpop.f32.mrb[49].mxu1  ;;  %v4748_v1 = vld [vmem:[%s7312_s15] sm:$0xff]  }
 0x811   : > { %v2071_v25 = vpack.c.bf16 %v2049_v23, %v2049_v23  ;;  %v2051_v32 = vpop.f32.mrb[50].mxu1 }
 0x812   : > { %v2139_v55 = vsel %vm2137_vm2, %v2070_v50, 0  ;;  %v2052_v8 = vpop.f32.mrb[51].mxu1 }
 0x813   : > { %4435 = vmatprep.subr.msk.bf16.mxu1 %vm2137_vm2, %v2071_v25  ;;  %v2552_v8 = vld [vmem:[%s7308_s11 + $0x10] sm:$0xff] }
 0x814   : > { %2145 = vmatpush1.bf16.msra.mxu1 %v2139_v55 }
 0x817   : > { %4436 = vmatmul.mubr.msk.bf16.vlgmr.msra.gmra.mrb[52].mxu1 %vm2112_vm3, %v4748_v1  ;;  %v4749_v1 = vld [vmem:[%s7312_s15 + $0x8] sm:$0xff]  }
 0x818   : > { %2186 = vmatprep.mubr.bf16.mxu1 %v7401_v53 }
 0x81f   : > { %4437 = vmatmul.mubr.msk.bf16.gmra.mrb[56].mxu1 %vm2112_vm3, %v4749_v1  ;;  %v4750_v1 = vld [vmem:[%s7312_s15 + $0x10] sm:$0xff]  }
 0x820   : > { %2196 = vmatprep.mubr.bf16.mxu1 %v7401_v53 }
 0x827   : > { %4438 = vmatmul.mubr.msk.bf16.gmra.mrb[60].mxu1 %vm2112_vm3, %v4750_v1  ;;  %v2562_v1 = vld [vmem:[%s7308_s11 + $0x60] sm:$0xff] }
 0x828   : > { %2206 = vmatprep.mubr.bf16.mxu1 %v7401_v53 }
 0x87a   : > { %v2692_v61 = vpop.xlane.xlu1 %2691  ;;  %v2690_v23 = vpop.xlane.xlu0 %2689 }
 0x87b   : > { %v2722_v32 = vadd.f32 %v2692_v61, %v2551_v28  ;;  %v2721_v52 = vadd.f32 %v2690_v23, %v2550_v14  ;;  %v2555_v14 = vld [vmem:[%s7308_s11 + $0x28] sm:$0xff]  ;;  %v2554_v61 = vld [vmem:[%s7308_s11 + $0x20] sm:$0xff] }
 0x87d   : > { %v4509_v50 = vmul.f32 -1.442695, %v2722_v32  ;;  %v4508_v25 = vmul.f32 -1.442695, %v2721_v52 }
 0x87e   : > { %v2696_v51 = vpop.xlane.xlu1 %2695  ;;  %v2694_v20 = vpop.xlane.xlu0 %2693 }
 0x87f   : > { %4868 = vpow2.f32 %v4509_v50  ;;  %v2724_v55 = vadd.f32 %v2696_v51, %v2553_v15  ;;  %v2723_v28 = vadd.f32 %v2694_v20, %v2552_v8  ;;  %v2557_v15 = vld [vmem:[%s7308_s11 + $0x38] sm:$0xff]  ;;  %v2556_v8 = vld [vmem:[%s7308_s11 + $0x30] sm:$0xff] }
 0x880   : > { %4870 = vpow2.f32 %v4508_v25 }
 0x881   : > { %v4511_v23 = vmul.f32 -1.442695, %v2724_v55  ;;  %v4510_v52 = vmul.f32 -1.442695, %v2723_v28 }
 0x882   : > { %v2700_v32 = vpop.xlane.xlu1 %2699  ;;  %v2698_v33 = vpop.xlane.xlu0 %2697 }
 0x883   : > { %4872 = vpow2.f32 %v4511_v23  ;;  %v2726_v51 = vadd.f32 %v2700_v32, %v2555_v14  ;;  %v2725_v20 = vadd.f32 %v2698_v33, %v2554_v61  ;;  %v2559_v61 = vld [vmem:[%s7308_s11 + $0x48] sm:$0xff]  ;;  %v2558_v23 = vld [vmem:[%s7308_s11 + $0x40] sm:$0xff] }
 0x884   : > { %4874 = vpow2.f32 %v4510_v52 }
 0x885   : > { %v4513_v50 = vmul.f32 -1.442695, %v2726_v51  ;;  %v4512_v25 = vmul.f32 -1.442695, %v2725_v20 }
 0x886   : > { %v2704_v55 = vpop.xlane.xlu1 %2703  ;;  %v2702_v28 = vpop.xlane.xlu0 %2701 }
 0x887   : > { %4876 = vpow2.f32 %v4513_v50  ;;  %v2728_v14 = vadd.f32 %v2704_v55, %v2557_v15  ;;  %v2727_v33 = vadd.f32 %v2702_v28, %v2556_v8 }
 0x888   : > { %4878 = vpow2.f32 %v4512_v25 }
 0x889   : > { %v4869_v52 = vpop.eup %4868  ;;  %v4515_v32 = vmul.f32 -1.442695, %v2728_v14  ;;  %v4514_v50 = vmul.f32 -1.442695, %v2727_v33  ;;  %v2560_v14 = vld [vmem:[%s7308_s11 + $0x50] sm:$0xff] }
 0x88a   : > { %v4871_v51 = vpop.eup %4870  ;;  %v2786_v20 = vadd.f32 1.0, %v4869_v52  ;;  %v2708_v15 = vpop.xlane.xlu1 %2707 }
 0x88b   : > { %v2706_v8 = vpop.xlane.xlu0 %2705  ;;  %v2785_v25 = vadd.f32 1.0, %v4871_v51  ;;  %4880 = vpow2.f32 %v4515_v32  ;;  %v2730_v55 = vadd.f32 %v2708_v15, %v2559_v61 }
 0x88c   : > { %v2729_v28 = vadd.f32 %v2706_v8, %v2558_v23  ;;  %4882 = vrcp.f32 %v2786_v20  ;;  %v2563_v8 = vld [vmem:[%s7308_s11 + $0x68] sm:$0xff] }
 0x88d   : > { %v4873_v22 = vpop.eup %4872  ;;  %4884 = vrcp.f32 %v2785_v25  ;;  %v4517_v12 = vmul.f32 -1.442695, %v2730_v55  ;;  %v4751_v25 = vld [vmem:[%s7312_s15 + $0x18] sm:$0xff]  }
 0x88e   : > { %v4875_v33 = vpop.eup %4874  ;;  %v2788_v52 = vadd.f32 1.0, %v4873_v22  ;;  %4886 = vpow2.f32 %v4514_v50  ;;  %v4516_v32 = vmul.f32 -1.442695, %v2729_v28  ;;  %v2712_v61 = vpop.xlane.xlu1 %2711  ;;  %4439 = vmatmul.mubr.msk.bf16.gmra.mrb[64].mxu1 %vm2112_vm3, %v4751_v25 }
 0x88f   : > { %v2710_v23 = vpop.xlane.xlu0 %2709  ;;  %v2787_v51 = vadd.f32 1.0, %v4875_v33  ;;  %4888 = vpow2.f32 %v4517_v12  ;;  %v2732_v20 = vadd.f32 %v2712_v61, %v2561_v41  ;;  %2216 = vmatprep.mubr.bf16.mxu1 %v7401_v53 }
 0x890   : > { %v2731_v15 = vadd.f32 %v2710_v23, %v2560_v14  ;;  %4890 = vrcp.f32 %v2788_v52  ;;  %v2565_v23 = vld [vmem:[%s7308_s11 + $0x78] sm:$0xff] }
 0x891   : > { %v4877_v22 = vpop.eup %4876  ;;  %4892 = vrcp.f32 %v2787_v51  ;;  %v4519_v50 = vmul.f32 -1.442695, %v2732_v20  ;;  %v2564_v51 = vld [vmem:[%s7308_s11 + $0x70] sm:$0xff] }
 0x892   : > { %v4879_v55 = vpop.eup %4878  ;;  %v2790_v12 = vadd.f32 1.0, %v4877_v22  ;;  %4894 = vpow2.f32 %v4516_v32  ;;  %v4518_v41 = vmul.f32 -1.442695, %v2731_v15  ;;  %v2716_v28 = vpop.xlane.xlu1 %2715 }
 0x893   : > { %v2714_v14 = vpop.xlane.xlu0 %2713  ;;  %v2789_v33 = vadd.f32 1.0, %v4879_v55  ;;  %4896 = vpow2.f32 %v4519_v50  ;;  %v2734_v52 = vadd.f32 %v2716_v28, %v2563_v8 }
 0x894   : > { %v2733_v61 = vadd.f32 %v2714_v14, %v2562_v1  ;;  %4898 = vrcp.f32 %v2790_v12 }
 0x895   : > { %v4881_v20 = vpop.eup %4880  ;;  %4900 = vrcp.f32 %v2789_v33  ;;  %v4521_v22 = vmul.f32 -1.442695, %v2734_v52 }
 0x896   : > { %v4520_v32 = vmul.f32 -1.442695, %v2733_v61  ;;  %v4883_v15 = vpop.eup %4882  ;;  %v2792_v55 = vadd.f32 1.0, %v4881_v20  ;;  %4902 = vpow2.f32 %v4518_v41  ;;  %v2720_v8 = vpop.xlane.xlu1 %2719 }
 0x897   : > { %v2718_v1 = vpop.xlane.xlu0 %2717  ;;  %v4885_v50 = vpop.eup %4884  ;;  %4904 = vpow2.f32 %v4521_v22  ;;  %v2736_v12 = vadd.f32 %v2720_v8, %v2565_v23  ;;  %2840 = vperm.xlu1 %4705, %v4883_v15  }
 0x898   : > { %v2735_v28 = vadd.f32 %v2718_v1, %v2564_v51  ;;  %v4887_v14 = vpop.eup %4886  ;;  %4906 = vrcp.f32 %v2792_v55  ;;  %2835 = vperm.xlu0 %4704, %v4885_v50   ;;  %v4752_v51 = vld [vmem:[%s7312_s15 + $0x20] sm:$0xff]  }
 0x899   : > { %v4889_v33 = vpop.eup %4888  ;;  %v2791_v52 = vadd.f32 1.0, %v4887_v14  ;;  %4908 = vpow2.f32 %v4520_v32  ;;  %v4523_v61 = vmul.f32 -1.442695, %v2736_v12  ;;  %4440 = vmatmul.mubr.msk.bf16.gmra.mrb[68].mxu1 %vm2112_vm3, %v4752_v51 }
 0x89a   : > { %v4891_v25 = vpop.eup %4890  ;;  %v2794_v13 = vadd.f32 1.0, %v4889_v33  ;;  %v4522_v20 = vmul.f32 -1.442695, %v2735_v28  ;;  %2226 = vmatprep.mubr.bf16.mxu1 %v7401_v53  ;;  %v4753_v33 = vld [vmem:[%s7312_s15 + $0x28] sm:$0xff]  }
 0x89b   : > { %v4893_v41 = vpop.eup %4892  ;;  %4910 = vrcp.f32 %v2791_v52 }
 0x89c   : > { %v4895_v29 = vpop.eup %4894  ;;  %4912 = vrcp.f32 %v2794_v13  ;;  %2850 = vperm.xlu0 %4704, %v4891_v25   ;;  %2845 = vperm.xlu1 %4705, %v4893_v41  }
 0x89d   : > { %v4897_v22 = vpop.eup %4896  ;;  %v2793_v23 = vadd.f32 1.0, %v4895_v29  ;;  %4914 = vpow2.f32 %v4523_v61 }
 0x89e   : > { %v4899_v15 = vpop.eup %4898  ;;  %v2796_v55 = vadd.f32 1.0, %v4897_v22  ;;  %4916 = vpow2.f32 %v4522_v20 }
 0x89f   : > { %v4901_v32 = vpop.eup %4900  ;;  %4918 = vrcp.f32 %v2793_v23 }
 0x8a0   : > { %v4903_v8 = vpop.eup %4902  ;;  %4920 = vrcp.f32 %v2796_v55  ;;  %2860 = vperm.xlu0 %4704, %v4899_v15   ;;  %2855 = vperm.xlu1 %4705, %v4901_v32   ;;  %v4754_v15 = vld [vmem:[%s7312_s15 + $0x30] sm:$0xff]  }
 0x8a1   : > { %v4905_v13 = vpop.eup %4904  ;;  %v2795_v1 = vadd.f32 1.0, %v4903_v8  ;;  %4441 = vmatmul.mubr.msk.bf16.gmra.mrb[72].mxu1 %vm2112_vm3, %v4753_v33  ;;  %v6399_v33 = vadd.f32 %v6077_v3, %v5411_v18 }
 0x8a2   : > { %v4907_v29 = vpop.eup %4906  ;;  %v2798_v50 = vadd.f32 1.0, %v4905_v13  ;;  %2236 = vmatprep.mubr.bf16.mxu1 %v7401_v53 }
 0x8a3   : > { %v4909_v12 = vpop.eup %4908  ;;  %4922 = vrcp.f32 %v2795_v1  ;;  %v4755_v1 = vld [vmem:[%s7312_s15 + $0x38] sm:$0xff]  }
 0x8a4   : > { %4924 = vrcp.f32 %v2798_v50  ;;  %v2797_v28 = vadd.f32 1.0, %v4909_v12  ;;  %2870 = vperm.xlu0 %4704, %v4907_v29   ;;  %v6381_v29 = vadd.f32 %v6081_v48, %v5416_v30  ;;  %v6385_v50 = vadd.f32 %v6083_v7, %v5416_v30 }
 0x8a5   : > { %v4911_v14 = vpop.eup %4910  ;;  %v6403_v48 = vadd.f32 %v6079_v4, %v5411_v18  ;;  %v6419_v7 = vadd.f32 %v6089_v21, %v7425_v36  ;;  %v6423_v18 = vadd.f32 %v6091_v43, %v7425_v36  ;;  %v6429_v4 = vadd.f32 %v6101_v9, %v7434_v6 }
 0x8a6   : > { %v4913_v52 = vpop.eup %4912  ;;  %4926 = vrcp.f32 %v2797_v28  ;;  %2865 = vperm.xlu1 %4705, %v4911_v14   ;;  %v3518_v12 = vadd.f32 %v6385_v50, %v6381_v29  ;;  %v6391_v28 = vadd.f32 %v6085_v0, %v7422_v46  ;;  %v6395_v14 = vadd.f32 %v6087_v39, %v7422_v46 }
 0x8a7   : > { %v4915_v61 = vpop.eup %4914  ;;  %v6409_v0 = vadd.f32 %v6093_v59, %v7428_v47  ;;  %v6413_v46 = vadd.f32 %v6095_v40, %v7428_v47  ;;  %v3515_v3 = vadd.f32 %v6403_v48, %v6399_v33  ;;  %v6433_v47 = vadd.f32 %v6103_v11, %v7434_v6 }
 0x8a8   : > { %v4917_v25 = vpop.eup %4916  ;;  %v2800_v20 = vadd.f32 1.0, %v4915_v61  ;;  %2880 = vperm.xlu0 %4704, %v4913_v52   ;;  %v3521_v30 = vadd.f32 %v6395_v14, %v6391_v28  ;;  %v3524_v21 = vadd.f32 %v6423_v18, %v6419_v7  ;;  %v6439_v43 = vadd.f32 %v6097_v54, %v7431_v56  ;;  %v7487_v52 = vld [vmem:[#allocation52_spill] sm:$0xff] }
 0x8a9   : > { %v4919_v41 = vpop.eup %4918  ;;  %v2799_v22 = vadd.f32 1.0, %v4917_v25  ;;  %4442 = vmatmul.mubr.msk.bf16.gmra.mrb[76].mxu1 %vm2112_vm3, %v4754_v15  ;;  %v3527_v59 = vadd.f32 %v6413_v46, %v6409_v0  ;;  %v6443_v36 = vadd.f32 %v6099_v37, %v7431_v56  ;;  %v3533_v9 = vadd.f32 %v6433_v47, %v6429_v4  ;;  %v7486_v37 = vld [vmem:[#allocation13_spill] sm:$0xff]  ;;  %v7489_v25 = vld [vmem:[#allocation15_spill] sm:$0xff] }
 0x8aa   : > { %v4921_v23 = vpop.eup %4920  ;;  %4928 = vrcp.f32 %v2800_v20  ;;  %2875 = vperm.xlu1 %4705, %v4919_v41   ;;  %2246 = vmatprep.mubr.bf16.mxu1 %v7401_v53  ;;  %v6449_v11 = vadd.f32 %v6109_v62, %v7440_v38  ;;  %v6453_v6 = vadd.f32 %v6111_v16, %v7440_v38  ;;  %v6459_v56 = vadd.f32 %v6105_v2, %v7437_v44  ;;  %v7490_v20 = vld [vmem:[#allocation55_spill] sm:$0xff] }
 0x8ab   : > { %4930 = vrcp.f32 %v2799_v22  ;;  %v3530_v54 = vadd.f32 %v6443_v36, %v6439_v43  ;;  %v6463_v39 = vadd.f32 %v6107_v63, %v7437_v44  ;;  %v6469_v38 = vadd.f32 %v6117_v60, %v7446_v57  ;;  %v7491_v22 = vld [vmem:[#allocation56_spill] sm:$0xff] }
 0x8ac   : > { %2890 = vperm.xlu0 %4704, %v4921_v23   ;;  %v3539_v62 = vadd.f32 %v6453_v6, %v6449_v11  ;;  %v6473_v16 = vadd.f32 %v6119_v35, %v7446_v57  ;;  %v6479_v44 = vadd.f32 %v6113_v17, %v7443_v34  ;;  %v6483_v63 = vadd.f32 %v6115_v27, %v7443_v34 }
 0x8ad   : > { %v4923_v51 = vpop.eup %4922  ;;  %v3536_v2 = vadd.f32 %v6463_v39, %v6459_v56  ;;  %v6489_v57 = vadd.f32 %v6125_v31, %v7452_v45  ;;  %v6493_v35 = vadd.f32 %v6127_v58, %v7452_v45  ;;  %v6499_v34 = vadd.f32 %v6121_v19, %v7449_v49  ;;  %v7485_v45 = vld [vmem:[#allocation54_spill] sm:$0xff] }
 0x8ae   : > { %v4925_v55 = vpop.eup %4924  ;;  %2885 = vperm.xlu1 %4705, %v4923_v51   ;;  %v3545_v60 = vadd.f32 %v6473_v16, %v6469_v38  ;;  %v3542_v17 = vadd.f32 %v6483_v63, %v6479_v44  ;;  %v6503_v27 = vadd.f32 %v6123_v10, %v7449_v49  ;;  %v6509_v58 = vadd.f32 %v6133_v5, %v7458_v26  ;;  %v7488_v49 = vld [vmem:[#allocation53_spill] sm:$0xff] }
 0x8af   : > { %v3551_v31 = vadd.f32 %v6493_v35, %v6489_v57  ;;  %v6513_v40 = vadd.f32 %v7485_v45, %v7458_v26  ;;  %v6519_v10 = vadd.f32 %v7487_v52, %v7486_v37  ;;  %v6523_v61 = vadd.f32 %v7488_v49, %v7486_v37  ;;  %v7498_v45 = vld [vmem:[#allocation3_spill] sm:$0xff]  ;;  %v7499_v37 = vld [vmem:[#allocation37_spill] sm:$0xff] }
 0x8b0   : > { %v4927_v32 = vpop.eup %4926  ;;  %2900 = vperm.xlu0 %4704, %v4925_v55   ;;  %v3548_v19 = vadd.f32 %v6503_v27, %v6499_v34  ;;  %v6531_v41 = vadd.f32 %v7490_v20, %v7489_v25  ;;  %v6535_v23 = vadd.f32 %v7491_v22, %v7489_v25  ;;  %v7492_v55 = vld [vmem:[#allocation34_spill] sm:$0xff]  ;;  %v7500_v20 = vld [vmem:[#allocation4_spill] sm:$0xff] }
 0x8b1   : > { %4443 = vmatmul.mubr.msk.bf16.gmra.mrb[80].mxu1 %vm2112_vm3, %v4755_v1  ;;  %v3557_v5 = vadd.f32 %v6513_v40, %v6509_v58  ;;  %v3554_v26 = vadd.f32 %v6523_v61, %v6519_v10 }
 0x8b2   : > { %2895 = vperm.xlu1 %4705, %v4927_v32   ;;  %2995 = vmatprep.mubr.bf16.mxu1 %v7401_v53  ;;  %v3560_v51 = vadd.f32 %v6535_v23, %v6531_v41 }
 0x8b4   : > { %v4929_v8 = vpop.eup %4928 }
 0x8b5   : > { %v4931_v13 = vpop.eup %4930  ;;  %2910 = vperm.xlu0 %4704, %v4929_v8   ;;  %v7493_v8 = vld [vmem:[#allocation35_spill] sm:$0xff] }
 0x8b6   : > { %2905 = vperm.xlu1 %4705, %v4931_v13  }
 0x8d4   : > { %3519 = vadd.xlane.f32.xlu0 %v3518_v12  ;;  %v7494_v12 = vld [vmem:[#allocation32_spill] sm:$0xff] }
 0x8d8   : > { %3522 = vadd.xlane.f32.xlu0 %v3521_v30 }
 0x8da   : > { %3516 = vadd.xlane.f32.xlu1 %v3515_v3  ;;  %v7495_v3 = vld [vmem:[#allocation33_spill] sm:$0xff] }
 0x8dc   : > { %3528 = vadd.xlane.f32.xlu0 %v3527_v59 }
 0x8de   : > { %3525 = vadd.xlane.f32.xlu1 %v3524_v21 }
 0x8e0   : > { %3534 = vadd.xlane.f32.xlu0 %v3533_v9 }
 0x8e2   : > { %3531 = vadd.xlane.f32.xlu1 %v3530_v54 }
 0x8e4   : > { %3540 = vadd.xlane.f32.xlu0 %v3539_v62 }
 0x8e6   : > { %3537 = vadd.xlane.f32.xlu1 %v3536_v2  ;;  %v7496_v2 = vld [vmem:[#allocation2_spill] sm:$0xff] }
 0x8e8   : > { %3546 = vadd.xlane.f32.xlu0 %v3545_v60 }
 0x8ea   : > { %3543 = vadd.xlane.f32.xlu1 %v3542_v17  ;;  %v7497_v17 = vld [vmem:[#allocation36_spill] sm:$0xff] }
 0x8ec   : > { %3552 = vadd.xlane.f32.xlu0 %v3551_v31 }
 0x8ee   : > { %3549 = vadd.xlane.f32.xlu1 %v3548_v19 }
 0x8f0   : > { %3558 = vadd.xlane.f32.xlu0 %v3557_v5 }
 0x8f2   : > { %3555 = vadd.xlane.f32.xlu1 %v3554_v26 }
 0x8f6   : > { %3561 = vadd.xlane.f32.xlu1 %v3560_v51  ;;  %v7501_v51 = vld [vmem:[#allocation38_spill] sm:$0xff] }
 0x916   : > { %v2841_v15 = vpop.permute.xlu1 %2840 }
 0x917   : > { %v2915_v32 = vmul.f32 %v2841_v15, %v7492_v55  ;;  %v2916_v13 = vmul.f32 %v2841_v15, %v7493_v8  ;;  %v2836_v1 = vpop.permute.xlu0 %2835  ;;  %v7502_v55 = vld [vmem:[#allocation5_spill] sm:$0xff]  ;;  %v7503_v8 = vld [vmem:[#allocation39_spill] sm:$0xff] }
 0x918   : > { %v2913_v30 = vmul.f32 %v2836_v1, %v7494_v12  ;;  %v2914_v59 = vmul.f32 %v2836_v1, %v7495_v3  ;;  %v7504_v3 = vld [vmem:[#allocation7_spill] sm:$0xff] }
 0x91a   : > { %v2945_v21 = vpack.c.bf16 %v2915_v32, %v2913_v30  ;;  %v2946_v9 = vpack.c.bf16 %v2916_v13, %v2914_v59 }
 0x91b   : > { %v2846_v54 = vpop.permute.xlu1 %2845  ;;  %v2851_v62 = vpop.permute.xlu0 %2850 }
 0x91c   : > { %v2917_v60 = vmul.f32 %v2846_v54, %v7496_v2  ;;  %v2918_v31 = vmul.f32 %v2846_v54, %v7497_v17  ;;  %v2919_v19 = vmul.f32 %v2851_v62, %v7498_v45  ;;  %v2920_v52 = vmul.f32 %v2851_v62, %v7499_v37  ;;  %2963 = vmatprep.subr.bf16.mxu1 %v2946_v9  ;;  %v7506_v62 = vld [vmem:[#allocation6_spill] sm:$0xff]  ;;  %v7508_v37 = vld [vmem:[#allocation9_spill] sm:$0xff] }
 0x91d   : > { %2964 = vmatpush1.bf16.msra.mxu1 %v2945_v21  ;;  %v7505_v21 = vld [vmem:[#allocation41_spill] sm:$0xff] }
 0x91e   : > { %v2947_v49 = vpack.c.bf16 %v2919_v19, %v2917_v60  ;;  %v2948_v5 = vpack.c.bf16 %v2920_v52, %v2918_v31  ;;  %v7507_v60 = vld [vmem:[#allocation40_spill] sm:$0xff] }
 0x91f   : > { %v2856_v26 = vpop.permute.xlu1 %2855  ;;  %v2861_v25 = vpop.permute.xlu0 %2860 }
 0x920   : > { %v2921_v22 = vmul.f32 %v2856_v26, %v7500_v20  ;;  %v2922_v15 = vmul.f32 %v2856_v26, %v7501_v51  ;;  %v2923_v32 = vmul.f32 %v2861_v25, %v7502_v55  ;;  %v2924_v13 = vmul.f32 %v2861_v25, %v7503_v8  ;;  %2965 = vmatprep.subr.bf16.mxu1 %v2948_v5  ;;  %v7510_v25 = vld [vmem:[#allocation8_spill] sm:$0xff]  ;;  %v7512_v8 = vld [vmem:[#allocation11_spill] sm:$0xff] }
 0x921   : > { %2966 = vmatpush1.bf16.msra.mxu1 %v2947_v49  ;;  %v7509_v49 = vld [vmem:[#allocation43_spill] sm:$0xff] }
 0x922   : > { %v2949_v1 = vpack.c.bf16 %v2923_v32, %v2921_v22  ;;  %v2950_v12 = vpack.c.bf16 %v2924_v13, %v2922_v15  ;;  %v7511_v22 = vld [vmem:[#allocation42_spill] sm:$0xff] }
 0x923   : > { %v2871_v30 = vpop.permute.xlu0 %2870 }
 0x924   : > { %v2927_v59 = vmul.f32 %v2871_v30, %v7504_v3  ;;  %v2928_v9 = vmul.f32 %v2871_v30, %v7505_v21  ;;  %2967 = vmatprep.subr.bf16.mxu1 %v2950_v12  ;;  %v7514_v3 = vld [vmem:[#allocation10_spill] sm:$0xff]  ;;  %v7515_v21 = vld [vmem:[#allocation44_spill] sm:$0xff] }
 0x925   : > { %v2866_v54 = vpop.permute.xlu1 %2865  ;;  %2968 = vmatpush1.bf16.msra.mxu1 %v2949_v1  ;;  %v7513_v1 = vld [vmem:[#allocation45_spill] sm:$0xff] }
 0x926   : > { %v2925_v2 = vmul.f32 %v2866_v54, %v7506_v62  ;;  %v2926_v17 = vmul.f32 %v2866_v54, %v7507_v60  ;;  %v7516_v60 = vld [vmem:[#allocation47_spill] sm:$0xff] }
 0x927   : > { %v2881_v31 = vpop.permute.xlu0 %2880 }
 0x928   : > { %v2951_v45 = vpack.c.bf16 %v2927_v59, %v2925_v2  ;;  %v2952_v19 = vpack.c.bf16 %v2928_v9, %v2926_v17  ;;  %v2931_v52 = vmul.f32 %v2881_v31, %v7508_v37  ;;  %v2932_v5 = vmul.f32 %v2881_v31, %v7509_v49  ;;  %v7517_v31 = vld [vmem:[#allocation48_spill] sm:$0xff]  ;;  %v7519_v49 = vld [vmem:[#allocation46_spill] sm:$0xff] }
 0x929   : > { %v2876_v26 = vpop.permute.xlu1 %2875  ;;  %v7518_v37 = vld [vmem:[#allocation12_spill] sm:$0xff] }
 0x92a   : > { %v2929_v20 = vmul.f32 %v2876_v26, %v7510_v25  ;;  %v2930_v51 = vmul.f32 %v2876_v26, %v7511_v22  ;;  %2969 = vmatprep.subr.bf16.mxu1 %v2952_v19 }
 0x92b   : > { %2970 = vmatpush1.bf16.msra.mxu1 %v2951_v45  ;;  %v2891_v15 = vpop.permute.xlu0 %2890 }
 0x92c   : > { %v2953_v55 = vpack.c.bf16 %v2931_v52, %v2929_v20  ;;  %v2954_v32 = vpack.c.bf16 %v2932_v5, %v2930_v51  ;;  %v2935_v13 = vmul.f32 %v2891_v15, %v7512_v8  ;;  %v2936_v12 = vmul.f32 %v2891_v15, %v7513_v1  ;;  %v7520_v51 = vld [vmem:[#allocation50_spill] sm:$0xff]  ;;  %v7523_v1 = vld [vmem:[#allocation49_spill] sm:$0xff] }
 0x92d   : > { %v2886_v30 = vpop.permute.xlu1 %2885  ;;  %v7522_v8 = vld [vmem:[#allocation14_spill] sm:$0xff] }
 0x92e   : > { %v2933_v59 = vmul.f32 %v2886_v30, %v7514_v3  ;;  %v2934_v9 = vmul.f32 %v2886_v30, %v7515_v21  ;;  %2971 = vmatprep.subr.bf16.mxu1 %v2954_v32  ;;  %v6575_v21 = vpop.f32.mrb[52].mxu1 }
 0x92f   : > { %2972 = vmatpush1.bf16.msra.mxu1 %v2953_v55  ;;  %v2901_v54 = vpop.permute.xlu0 %2900  ;;  %v7521_v55 = vld [vmem:[#allocation51_spill] sm:$0xff] }
 0x930   : > { %v2955_v62 = vpack.c.bf16 %v2935_v13, %v2933_v59  ;;  %v2956_v2 = vpack.c.bf16 %v2936_v12, %v2934_v9  ;;  %v2939_v17 = vmul.f32 %v2901_v54, %v7516_v60  ;;  %v2940_v45 = vmul.f32 %v2901_v54, %v7517_v31  ;;  %v4524_v59 = vld [vmem:[%s7311_s14 + $0x2] sm:$0x3]  ;;  %v6577_v9 = vpop.f32.mrb[53].mxu1 }
 0x931   : > { %v2896_v19 = vpop.permute.xlu1 %2895  ;;  %v6579_v54 = vpop.f32.mrb[54].mxu1 }
 0x932   : > { %v2937_v52 = vmul.f32 %v2896_v19, %v7518_v37  ;;  %v2938_v5 = vmul.f32 %v2896_v19, %v7519_v49  ;;  %2973 = vmatprep.subr.bf16.mxu1 %v2956_v2 }
 0x933   : > { %2974 = vmatpush1.bf16.msra.mxu1 %v2955_v62  ;;  %v6581_v62 = vpop.f32.mrb[55].mxu1 }
 0x934   : > { %v2957_v26 = vpack.c.bf16 %v2939_v17, %v2937_v52  ;;  %v2958_v25 = vpack.c.bf16 %v2940_v45, %v2938_v5  ;;  %v2911_v20 = vpop.permute.xlu0 %2910  ;;  %v6583_v2 = vpop.f32.mrb[56].mxu1 }
 0x935   : > { %v2906_v22 = vpop.permute.xlu1 %2905  ;;  %v2943_v15 = vmul.f32 %v2911_v20, %v7520_v51  ;;  %v2944_v32 = vmul.f32 %v2911_v20, %v7521_v55  ;;  %v6585_v60 = vpop.f32.mrb[57].mxu1  ;;  %v4590_v20 = vld [vmem:[%s7305_s8 + $0x100] sm:$0xff] }
 0x936   : > { %v2941_v13 = vmul.f32 %v2906_v22, %v7522_v8  ;;  %v2942_v12 = vmul.f32 %v2906_v22, %v7523_v1  ;;  %2975 = vmatprep.subr.bf16.mxu1 %v2958_v25  ;;  %v6587_v17 = vpop.f32.mrb[58].mxu1  ;;  %v4591_v25 = vld [vmem:[%s7305_s8 + $0x108] sm:$0xff] }
 0x937   : > { %2976 = vmatpush1.bf16.msra.mxu1 %v2957_v26  ;;  %v6589_v31 = vpop.f32.mrb[59].mxu1 }
 0x938   : > { %v2959_v30 = vpack.c.bf16 %v2943_v15, %v2941_v13  ;;  %v2960_v3 = vpack.c.bf16 %v2944_v32, %v2942_v12  ;;  %v6591_v45 = vpop.f32.mrb[60].mxu1  ;;  %v4592_v32 = vld [vmem:[%s7305_s8 + $0x110] sm:$0xff] }
 0x939   : > { %7524 = vst [vmem:[#allocation54_spill] sm:$0xff] %v6591_v45  ;;  %v6593_v37 = vpop.f32.mrb[61].mxu1 }
 0x93a   : > { %2977 = vmatprep.subr.bf16.mxu1 %v2960_v3  ;;  %7525 = vst [vmem:[#allocation13_spill] sm:$0xff] %v6593_v37  ;;  %v6595_v52 = vpop.f32.mrb[62].mxu1  ;;  %v4593_v3 = vld [vmem:[%s7305_s8 + $0x118] sm:$0xff]  ;;  %v4594_v37 = vld [vmem:[%s7305_s8 + $0x120] sm:$0xff] }
 0x93b   : > { %2978 = vmatpush1.bf16.msra.mxu1 %v2959_v30  ;;  %v6597_v49 = vpop.f32.mrb[63].mxu1 }
 0x93c   : > { %7526 = vst [vmem:[#allocation52_spill] sm:$0xff] %v6597_v49 }
 0x93e   : > { %2996 = vmatmul.mubr.bf16.vlgmr.msra.gmra.mrb[84].mxu1 %v4524_v59 }
 0x93f   : > { %3125 = vmatprep.mubr.bf16.mxu1 %v7401_v53 }
 0x961   : > { %v3520_v19 = vpop.xlane.xlu0 %3519  ;;  %v6605_v55 = vpop.f32.mrb[64].mxu1 }
 0x962   : > { %v3564_v26 = vmul.f32 0.00390625, %v3520_v19  ;;  %7527 = vst [vmem:[#allocation53_spill] sm:$0xff] %v6605_v55  ;;  %v6610_v13 = vpop.f32.mrb[65].mxu1 }
 0x963   : > { %7528 = vst [vmem:[#allocation15_spill] sm:$0xff] %v6610_v13  ;;  %v6612_v30 = vpop.f32.mrb[66].mxu1 }
 0x964   : > { %v3580_v1 = vmul.f32 %v4591_v25, %v3564_v26  ;;  %7529 = vst [vmem:[#allocation55_spill] sm:$0xff] %v6612_v30  ;;  %v6617_v19 = vpop.f32.mrb[67].mxu1 }
 0x965   : > { %v3523_v5 = vpop.xlane.xlu0 %3522  ;;  %7530 = vst [vmem:[#allocation56_spill] sm:$0xff] %v6617_v19 }
 0x966   : > { %v3565_v51 = vmul.f32 0.00390625, %v3523_v5 }
 0x967   : > { %v3517_v22 = vpop.xlane.xlu1 %3516 }
 0x968   : > { %v3563_v15 = vmul.f32 0.00390625, %v3517_v22  ;;  %v3581_v5 = vmul.f32 %v4592_v32, %v3565_v51  ;;  %v4596_v51 = vld [vmem:[%s7305_s8 + $0x130] sm:$0xff] }
 0x969   : > { %v3529_v8 = vpop.xlane.xlu0 %3528 }
 0x96a   : > { %v3579_v12 = vmul.f32 %v4590_v20, %v3563_v15  ;;  %v3567_v24 = vmul.f32 0.00390625, %v3529_v8  ;;  %v4595_v20 = vld [vmem:[%s7305_s8 + $0x128] sm:$0xff] }
 0x96b   : > { %v3526_v59 = vpop.xlane.xlu1 %3525 }
 0x96c   : > { %v3595_v22 = vadd.f32 %v3580_v1, %v3579_v12  ;;  %v3566_v55 = vmul.f32 0.00390625, %v3526_v59  ;;  %v3583_v30 = vmul.f32 %v4594_v37, %v3567_v24  ;;  %v6628_v12 = vpop.f32.mrb[68].mxu1 }
 0x96d   : > { %v3535_v13 = vpop.xlane.xlu0 %3534  ;;  %7531 = vst [vmem:[#allocation34_spill] sm:$0xff] %v6628_v12  ;;  %v6633_v59 = vpop.f32.mrb[69].mxu1 }
 0x96e   : > { %v3582_v26 = vmul.f32 %v4593_v3, %v3566_v55  ;;  %v3596_v25 = vadd.f32 %v3595_v22, %v3581_v5  ;;  %v3569_v49 = vmul.f32 0.00390625, %v3535_v13  ;;  %v4597_v55 = vld [vmem:[%s7305_s8 + $0x138] sm:$0xff]  ;;  %7532 = vst [vmem:[#allocation35_spill] sm:$0xff] %v6633_v59  ;;  %v6635_v22 = vpop.f32.mrb[70].mxu1 }
 0x96f   : > { %v3532_v15 = vpop.xlane.xlu1 %3531  ;;  %7533 = vst [vmem:[#allocation32_spill] sm:$0xff] %v6635_v22 }
 0x970   : > { %v3597_v45 = vadd.f32 %v3596_v25, %v3582_v26  ;;  %v3568_v19 = vmul.f32 0.00390625, %v3532_v15  ;;  %v3585_v24 = vmul.f32 %v4596_v51, %v3569_v49 }
 0x971   : > { %v3541_v32 = vpop.xlane.xlu0 %3540 }
 0x972   : > { %v3584_v8 = vmul.f32 %v4595_v20, %v3568_v19  ;;  %v3598_v1 = vadd.f32 %v3597_v45, %v3583_v30  ;;  %v3571_v13 = vmul.f32 0.00390625, %v3541_v32  ;;  %v4598_v19 = vld [vmem:[%s7305_s8 + $0x140] sm:$0xff]  ;;  %v6640_v30 = vpop.f32.mrb[71].mxu1  ;;  %v4599_v20 = vld [vmem:[%s7305_s8 + $0x148] sm:$0xff] }
 0x973   : > { %v3538_v3 = vpop.xlane.xlu1 %3537  ;;  %7534 = vst [vmem:[#allocation33_spill] sm:$0xff] %v6640_v30 }
 0x974   : > { %v3599_v37 = vadd.f32 %v3598_v1, %v3584_v8  ;;  %v3570_v5 = vmul.f32 0.00390625, %v3538_v3  ;;  %v3587_v49 = vmul.f32 %v4598_v19, %v3571_v13  ;;  %v4600_v1 = vld [vmem:[%s7305_s8 + $0x150] sm:$0xff]  ;;  %v6648_v22 = vpop.f32.mrb[72].mxu1 }
 0x975   : > { %v3547_v45 = vpop.xlane.xlu0 %3546  ;;  %7535 = vst [vmem:[#allocation2_spill] sm:$0xff] %v6648_v22 }
 0x976   : > { %v3586_v26 = vmul.f32 %v4597_v55, %v3570_v5  ;;  %v3600_v25 = vadd.f32 %v3599_v37, %v3585_v24  ;;  %v3573_v32 = vmul.f32 0.00390625, %v3547_v45  ;;  %v4601_v55 = vld [vmem:[%s7305_s8 + $0x158] sm:$0xff]  ;;  %v6653_v37 = vpop.f32.mrb[73].mxu1 }
 0x977   : > { %v3544_v15 = vpop.xlane.xlu1 %3543  ;;  %7536 = vst [vmem:[#allocation36_spill] sm:$0xff] %v6653_v37 }
 0x978   : > { %v3601_v51 = vadd.f32 %v3600_v25, %v3586_v26  ;;  %v3572_v8 = vmul.f32 0.00390625, %v3544_v15  ;;  %v3589_v13 = vmul.f32 %v4600_v1, %v3573_v32  ;;  %v6655_v26 = vpop.f32.mrb[74].mxu1  ;;  %v4602_v25 = vld [vmem:[%s7305_s8 + $0x160] sm:$0xff] }
 0x979   : > { %v3553_v3 = vpop.xlane.xlu0 %3552  ;;  %7537 = vst [vmem:[#allocation3_spill] sm:$0xff] %v6655_v26  ;;  %v6660_v15 = vpop.f32.mrb[75].mxu1 }
 0x97a   : > { %v3588_v59 = vmul.f32 %v4599_v20, %v3572_v8  ;;  %v3602_v12 = vadd.f32 %v3601_v51, %v3587_v49  ;;  %v3575_v19 = vmul.f32 0.00390625, %v3553_v3  ;;  %7538 = vst [vmem:[#allocation37_spill] sm:$0xff] %v6660_v15  ;;  %v4603_v8 = vld [vmem:[%s7305_s8 + $0x168] sm:$0xff]  ;;  %v4604_v3 = vld [vmem:[%s7305_s8 + $0x170] sm:$0xff] }
 0x97b   : > { %v3550_v24 = vpop.xlane.xlu1 %3549 }
 0x97c   : > { %v3603_v5 = vadd.f32 %v3602_v12, %v3588_v59  ;;  %v3574_v45 = vmul.f32 0.00390625, %v3550_v24  ;;  %v3591_v32 = vmul.f32 %v4602_v25, %v3575_v19  ;;  %v6668_v26 = vpop.f32.mrb[76].mxu1 }
 0x97d   : > { %v3559_v20 = vpop.xlane.xlu0 %3558  ;;  %7539 = vst [vmem:[#allocation4_spill] sm:$0xff] %v6668_v26 }
 0x97e   : > { %v3590_v49 = vmul.f32 %v4601_v55, %v3574_v45  ;;  %v3604_v51 = vadd.f32 %v3603_v5, %v3589_v13  ;;  %v3577_v59 = vmul.f32 0.00390625, %v3559_v20  ;;  %v4605_v55 = vld [vmem:[%s7305_s8 + $0x178] sm:$0xff]  ;;  %v6673_v5 = vpop.f32.mrb[77].mxu1 }
 0x97f   : > { %v3556_v37 = vpop.xlane.xlu1 %3555  ;;  %v6675_v20 = vpop.f32.mrb[78].mxu1 }
 0x980   : > { %v3605_v12 = vadd.f32 %v3604_v51, %v3590_v49  ;;  %v3576_v1 = vmul.f32 0.00390625, %v3556_v37  ;;  %v3593_v45 = vmul.f32 %v4604_v3, %v3577_v59  ;;  %v6677_v37 = vpop.f32.mrb[79].mxu1 }
 0x982   : > { %v3592_v24 = vmul.f32 %v4603_v8, %v3576_v1  ;;  %v3606_v22 = vadd.f32 %v3605_v12, %v3591_v32 }
 0x983   : > { %v3562_v13 = vpop.xlane.xlu1 %3561 }
 0x984   : > { %v3607_v19 = vadd.f32 %v3606_v22, %v3592_v24  ;;  %v3578_v25 = vmul.f32 0.00390625, %v3562_v13  ;;  %v6679_v12 = vpop.f32.mrb[80].mxu1  ;;  %v3481_v24 = vld [vmem:[%s7306_s9] sm:$0x1] }
 0x985   : > { %7540 = vst [vmem:[#allocation38_spill] sm:$0xff] %v6679_v12  ;;  %v6681_v1 = vpop.f32.mrb[81].mxu1 }
 0x986   : > { %v3594_v49 = vmul.f32 %v4605_v55, %v3578_v25  ;;  %v3608_v51 = vadd.f32 %v3607_v19, %v3593_v45  ;;  %7541 = vst [vmem:[#allocation5_spill] sm:$0xff] %v6681_v1  ;;  %v6683_v15 = vpop.f32.mrb[82].mxu1  ;;  %v4607_v19 = vld [vmem:[%s7307_s10 + $0x108] sm:$0xff]  ;;  %v4606_v25 = vld [vmem:[%s7307_s10 + $0x100] sm:$0xff] }
 0x987   : > { %v6685_v30 = vpop.f32.mrb[83].mxu1 }
 0x988   : > { %v3609_v8 = vadd.f32 %v3608_v51, %v3594_v49  ;;  %7542 = vst [vmem:[#allocation39_spill] sm:$0xff] %v6685_v30 }
 0x98a   : > { %v3610_v32 = vrot.slane %v3609_v8, 4 }
 0x98c   : > { %v3611_v26 = vadd.f32 %v3610_v32, %v3609_v8  ;;  %v4609_v8 = vld [vmem:[%s7307_s10 + $0x118] sm:$0xff]  ;;  %v4608_v32 = vld [vmem:[%s7307_s10 + $0x110] sm:$0xff] }
 0x98e   : > { %v3612_v59 = vrot.slane %v3611_v26, 2 }
 0x990   : > { %v3613_v22 = vadd.f32 %v3612_v59, %v3611_v26 }
 0x992   : > { %v3614_v3 = vrot.slane %v3613_v22, 1 }
 0x994   : > { %v3615_v55 = vadd.f32 %v3614_v3, %v3613_v22  ;;  %v4611_v3 = vld [vmem:[%s7307_s10 + $0x128] sm:$0xff] }
 0x996   : > { %v3616_v13 = vadd.f32 %v3615_v55, %v3481_v24 }
 0x998   : > { %v3617_v45 = vmax.f32 %v3616_v13, 0.0  ;;  %v4613_v13 = vld [vmem:[%s7307_s10 + $0x138] sm:$0xff] }
 0x99a   : > { %v3621_v49 = vrot.slane %v3617_v45, %v5224_v42  ;;  %v4610_v42 = vld [vmem:[%s7307_s10 + $0x120] sm:$0xff]  ;;  %v4612_v45 = vld [vmem:[%s7307_s10 + $0x130] sm:$0xff] }
 0x99c   : > { %v3623_v51 = vmul.f32 %v4607_v19, %v3621_v49  ;;  %v3622_v26 = vmul.f32 %v4606_v25, %v3621_v49  ;;  %v3625_v59 = vmul.f32 %v4609_v8, %v3621_v49  ;;  %v3624_v22 = vmul.f32 %v4608_v32, %v3621_v49 }
 0x99d   : > { %v3627_v24 = vmul.f32 %v4611_v3, %v3621_v49  ;;  %v3626_v55 = vmul.f32 %v4610_v42, %v3621_v49  ;;  %v3629_v19 = vmul.f32 %v4613_v13, %v3621_v49  ;;  %v3628_v25 = vmul.f32 %v4612_v45, %v3621_v49 }
 0x99e   : > { %3640 = vadd.xlane.f32.xlu1 %v3623_v51  ;;  %3638 = vadd.xlane.f32.xlu0 %v3622_v26  ;;  %v4615_v51 = vld [vmem:[%s7307_s10 + $0x148] sm:$0xff]  ;;  %v4614_v26 = vld [vmem:[%s7307_s10 + $0x140] sm:$0xff] }
 0x99f   : > { %v3631_v8 = vmul.f32 %v4615_v51, %v3621_v49  ;;  %v3630_v32 = vmul.f32 %v4614_v26, %v3621_v49 }
 0x9a2   : > { %3644 = vadd.xlane.f32.xlu1 %v3625_v59  ;;  %3642 = vadd.xlane.f32.xlu0 %v3624_v22  ;;  %v4617_v59 = vld [vmem:[%s7307_s10 + $0x158] sm:$0xff]  ;;  %v4616_v22 = vld [vmem:[%s7307_s10 + $0x150] sm:$0xff] }
 0x9a3   : > { %v3633_v3 = vmul.f32 %v4617_v59, %v3621_v49  ;;  %v3632_v42 = vmul.f32 %v4616_v22, %v3621_v49 }
 0x9a6   : > { %3648 = vadd.xlane.f32.xlu1 %v3627_v24  ;;  %3646 = vadd.xlane.f32.xlu0 %v3626_v55  ;;  %v4619_v24 = vld [vmem:[%s7307_s10 + $0x168] sm:$0xff]  ;;  %v4618_v55 = vld [vmem:[%s7307_s10 + $0x160] sm:$0xff] }
 0x9a7   : > { %v3635_v13 = vmul.f32 %v4619_v24, %v3621_v49  ;;  %v3634_v45 = vmul.f32 %v4618_v55, %v3621_v49  ;;  %v4756_v55 = vld [vmem:[%s7312_s15 + $0x40] sm:$0xff]  }
 0x9aa   : > { %3652 = vadd.xlane.f32.xlu1 %v3629_v19  ;;  %3650 = vadd.xlane.f32.xlu0 %v3628_v25  ;;  %v4621_v19 = vld [vmem:[%s7307_s10 + $0x178] sm:$0xff]  ;;  %v4620_v25 = vld [vmem:[%s7307_s10 + $0x170] sm:$0xff] }
 0x9ab   : > { %v3637_v51 = vmul.f32 %v4621_v19, %v3621_v49  ;;  %v3636_v26 = vmul.f32 %v4620_v25, %v3621_v49  ;;  %v4757_v49 = vld [vmem:[%s7312_s15 + $0x48] sm:$0xff]  }
 0x9ac   : > { %v4996_v25 = vld [vmem:[%s7308_s11 + $0x8] sm:$0xff] }
 0x9ae   : > { %3656 = vadd.xlane.f32.xlu1 %v3631_v8  ;;  %3654 = vadd.xlane.f32.xlu0 %v3630_v32 }
 0x9b2   : > { %3660 = vadd.xlane.f32.xlu1 %v3633_v3  ;;  %3658 = vadd.xlane.f32.xlu0 %v3632_v42 }
 0x9b6   : > { %3664 = vadd.xlane.f32.xlu1 %v3635_v13  ;;  %3662 = vadd.xlane.f32.xlu0 %v3634_v45  ;;  %v4758_v13 = vld [vmem:[%s7312_s15 + $0x50] sm:$0xff]  }
 0x9ba   : > { %3668 = vadd.xlane.f32.xlu1 %v3637_v51  ;;  %3666 = vadd.xlane.f32.xlu0 %v3636_v26  ;;  %v4997_v26 = vld [vmem:[%s7308_s11] sm:$0xff] }
 0xa11   : > { %v2997_v8 = vpop.f32.mrb[84].mxu1 }
 0xa12   : > { %v3021_v32 = vpack.c.bf16 %v2997_v8, %v2997_v8  ;;  %v2999_v59 = vpop.f32.mrb[85].mxu1 }
 0xa13   : > { %v3022_v22 = vpack.c.bf16 %v2999_v59, %v2999_v59  ;;  %v3001_v3 = vpop.f32.mrb[86].mxu1 }
 0xa14   : > { %v3088_v42 = vsel %vm2137_vm2, %v3021_v32, 0  ;;  %v3002_v24 = vpop.f32.mrb[87].mxu1  ;;  %v4759_v32 = vld [vmem:[%s7312_s15 + $0x58] sm:$0xff]  }
 0xa15   : > { %4549 = vmatprep.subr.msk.bf16.mxu1 %vm2137_vm2, %v3022_v22  ;;  %v4998_v24 = vld [vmem:[%s7308_s11 + $0x18] sm:$0xff] }
 0xa16   : > { %3094 = vmatpush1.bf16.msra.mxu1 %v3088_v42 }
 0xa19   : > { %4550 = vmatmul.mubr.msk.bf16.vlgmr.msra.gmra.mrb[88].mxu1 %vm2112_vm3, %v4756_v55 }
 0xa1a   : > { %3135 = vmatprep.mubr.bf16.mxu1 %v7401_v53 }
 0xa21   : > { %4551 = vmatmul.mubr.msk.bf16.gmra.mrb[92].mxu1 %vm2112_vm3, %v4757_v49  ;;  %v4999_v49 = vld [vmem:[%s7308_s11 + $0x10] sm:$0xff] }
 0xa22   : > { %3145 = vmatprep.mubr.bf16.mxu1 %v7401_v53 }
 0xa29   : > { %4552 = vmatmul.mubr.msk.bf16.gmra.mrb[96].mxu1 %vm2112_vm3, %v4758_v13 }
 0xa2a   : > { %3155 = vmatprep.mubr.bf16.mxu1 %v7401_v53 }
 0xa2b   : > { %v3641_v45 = vpop.xlane.xlu1 %3640  ;;  %v3639_v19 = vpop.xlane.xlu0 %3638 }
 0xa2c   : > { %v3671_v51 = vadd.f32 %v4996_v25, %v3641_v45  ;;  %v3670_v8 = vadd.f32 %v4997_v26, %v3639_v19  ;;  %v5000_v26 = vld [vmem:[%s7308_s11 + $0x28] sm:$0xff] }
 0xa2e   : > { %v4623_v59 = vmul.f32 -1.442695, %v3671_v51  ;;  %v4622_v22 = vmul.f32 -1.442695, %v3670_v8 }
 0xa2f   : > { %v3645_v3 = vpop.xlane.xlu1 %3644  ;;  %v3643_v42 = vpop.xlane.xlu0 %3642 }
 0xa30   : > { %4932 = vpow2.f32 %v4623_v59  ;;  %v3673_v55 = vadd.f32 %v4998_v24, %v3645_v3  ;;  %v3672_v13 = vadd.f32 %v4999_v49, %v3643_v42  ;;  %v5001_v59 = vld [vmem:[%s7308_s11 + $0x20] sm:$0xff]  ;;  %v5002_v49 = vld [vmem:[%s7308_s11 + $0x38] sm:$0xff] }
 0xa31   : > { %4934 = vpow2.f32 %v4622_v22  ;;  %4553 = vmatmul.mubr.msk.bf16.gmra.mrb[100].mxu1 %vm2112_vm3, %v4759_v32  ;;  %v4760_v32 = vld [vmem:[%s7312_s15 + $0x60] sm:$0xff]  }
 0xa32   : > { %v4625_v45 = vmul.f32 -1.442695, %v3673_v55  ;;  %v4624_v19 = vmul.f32 -1.442695, %v3672_v13  ;;  %3165 = vmatprep.mubr.bf16.mxu1 %v7401_v53 }
 0xa33   : > { %v3649_v25 = vpop.xlane.xlu1 %3648  ;;  %v3647_v51 = vpop.xlane.xlu0 %3646 }
 0xa34   : > { %4936 = vpow2.f32 %v4625_v45  ;;  %v3675_v8 = vadd.f32 %v5000_v26, %v3649_v25  ;;  %v3674_v3 = vadd.f32 %v5001_v59, %v3647_v51  ;;  %v5003_v45 = vld [vmem:[%s7308_s11 + $0x30] sm:$0xff] }
 0xa35   : > { %4938 = vpow2.f32 %v4624_v19 }
 0xa36   : > { %v4627_v22 = vmul.f32 -1.442695, %v3675_v8  ;;  %v4626_v42 = vmul.f32 -1.442695, %v3674_v3 }
 0xa37   : > { %v3653_v24 = vpop.xlane.xlu1 %3652  ;;  %v3651_v55 = vpop.xlane.xlu0 %3650 }
 0xa38   : > { %4940 = vpow2.f32 %v4627_v22  ;;  %v3677_v13 = vadd.f32 %v5002_v49, %v3653_v24  ;;  %v3676_v25 = vadd.f32 %v5003_v45, %v3651_v55  ;;  %v5004_v24 = vld [vmem:[%s7308_s11 + $0x48] sm:$0xff] }
 0xa39   : > { %4942 = vpow2.f32 %v4626_v42  ;;  %4554 = vmatmul.mubr.msk.bf16.gmra.mrb[104].mxu1 %vm2112_vm3, %v4760_v32  ;;  %v5005_v32 = vld [vmem:[%s7308_s11 + $0x40] sm:$0xff]  ;;  %v4761_v55 = vld [vmem:[%s7312_s15 + $0x68] sm:$0xff]  }
 0xa3a   : > { %v4933_v19 = vpop.eup %4932  ;;  %v4629_v51 = vmul.f32 -1.442695, %v3677_v13  ;;  %3175 = vmatprep.mubr.bf16.mxu1 %v7401_v53  ;;  %v4628_v59 = vmul.f32 -1.442695, %v3676_v25 }
 0xa3b   : > { %v4935_v26 = vpop.eup %4934  ;;  %v3735_v8 = vadd.f32 1.0, %v4933_v19  ;;  %v3657_v3 = vpop.xlane.xlu1 %3656 }
 0xa3c   : > { %v3655_v22 = vpop.xlane.xlu0 %3654  ;;  %v3734_v1 = vadd.f32 1.0, %v4935_v26  ;;  %4944 = vpow2.f32 %v4629_v51  ;;  %v3679_v49 = vadd.f32 %v5004_v24, %v3657_v3  ;;  %v5007_v24 = vld [vmem:[%s7308_s11 + $0x50] sm:$0xff] }
 0xa3d   : > { %v3678_v42 = vadd.f32 %v5005_v32, %v3655_v22  ;;  %4946 = vrcp.f32 %v3735_v8  ;;  %v5006_v22 = vld [vmem:[%s7308_s11 + $0x58] sm:$0xff] }
 0xa3e   : > { %v4937_v13 = vpop.eup %4936  ;;  %4948 = vrcp.f32 %v3734_v1  ;;  %v4631_v45 = vmul.f32 -1.442695, %v3679_v49 }
 0xa3f   : > { %v4939_v25 = vpop.eup %4938  ;;  %v3737_v19 = vadd.f32 1.0, %v4937_v13  ;;  %4950 = vpow2.f32 %v4628_v59  ;;  %v4630_v51 = vmul.f32 -1.442695, %v3678_v42  ;;  %v3661_v26 = vpop.xlane.xlu1 %3660 }
 0xa40   : > { %v3659_v12 = vpop.xlane.xlu0 %3658  ;;  %v3736_v3 = vadd.f32 1.0, %v4939_v25  ;;  %4952 = vpow2.f32 %v4631_v45  ;;  %v3681_v8 = vadd.f32 %v5006_v22, %v3661_v26 }
 0xa41   : > { %v3680_v32 = vadd.f32 %v5007_v24, %v3659_v12  ;;  %4954 = vrcp.f32 %v3737_v19  ;;  %4555 = vmatmul.mubr.msk.bf16.gmra.mrb[108].mxu1 %vm2112_vm3, %v4761_v55  ;;  %v5008_v12 = vld [vmem:[%s7308_s11 + $0x68] sm:$0xff]  ;;  %v5009_v55 = vld [vmem:[%s7308_s11 + $0x60] sm:$0xff] }
 0xa42   : > { %v4941_v1 = vpop.eup %4940  ;;  %4956 = vrcp.f32 %v3736_v3  ;;  %v4633_v59 = vmul.f32 -1.442695, %v3681_v8  ;;  %3185 = vmatprep.mubr.bf16.mxu1 %v7401_v53 }
 0xa43   : > { %v4943_v49 = vpop.eup %4942  ;;  %v3739_v42 = vadd.f32 1.0, %v4941_v1  ;;  %4958 = vpow2.f32 %v4630_v51  ;;  %v4632_v13 = vmul.f32 -1.442695, %v3680_v32  ;;  %v3665_v45 = vpop.xlane.xlu1 %3664  ;;  %v4762_v51 = vld [vmem:[%s7312_s15 + $0x70] sm:$0xff]  }
 0xa44   : > { %v3663_v25 = vpop.xlane.xlu0 %3662  ;;  %v3738_v26 = vadd.f32 1.0, %v4943_v49  ;;  %4960 = vpow2.f32 %v4633_v59  ;;  %v3683_v19 = vadd.f32 %v5008_v12, %v3665_v45  ;;  %v5011_v12 = vld [vmem:[%s7308_s11 + $0x70] sm:$0xff] }
 0xa45   : > { %v3682_v3 = vadd.f32 %v5009_v55, %v3663_v25  ;;  %4962 = vrcp.f32 %v3739_v42  ;;  %v5010_v25 = vld [vmem:[%s7308_s11 + $0x78] sm:$0xff] }
 0xa46   : > { %v4945_v22 = vpop.eup %4944  ;;  %4964 = vrcp.f32 %v3738_v26  ;;  %v4635_v8 = vmul.f32 -1.442695, %v3683_v19 }
 0xa47   : > { %v4634_v24 = vmul.f32 -1.442695, %v3682_v3  ;;  %v4947_v32 = vpop.eup %4946  ;;  %v3741_v1 = vadd.f32 1.0, %v4945_v22  ;;  %4966 = vpow2.f32 %v4632_v13  ;;  %v3669_v59 = vpop.xlane.xlu1 %3668 }
 0xa48   : > { %v3667_v49 = vpop.xlane.xlu0 %3666  ;;  %v4949_v45 = vpop.eup %4948  ;;  %4968 = vpow2.f32 %v4635_v8  ;;  %v3685_v42 = vadd.f32 %v5010_v25, %v3669_v59  ;;  %3789 = vperm.xlu1 %4705, %v4947_v32  }
 0xa49   : > { %v3684_v55 = vadd.f32 %v5011_v12, %v3667_v49  ;;  %v4951_v26 = vpop.eup %4950  ;;  %4970 = vrcp.f32 %v3741_v1  ;;  %3784 = vperm.xlu0 %4704, %v4949_v45   ;;  %4556 = vmatmul.mubr.msk.bf16.gmra.mrb[112].mxu1 %vm2112_vm3, %v4762_v51  ;;  %v4763_v51 = vld [vmem:[%s7312_s15 + $0x78] sm:$0xff]  }
 0xa4a   : > { %v4953_v13 = vpop.eup %4952  ;;  %v3740_v19 = vadd.f32 1.0, %v4951_v26  ;;  %4972 = vpow2.f32 %v4634_v24  ;;  %v4637_v3 = vmul.f32 -1.442695, %v3685_v42  ;;  %3195 = vmatprep.mubr.bf16.mxu1 %v7401_v53 }
 0xa4b   : > { %v4955_v22 = vpop.eup %4954  ;;  %v3743_v8 = vadd.f32 1.0, %v4953_v13  ;;  %v4636_v59 = vmul.f32 -1.442695, %v3684_v55 }
 0xa4c   : > { %v4957_v25 = vpop.eup %4956  ;;  %4974 = vrcp.f32 %v3740_v19 }
 0xa4d   : > { %v4959_v30 = vpop.eup %4958  ;;  %4976 = vrcp.f32 %v3743_v8  ;;  %3799 = vperm.xlu0 %4704, %v4955_v22   ;;  %3794 = vperm.xlu1 %4705, %v4957_v25  }
 0xa4e   : > { %v4961_v32 = vpop.eup %4960  ;;  %v3742_v1 = vadd.f32 1.0, %v4959_v30  ;;  %4978 = vpow2.f32 %v4637_v3 }
 0xa4f   : > { %v4963_v24 = vpop.eup %4962  ;;  %v3745_v49 = vadd.f32 1.0, %v4961_v32  ;;  %4980 = vpow2.f32 %v4636_v59 }
 0xa50   : > { %v4965_v45 = vpop.eup %4964  ;;  %4982 = vrcp.f32 %v3742_v1 }
 0xa51   : > { %v4967_v42 = vpop.eup %4966  ;;  %4984 = vrcp.f32 %v3745_v49  ;;  %3809 = vperm.xlu0 %4704, %v4963_v24   ;;  %3804 = vperm.xlu1 %4705, %v4965_v45  }
 0xa52   : > { %v4969_v12 = vpop.eup %4968  ;;  %v3744_v55 = vadd.f32 1.0, %v4967_v42  ;;  %4557 = vmatmul.mubr.msk.bf16.gmra.mrb[116].mxu1 %vm2112_vm3, %v4763_v51 }
 0xa53   : > { %v4971_v26 = vpop.eup %4970  ;;  %v3747_v30 = vadd.f32 1.0, %v4969_v12  ;;  %3944 = vmatprep.mubr.bf16.mxu1 %v7401_v53 }
 0xa54   : > { %v4973_v13 = vpop.eup %4972  ;;  %4986 = vrcp.f32 %v3744_v55  ;;  %v1039_v55 = vld [vmem:[%s7310_s13 + $0x8] sm:$0xff] }
 0xa55   : > { %4988 = vrcp.f32 %v3747_v30  ;;  %v3746_v19 = vadd.f32 1.0, %v4973_v13  ;;  %3819 = vperm.xlu0 %4704, %v4971_v26   ;;  %v1038_v26 = vld [vmem:[%s7310_s13] sm:$0xff]  ;;  %v1041_v30 = vld [vmem:[%s7310_s13 + $0x18] sm:$0xff]  ;;  %v1040_v13 = vld [vmem:[%s7310_s13 + $0x10] sm:$0xff] }
 0xa56   : > { %v4975_v3 = vpop.eup %4974 }
 0xa57   : > { %v4977_v22 = vpop.eup %4976  ;;  %4990 = vrcp.f32 %v3746_v19  ;;  %3814 = vperm.xlu1 %4705, %v4975_v3   ;;  %v1043_v19 = vld [vmem:[%s7310_s13 + $0x28] sm:$0xff]  ;;  %v1042_v3 = vld [vmem:[%s7310_s13 + $0x20] sm:$0xff] }
 0xa58   : > { %v4979_v8 = vpop.eup %4978 }
 0xa59   : > { %v4981_v59 = vpop.eup %4980  ;;  %v3749_v25 = vadd.f32 1.0, %v4979_v8  ;;  %3829 = vperm.xlu0 %4704, %v4977_v22   ;;  %v1045_v22 = vld [vmem:[%s7310_s13 + $0x38] sm:$0xff]  ;;  %v1044_v8 = vld [vmem:[%s7310_s13 + $0x30] sm:$0xff] }
 0xa5a   : > { %v4983_v32 = vpop.eup %4982  ;;  %v3748_v1 = vadd.f32 1.0, %v4981_v59  ;;  %v1047_v59 = vld [vmem:[%s7310_s13 + $0x48] sm:$0xff] }
 0xa5b   : > { %v4985_v51 = vpop.eup %4984  ;;  %4992 = vrcp.f32 %v3749_v25  ;;  %3824 = vperm.xlu1 %4705, %v4983_v32   ;;  %v1046_v25 = vld [vmem:[%s7310_s13 + $0x40] sm:$0xff]  ;;  %v1049_v32 = vld [vmem:[%s7310_s13 + $0x58] sm:$0xff] }
 0xa5c   : > { %4994 = vrcp.f32 %v3748_v1  ;;  %v1048_v1 = vld [vmem:[%s7310_s13 + $0x50] sm:$0xff] }
 0xa5d   : > { %3839 = vperm.xlu0 %4704, %v4985_v51   ;;  %v1051_v51 = vld [vmem:[%s7310_s13 + $0x68] sm:$0xff] }
 0xa5e   : > { %v4987_v24 = vpop.eup %4986 }
 0xa5f   : > { %v4989_v49 = vpop.eup %4988  ;;  %3834 = vperm.xlu1 %4705, %v4987_v24   ;;  %v1050_v24 = vld [vmem:[%s7310_s13 + $0x60] sm:$0xff] }
 0xa61   : > { %v4991_v45 = vpop.eup %4990  ;;  %3849 = vperm.xlu0 %4704, %v4989_v49   ;;  %v1053_v49 = vld [vmem:[%s7310_s13 + $0x78] sm:$0xff] }
 0xa63   : > { %3844 = vperm.xlu1 %4705, %v4991_v45   ;;  %v1052_v45 = vld [vmem:[%s7310_s13 + $0x70] sm:$0xff] }
 0xa65   : > { %v4993_v42 = vpop.eup %4992 }
 0xa66   : > { %v4995_v12 = vpop.eup %4994  ;;  %3859 = vperm.xlu0 %4704, %v4993_v42  }
 0xa67   : > { %3854 = vperm.xlu1 %4705, %v4995_v12  }
 0xa6a   : > { %1778 = vperm.xlu0 %4704, %v1039_v55  }
 0xa6b   : > { %1773 = vperm.xlu1 %4705, %v1038_v26  }
 0xa6e   : > { %1788 = vperm.xlu0 %4704, %v1041_v30  }
 0xa6f   : > { %1783 = vperm.xlu1 %4705, %v1040_v13  }
 0xa72   : > { %1798 = vperm.xlu0 %4704, %v1043_v19  }
 0xa73   : > { %1793 = vperm.xlu1 %4705, %v1042_v3  }
 0xa76   : > { %1808 = vperm.xlu0 %4704, %v1045_v22  }
 0xa77   : > { %1803 = vperm.xlu1 %4705, %v1044_v8  }
 0xa7a   : > { %1818 = vperm.xlu0 %4704, %v1047_v59  }
 0xa7b   : > { %1813 = vperm.xlu1 %4705, %v1046_v25  }
 0xa7e   : > { %1828 = vperm.xlu0 %4704, %v1049_v32  }
 0xa7f   : > { %1823 = vperm.xlu1 %4705, %v1048_v1  }
 0xa82   : > { %1838 = vperm.xlu0 %4704, %v1051_v51  }
 0xa83   : > { %1833 = vperm.xlu1 %4705, %v1050_v24  }
 0xa86   : > { %1848 = vperm.xlu0 %4704, %v1053_v49  }
 0xa87   : > { %1843 = vperm.xlu1 %4705, %v1052_v45  }
 0xac7   : > { %v3790_v42 = vpop.permute.xlu1 %3789 }
 0xac8   : > { %v3864_v12 = vmul.f32 %v3790_v42, %v6381_v29  ;;  %v3865_v55 = vmul.f32 %v3790_v42, %v6385_v50  ;;  %v3785_v26 = vpop.permute.xlu0 %3784 }
 0xac9   : > { %v3862_v30 = vmul.f32 %v3785_v26, %v6399_v33  ;;  %v3863_v13 = vmul.f32 %v3785_v26, %v6403_v48 }
 0xacb   : > { %v3894_v19 = vpack.c.bf16 %v3864_v12, %v3862_v30  ;;  %v3895_v3 = vpack.c.bf16 %v3865_v55, %v3863_v13 }
 0xacc   : > { %v3795_v22 = vpop.permute.xlu1 %3794  ;;  %v3800_v8 = vpop.permute.xlu0 %3799 }
 0xacd   : > { %v3866_v59 = vmul.f32 %v3795_v22, %v6391_v28  ;;  %v3867_v25 = vmul.f32 %v3795_v22, %v6395_v14  ;;  %v3868_v32 = vmul.f32 %v3800_v8, %v6419_v7  ;;  %v3869_v1 = vmul.f32 %v3800_v8, %v6423_v18  ;;  %3912 = vmatprep.subr.bf16.mxu1 %v3895_v3 }
 0xace   : > { %3913 = vmatpush1.bf16.msra.mxu1 %v3894_v19 }
 0xacf   : > { %v3896_v29 = vpack.c.bf16 %v3868_v32, %v3866_v59  ;;  %v3897_v50 = vpack.c.bf16 %v3869_v1, %v3867_v25 }
 0xad0   : > { %v3805_v51 = vpop.permute.xlu1 %3804  ;;  %v3810_v33 = vpop.permute.xlu0 %3809 }
 0xad1   : > { %v3870_v48 = vmul.f32 %v3805_v51, %v6409_v0  ;;  %v3871_v24 = vmul.f32 %v3805_v51, %v6413_v46  ;;  %v3872_v49 = vmul.f32 %v3810_v33, %v6439_v43  ;;  %v3873_v28 = vmul.f32 %v3810_v33, %v6443_v36  ;;  %3914 = vmatprep.subr.bf16.mxu1 %v3897_v50 }
 0xad2   : > { %3915 = vmatpush1.bf16.msra.mxu1 %v3896_v29 }
 0xad3   : > { %v3898_v14 = vpack.c.bf16 %v3872_v49, %v3870_v48  ;;  %v3899_v7 = vpack.c.bf16 %v3873_v28, %v3871_v24  ;;  %v7543_v49 = vld [vmem:[#allocation18_spill] sm:$0xff] }
 0xad4   : > { %v3820_v45 = vpop.permute.xlu0 %3819 }
 0xad5   : > { %v3876_v18 = vmul.f32 %v3820_v45, %v6459_v56  ;;  %v3877_v42 = vmul.f32 %v3820_v45, %v6463_v39  ;;  %3916 = vmatprep.subr.bf16.mxu1 %v3899_v7 }
 0xad6   : > { %v3815_v12 = vpop.permute.xlu1 %3814  ;;  %3917 = vmatpush1.bf16.msra.mxu1 %v3898_v14 }
 0xad7   : > { %v3874_v0 = vmul.f32 %v3815_v12, %v6429_v4  ;;  %v3875_v46 = vmul.f32 %v3815_v12, %v6433_v47  ;;  %v4638_v12 = vld [vmem:[%s7311_s14 + $0x4] sm:$0x3] }
 0xad8   : > { %v3830_v55 = vpop.permute.xlu0 %3829 }
 0xad9   : > { %v3900_v43 = vpack.c.bf16 %v3876_v18, %v3874_v0  ;;  %v3901_v26 = vpack.c.bf16 %v3877_v42, %v3875_v46  ;;  %v3880_v36 = vmul.f32 %v3830_v55, %v6479_v44  ;;  %v3881_v30 = vmul.f32 %v3830_v55, %v6483_v63 }
 0xada   : > { %v3825_v13 = vpop.permute.xlu1 %3824 }
 0xadb   : > { %v3878_v19 = vmul.f32 %v3825_v13, %v6449_v11  ;;  %v3879_v56 = vmul.f32 %v3825_v13, %v6453_v6  ;;  %3918 = vmatprep.subr.bf16.mxu1 %v3901_v26  ;;  %v7547_v26 = vld [vmem:[#allocation22_spill] sm:$0xff] }
 0xadc   : > { %3919 = vmatpush1.bf16.msra.mxu1 %v3900_v43  ;;  %v3840_v39 = vpop.permute.xlu0 %3839 }
 0xadd   : > { %v3902_v3 = vpack.c.bf16 %v3880_v36, %v3878_v19  ;;  %v3903_v22 = vpack.c.bf16 %v3881_v30, %v3879_v56  ;;  %v3884_v4 = vmul.f32 %v3840_v39, %v6499_v34  ;;  %v3885_v47 = vmul.f32 %v3840_v39, %v6503_v27  ;;  %v7548_v30 = vld [vmem:[#allocation23_spill] sm:$0xff]  ;;  %v7550_v39 = vld [vmem:[#allocation21_spill] sm:$0xff] }
 0xade   : > { %v3835_v8 = vpop.permute.xlu1 %3834 }
 0xadf   : > { %v3882_v59 = vmul.f32 %v3835_v8, %v6469_v38  ;;  %v3883_v44 = vmul.f32 %v3835_v8, %v6473_v16  ;;  %3920 = vmatprep.subr.bf16.mxu1 %v3903_v22 }
 0xae0   : > { %3921 = vmatpush1.bf16.msra.mxu1 %v3902_v3  ;;  %v3850_v63 = vpop.permute.xlu0 %3849 }
 0xae1   : > { %v3904_v11 = vpack.c.bf16 %v3884_v4, %v3882_v59  ;;  %v3905_v25 = vpack.c.bf16 %v3885_v47, %v3883_v44  ;;  %v3888_v6 = vmul.f32 %v3850_v63, %v6519_v10  ;;  %v3889_v32 = vmul.f32 %v3850_v63, %v6523_v61 }
 0xae2   : > { %v3845_v1 = vpop.permute.xlu1 %3844 }
 0xae3   : > { %v3886_v34 = vmul.f32 %v3845_v1, %v6489_v57  ;;  %v3887_v27 = vmul.f32 %v3845_v1, %v6493_v35  ;;  %3922 = vmatprep.subr.bf16.mxu1 %v3905_v25 }
 0xae4   : > { %3923 = vmatpush1.bf16.msra.mxu1 %v3904_v11 }
 0xae5   : > { %v3906_v38 = vpack.c.bf16 %v3888_v6, %v3886_v34  ;;  %v3907_v29 = vpack.c.bf16 %v3889_v32, %v3887_v27  ;;  %v3860_v16 = vpop.permute.xlu0 %3859 }
 0xae6   : > { %v3855_v50 = vpop.permute.xlu1 %3854  ;;  %v3892_v51 = vmul.f32 %v3860_v16, %v6531_v41  ;;  %v3893_v33 = vmul.f32 %v3860_v16, %v6535_v23  ;;  %v7544_v41 = vld [vmem:[#allocation19_spill] sm:$0xff]  ;;  %v7546_v23 = vld [vmem:[#allocation17_spill] sm:$0xff] }
 0xae7   : > { %v3890_v10 = vmul.f32 %v3855_v50, %v6509_v58  ;;  %v3891_v61 = vmul.f32 %v3855_v50, %v6513_v40  ;;  %3924 = vmatprep.subr.bf16.mxu1 %v3907_v29  ;;  %v7545_v58 = vld [vmem:[#allocation16_spill] sm:$0xff]  ;;  %v7556_v50 = vld [vmem:[#allocation54_spill] sm:$0xff] }
 0xae8   : > { %3925 = vmatpush1.bf16.msra.mxu1 %v3906_v38  ;;  %v7555_v38 = vld [vmem:[#allocation52_spill] sm:$0xff] }
 0xae9   : > { %v3908_v57 = vpack.c.bf16 %v3892_v51, %v3890_v10  ;;  %v3909_v35 = vpack.c.bf16 %v3893_v33, %v3891_v61  ;;  %v1779_v48 = vpop.permute.xlu0 %1778  ;;  %v7557_v33 = vld [vmem:[#allocation13_spill] sm:$0xff] }
 0xaea   : > { %v1774_v24 = vpop.permute.xlu1 %1773  ;;  %v6913_v28 = vadd.f32 %v7543_v49, %v1779_v48  ;;  %v6916_v14 = vadd.f32 %v7544_v41, %v1779_v48  ;;  %v7558_v48 = vld [vmem:[#allocation30_spill] sm:$0xff]  ;;  %v7559_v49 = vld [vmem:[#allocation31_spill] sm:$0xff] }
 0xaeb   : > { %v6925_v40 = vadd.f32 %v7545_v58, %v1774_v24  ;;  %v6928_v7 = vadd.f32 %v7546_v23, %v1774_v24  ;;  %3926 = vmatprep.subr.bf16.mxu1 %v3909_v35 }
 0xaec   : > { %v2259_v45 = vadd.f32 %v6579_v54, %v6913_v28  ;;  %v2260_v18 = vadd.f32 %v6581_v62, %v6916_v14  ;;  %3927 = vmatpush1.bf16.msra.mxu1 %v3908_v57  ;;  %v3127_v42 = vpop.f32.mrb[88].mxu1 }
 0xaed   : > { %v2257_v0 = vadd.f32 %v6575_v21, %v6925_v40  ;;  %v2258_v54 = vadd.f32 %v6577_v9, %v6928_v7  ;;  %v1789_v62 = vpop.permute.xlu0 %1788  ;;  %v3206_v46 = vadd.f32 %v3127_v42, %v6925_v40  ;;  %v3129_v55 = vpop.f32.mrb[89].mxu1  ;;  %v7549_v9 = vld [vmem:[#allocation20_spill] sm:$0xff]  ;;  %v7561_v42 = vld [vmem:[#allocation29_spill] sm:$0xff] }
 0xaee   : > { %2291 = vst [vmem:[%s6922_s1 + $0x10] sm:$0xff] %v2259_v45  ;;  %2292 = vst [vmem:[%s6922_s1 + $0x18] sm:$0xff] %v2260_v18  ;;  %v1784_v43 = vpop.permute.xlu1 %1783  ;;  %v6951_v36 = vadd.f32 %v7547_v26, %v1789_v62  ;;  %v6954_v13 = vadd.f32 %v7548_v30, %v1789_v62  ;;  %v3207_v21 = vadd.f32 %v3129_v55, %v6928_v7  ;;  %v3131_v19 = vpop.f32.mrb[90].mxu1  ;;  %v7560_v45 = vld [vmem:[#allocation28_spill] sm:$0xff]  ;;  %v7562_v62 = vld [vmem:[#allocation55_spill] sm:$0xff] }
 0xaef   : > { %2289 = vst [vmem:[%s6922_s1] sm:$0xff] %v2257_v0  ;;  %2290 = vst [vmem:[%s6922_s1 + $0x8] sm:$0xff] %v2258_v54  ;;  %v6960_v56 = vadd.f32 %v7549_v9, %v1784_v43  ;;  %v6963_v3 = vadd.f32 %v7550_v39, %v1784_v43  ;;  %3945 = vmatmul.mubr.bf16.vlgmr.msra.gmra.mrb[120].mxu1 %v4638_v12  ;;  %v3208_v22 = vadd.f32 %v3131_v19, %v6913_v28  ;;  %v3133_v4 = vpop.f32.mrb[91].mxu1  ;;  %v7563_v55 = vld [vmem:[#allocation56_spill] sm:$0xff]  ;;  %v7564_v30 = vld [vmem:[#allocation53_spill] sm:$0xff] }
 0xaf0   : > { %3238 = vst [vmem:[%s6938_s21] sm:$0xff] %v3206_v46  ;;  %v2263_v47 = vadd.f32 %v6587_v17, %v6951_v36  ;;  %v2264_v8 = vadd.f32 %v6589_v31, %v6954_v13  ;;  %3239 = vst [vmem:[%s6938_s21 + $0x8] sm:$0xff] %v3207_v21  ;;  %v3209_v59 = vadd.f32 %v3133_v4, %v6916_v14  ;;  %v7551_v17 = vld [vmem:[#allocation26_spill] sm:$0xff]  ;;  %v7552_v31 = vld [vmem:[#allocation27_spill] sm:$0xff] }
 0xaf1   : > { %v2261_v44 = vadd.f32 %v6583_v2, %v6960_v56  ;;  %v2262_v63 = vadd.f32 %v6585_v60, %v6963_v3  ;;  %3240 = vst [vmem:[%s6938_s21 + $0x10] sm:$0xff] %v3208_v22  ;;  %v1799_v11 = vpop.permute.xlu0 %1798  ;;  %v7553_v2 = vld [vmem:[#allocation24_spill] sm:$0xff]  ;;  %v7554_v60 = vld [vmem:[#allocation25_spill] sm:$0xff]  ;;  %v7565_v19 = vld [vmem:[#allocation15_spill] sm:$0xff] }
 0xaf2   : > { %2295 = vst [vmem:[%s6922_s1 + $0x30] sm:$0xff] %v2263_v47  ;;  %2296 = vst [vmem:[%s6922_s1 + $0x38] sm:$0xff] %v2264_v8  ;;  %v1794_v25 = vpop.permute.xlu1 %1793  ;;  %v6982_v6 = vadd.f32 %v7551_v17, %v1799_v11  ;;  %v6985_v32 = vadd.f32 %v7552_v31, %v1799_v11  ;;  %v7566_v4 = vld [vmem:[#allocation59_spill] sm:$0xff]  ;;  %v7567_v8 = vld [vmem:[#allocation60_spill] sm:$0xff] }
 0xaf3   : > { %3241 = vst [vmem:[%s6938_s21 + $0x18] sm:$0xff] %v3209_v59  ;;  %2293 = vst [vmem:[%s6922_s1 + $0x20] sm:$0xff] %v2261_v44  ;;  %v6990_v1 = vadd.f32 %v7553_v2, %v1794_v25  ;;  %v6993_v34 = vadd.f32 %v7554_v60, %v1794_v25  ;;  %v7568_v44 = vld [vmem:[#allocation57_spill] sm:$0xff]  ;;  %v7569_v11 = vld [vmem:[#allocation58_spill] sm:$0xff] }
 0xaf4   : > { %2294 = vst [vmem:[%s6922_s1 + $0x28] sm:$0xff] %v2262_v63  ;;  %v2267_v27 = vadd.f32 %v6595_v52, %v6982_v6  ;;  %v2268_v29 = vadd.f32 %v7555_v38, %v6985_v32  ;;  %v3137_v16 = vpop.f32.mrb[92].mxu1  ;;  %v7570_v17 = vld [vmem:[#allocation32_spill] sm:$0xff]  ;;  %v7571_v2 = vld [vmem:[#allocation33_spill] sm:$0xff]  ;;  %v7572_v38 = vld [vmem:[#allocation34_spill] sm:$0xff] }
 0xaf5   : > { %v2265_v51 = vadd.f32 %v7556_v50, %v6990_v1  ;;  %v2266_v10 = vadd.f32 %v7557_v33, %v6993_v34  ;;  %v1809_v61 = vpop.permute.xlu0 %1808  ;;  %v3210_v57 = vadd.f32 %v3137_v16, %v6960_v56  ;;  %v3139_v35 = vpop.f32.mrb[93].mxu1  ;;  %v7573_v16 = vld [vmem:[#allocation35_spill] sm:$0xff] }
 0xaf6   : > { %2299 = vst [vmem:[%s6922_s1 + $0x50] sm:$0xff] %v2267_v27  ;;  %2300 = vst [vmem:[%s6922_s1 + $0x58] sm:$0xff] %v2268_v29  ;;  %v1804_v52 = vpop.permute.xlu1 %1803  ;;  %v7007_v24 = vadd.f32 %v7558_v48, %v1809_v61  ;;  %v7010_v41 = vadd.f32 %v7559_v49, %v1809_v61  ;;  %v3211_v58 = vadd.f32 %v3139_v35, %v6963_v3  ;;  %v3141_v23 = vpop.f32.mrb[94].mxu1 }
 0xaf7   : > { %2297 = vst [vmem:[%s6922_s1 + $0x40] sm:$0xff] %v2265_v51  ;;  %2298 = vst [vmem:[%s6922_s1 + $0x48] sm:$0xff] %v2266_v10  ;;  %v7016_v18 = vadd.f32 %v7560_v45, %v1804_v52  ;;  %v7019_v12 = vadd.f32 %v7561_v42, %v1804_v52  ;;  %v3212_v0 = vadd.f32 %v3141_v23, %v6951_v36  ;;  %v3143_v54 = vpop.f32.mrb[95].mxu1  ;;  %v7575_v52 = vld [vmem:[#allocation64_spill] sm:$0xff]  ;;  %v7576_v23 = vld [vmem:[#allocation61_spill] sm:$0xff] }
 0xaf8   : > { %3242 = vst [vmem:[%s6938_s21 + $0x20] sm:$0xff] %v3210_v57  ;;  %v2271_v46 = vadd.f32 %v7562_v62, %v7007_v24  ;;  %v2272_v43 = vadd.f32 %v7563_v55, %v7010_v41  ;;  %3243 = vst [vmem:[%s6938_s21 + $0x28] sm:$0xff] %v3211_v58  ;;  %v3213_v26 = vadd.f32 %v3143_v54, %v6954_v13  ;;  %v7574_v57 = vld [vmem:[#allocation63_spill] sm:$0xff]  ;;  %v7577_v42 = vld [vmem:[#allocation62_spill] sm:$0xff] }
 0xaf9   : > { %v2269_v21 = vadd.f32 %v7564_v30, %v7016_v18  ;;  %v2270_v9 = vadd.f32 %v7565_v19, %v7019_v12  ;;  %3244 = vst [vmem:[%s6938_s21 + $0x30] sm:$0xff] %v3212_v0  ;;  %v1819_v39 = vpop.permute.xlu0 %1818 }
 0xafa   : > { %2303 = vst [vmem:[%s6922_s1 + $0x70] sm:$0xff] %v2271_v46  ;;  %2304 = vst [vmem:[%s6922_s1 + $0x78] sm:$0xff] %v2272_v43  ;;  %v1814_v22 = vpop.permute.xlu1 %1813  ;;  %v7038_v47 = vadd.f32 %v7566_v4, %v1819_v39  ;;  %v7041_v59 = vadd.f32 %v7567_v8, %v1819_v39  ;;  %v7578_v46 = vld [vmem:[#allocation3_spill] sm:$0xff]  ;;  %v7579_v43 = vld [vmem:[#allocation37_spill] sm:$0xff] }
 0xafb   : > { %3245 = vst [vmem:[%s6938_s21 + $0x38] sm:$0xff] %v3213_v26  ;;  %2301 = vst [vmem:[%s6922_s1 + $0x60] sm:$0xff] %v2269_v21  ;;  %v7046_v63 = vadd.f32 %v7568_v44, %v1814_v22  ;;  %v7049_v25 = vadd.f32 %v7569_v11, %v1814_v22  ;;  %v7580_v21 = vld [vmem:[#allocation2_spill] sm:$0xff]  ;;  %v7582_v8 = vld [vmem:[#allocation67_spill] sm:$0xff] }
 0xafc   : > { %2302 = vst [vmem:[%s6922_s1 + $0x68] sm:$0xff] %v2270_v9  ;;  %v2275_v31 = vadd.f32 %v7570_v17, %v7038_v47  ;;  %v2276_v60 = vadd.f32 %v7571_v2, %v7041_v59  ;;  %v3147_v27 = vpop.f32.mrb[96].mxu1  ;;  %v7581_v9 = vld [vmem:[#allocation36_spill] sm:$0xff] }
 0xafd   : > { %v2273_v29 = vadd.f32 %v7572_v38, %v7046_v63  ;;  %v2274_v50 = vadd.f32 %v7573_v16, %v7049_v25  ;;  %v1829_v51 = vpop.permute.xlu0 %1828  ;;  %v3214_v33 = vadd.f32 %v3147_v27, %v6990_v1  ;;  %v3149_v10 = vpop.f32.mrb[97].mxu1  ;;  %v7583_v11 = vld [vmem:[#allocation68_spill] sm:$0xff] }
 0xafe   : > { %2307 = vst [vmem:[%s6922_s1 + $0x90] sm:$0xff] %v2275_v31  ;;  %2308 = vst [vmem:[%s6922_s1 + $0x98] sm:$0xff] %v2276_v60  ;;  %v1824_v61 = vpop.permute.xlu1 %1823  ;;  %v7063_v35 = vadd.f32 %v7574_v57, %v1829_v51  ;;  %v7066_v48 = vadd.f32 %v7575_v52, %v1829_v51  ;;  %v3215_v49 = vadd.f32 %v3149_v10, %v6993_v34  ;;  %v3151_v58 = vpop.f32.mrb[98].mxu1  ;;  %v7584_v31 = vld [vmem:[#allocation65_spill] sm:$0xff]  ;;  %v7585_v60 = vld [vmem:[#allocation66_spill] sm:$0xff] }
 0xaff   : > { %2305 = vst [vmem:[%s6922_s1 + $0x80] sm:$0xff] %v2273_v29  ;;  %2306 = vst [vmem:[%s6922_s1 + $0x88] sm:$0xff] %v2274_v50  ;;  %v7072_v45 = vadd.f32 %v7576_v23, %v1824_v61  ;;  %v7075_v0 = vadd.f32 %v7577_v42, %v1824_v61  ;;  %v3216_v54 = vadd.f32 %v3151_v58, %v6982_v6  ;;  %v3153_v62 = vpop.f32.mrb[99].mxu1  ;;  %v7586_v50 = vld [vmem:[#allocation4_spill] sm:$0xff]  ;;  %v7587_v52 = vld [vmem:[#allocation71_spill] sm:$0xff] }
 0xb00   : > { %3246 = vst [vmem:[%s6938_s21 + $0x40] sm:$0xff] %v3214_v33  ;;  %v2279_v55 = vadd.f32 %v7578_v46, %v7063_v35  ;;  %v2280_v26 = vadd.f32 %v7579_v43, %v7066_v48  ;;  %3247 = vst [vmem:[%s6938_s21 + $0x48] sm:$0xff] %v3215_v49  ;;  %v3217_v30 = vadd.f32 %v3153_v62, %v6985_v32  ;;  %v7590_v62 = vld [vmem:[#allocation70_spill] sm:$0xff] }
 0xb01   : > { %v2277_v19 = vadd.f32 %v7580_v21, %v7072_v45  ;;  %v2278_v39 = vadd.f32 %v7581_v9, %v7075_v0  ;;  %3248 = vst [vmem:[%s6938_s21 + $0x50] sm:$0xff] %v3216_v54  ;;  %v1839_v22 = vpop.permute.xlu0 %1838  ;;  %v7592_v9 = vld [vmem:[#allocation38_spill] sm:$0xff] }
 0xb02   : > { %2311 = vst [vmem:[%s6922_s1 + $0xb0] sm:$0xff] %v2279_v55  ;;  %2312 = vst [vmem:[%s6922_s1 + $0xb8] sm:$0xff] %v2280_v26  ;;  %v1834_v4 = vpop.permute.xlu1 %1833  ;;  %v7094_v44 = vadd.f32 %v7582_v8, %v1839_v22  ;;  %v7097_v17 = vadd.f32 %v7583_v11, %v1839_v22  ;;  %v7593_v22 = vld [vmem:[#allocation5_spill] sm:$0xff] }
 0xb03   : > { %3249 = vst [vmem:[%s6938_s21 + $0x58] sm:$0xff] %v3217_v30  ;;  %2309 = vst [vmem:[%s6922_s1 + $0xa0] sm:$0xff] %v2277_v19  ;;  %v7102_v2 = vadd.f32 %v7584_v31, %v1834_v4  ;;  %v7105_v27 = vadd.f32 %v7585_v60, %v1834_v4  ;;  %v7591_v30 = vld [vmem:[#allocation39_spill] sm:$0xff] }
 0xb04   : > { %2310 = vst [vmem:[%s6922_s1 + $0xa8] sm:$0xff] %v2278_v39  ;;  %v2283_v38 = vadd.f32 %v6675_v20, %v7094_v44  ;;  %v2284_v29 = vadd.f32 %v6677_v37, %v7097_v17  ;;  %v3157_v16 = vpop.f32.mrb[100].mxu1  ;;  %v7588_v37 = vld [vmem:[#allocation72_spill] sm:$0xff] }
 0xb05   : > { %v2281_v51 = vadd.f32 %v7586_v50, %v7102_v2  ;;  %v2282_v33 = vadd.f32 %v6673_v5, %v7105_v27  ;;  %v1849_v10 = vpop.permute.xlu0 %1848  ;;  %v3218_v61 = vadd.f32 %v3157_v16, %v7016_v18  ;;  %v3159_v57 = vpop.f32.mrb[101].mxu1  ;;  %v7589_v5 = vld [vmem:[#allocation69_spill] sm:$0xff] }
 0xb06   : > { %2315 = vst [vmem:[%s6922_s1 + $0xd0] sm:$0xff] %v2283_v38  ;;  %2316 = vst [vmem:[%s6922_s1 + $0xd8] sm:$0xff] %v2284_v29  ;;  %v1844_v20 = vpop.permute.xlu1 %1843  ;;  %v7119_v49 = vadd.f32 %v7587_v52, %v1849_v10  ;;  %v7122_v58 = vadd.f32 %v7588_v37, %v1849_v10  ;;  %v3219_v23 = vadd.f32 %v3159_v57, %v7019_v12  ;;  %v3161_v42 = vpop.f32.mrb[102].mxu1 }
 0xb07   : > { %2313 = vst [vmem:[%s6922_s1 + $0xc0] sm:$0xff] %v2281_v51  ;;  %2314 = vst [vmem:[%s6922_s1 + $0xc8] sm:$0xff] %v2282_v33  ;;  %v7128_v54 = vadd.f32 %v7589_v5, %v1844_v20  ;;  %v7131_v46 = vadd.f32 %v7590_v62, %v1844_v20  ;;  %v3220_v55 = vadd.f32 %v3161_v42, %v7007_v24  ;;  %v3163_v43 = vpop.f32.mrb[103].mxu1 }
 0xb08   : > { %3250 = vst [vmem:[%s6938_s21 + $0x60] sm:$0xff] %v3218_v61  ;;  %v2287_v26 = vadd.f32 %v6683_v15, %v7119_v49  ;;  %v2288_v21 = vadd.f32 %v7591_v30, %v7122_v58  ;;  %3251 = vst [vmem:[%s6938_s21 + $0x68] sm:$0xff] %v3219_v23  ;;  %v3221_v19 = vadd.f32 %v3163_v43, %v7010_v41 }
 0xb09   : > { %v2285_v39 = vadd.f32 %v7592_v9, %v7128_v54  ;;  %v2286_v4 = vadd.f32 %v7593_v22, %v7131_v46  ;;  %3252 = vst [vmem:[%s6938_s21 + $0x70] sm:$0xff] %v3220_v55 }
 0xb0a   : > { %2319 = vst [vmem:[%s6922_s1 + $0xf0] sm:$0xff] %v2287_v26  ;;  %2320 = vst [vmem:[%s6922_s1 + $0xf8] sm:$0xff] %v2288_v21 }
 0xb0b   : > { %3253 = vst [vmem:[%s6938_s21 + $0x78] sm:$0xff] %v3221_v19  ;;  %2317 = vst [vmem:[%s6922_s1 + $0xe0] sm:$0xff] %v2285_v39 }
 0xb0c   : > { %2318 = vst [vmem:[%s6922_s1 + $0xe8] sm:$0xff] %v2286_v4  ;;  %v3167_v15 = vpop.f32.mrb[104].mxu1  ;;  %s7228_s1 = scalar_lea.vmem %s7315_s18, %s6910_s30 }
 0xb0d   : > { %v3222_v8 = vadd.f32 %v3167_v15, %v7046_v63  ;;  %v3169_v11 = vpop.f32.mrb[105].mxu1 }
 0xb0e   : > { %v3223_v31 = vadd.f32 %v3169_v11, %v7049_v25  ;;  %v3171_v60 = vpop.f32.mrb[106].mxu1 }
 0xb0f   : > { %3254 = vst [vmem:[%s6938_s21 + $0x80] sm:$0xff] %v3222_v8  ;;  %v3224_v38 = vadd.f32 %v3171_v60, %v7038_v47  ;;  %v3173_v29 = vpop.f32.mrb[107].mxu1 }
 0xb10   : > { %3255 = vst [vmem:[%s6938_s21 + $0x88] sm:$0xff] %v3223_v31  ;;  %v3225_v16 = vadd.f32 %v3173_v29, %v7041_v59 }
 0xb11   : > { %3256 = vst [vmem:[%s6938_s21 + $0x90] sm:$0xff] %v3224_v38 }
 0xb12   : > { %3257 = vst [vmem:[%s6938_s21 + $0x98] sm:$0xff] %v3225_v16 }
 0xb14   : > { %v3177_v50 = vpop.f32.mrb[108].mxu1 }
 0xb15   : > { %v3226_v51 = vadd.f32 %v3177_v50, %v7072_v45  ;;  %v3179_v33 = vpop.f32.mrb[109].mxu1  ;;  %v4764_v50 = vld [vmem:[%s7312_s15 + $0x80] sm:$0xff]  }
 0xb16   : > { %v3227_v10 = vadd.f32 %v3179_v33, %v7075_v0  ;;  %v3181_v61 = vpop.f32.mrb[110].mxu1  ;;  %v4766_v33 = vld [vmem:[%s7312_s15 + $0x90] sm:$0xff]  }
 0xb17   : > { %3258 = vst [vmem:[%s6938_s21 + $0xa0] sm:$0xff] %v3226_v51  ;;  %v3228_v57 = vadd.f32 %v3181_v61, %v7063_v35  ;;  %v3183_v20 = vpop.f32.mrb[111].mxu1  ;;  %v4765_v51 = vld [vmem:[%s7312_s15 + $0x88] sm:$0xff]   ;;  %v4768_v61 = vld [vmem:[%s7312_s15 + $0xa0] sm:$0xff]  }
 0xb18   : > { %3259 = vst [vmem:[%s6938_s21 + $0xa8] sm:$0xff] %v3227_v10  ;;  %v3229_v52 = vadd.f32 %v3183_v20, %v7066_v48  ;;  %v4767_v10 = vld [vmem:[%s7312_s15 + $0x98] sm:$0xff]   ;;  %v4770_v20 = vld [vmem:[%s7312_s15 + $0xb0] sm:$0xff]  }
 0xb19   : > { %3260 = vst [vmem:[%s6938_s21 + $0xb0] sm:$0xff] %v3228_v57  ;;  %v4769_v57 = vld [vmem:[%s7312_s15 + $0xa8] sm:$0xff]  }
 0xb1a   : > { %3261 = vst [vmem:[%s6938_s21 + $0xb8] sm:$0xff] %v3229_v52  ;;  %v4771_v52 = vld [vmem:[%s7312_s15 + $0xb8] sm:$0xff]  }
 0xb1c   : > { %v3187_v37 = vpop.f32.mrb[112].mxu1 }
 0xb1d   : > { %v3230_v23 = vadd.f32 %v3187_v37, %v7102_v2  ;;  %v3189_v42 = vpop.f32.mrb[113].mxu1 }
 0xb1e   : > { %v3231_v5 = vadd.f32 %v3189_v42, %v7105_v27  ;;  %v3191_v62 = vpop.f32.mrb[114].mxu1 }
 0xb1f   : > { %3262 = vst [vmem:[%s6938_s21 + $0xc0] sm:$0xff] %v3230_v23  ;;  %v3232_v55 = vadd.f32 %v3191_v62, %v7094_v44  ;;  %v3193_v43 = vpop.f32.mrb[115].mxu1 }
 0xb20   : > { %3263 = vst [vmem:[%s6938_s21 + $0xc8] sm:$0xff] %v3231_v5  ;;  %v3233_v26 = vadd.f32 %v3193_v43, %v7097_v17 }
 0xb21   : > { %3264 = vst [vmem:[%s6938_s21 + $0xd0] sm:$0xff] %v3232_v55 }
 0xb22   : > { %3265 = vst [vmem:[%s6938_s21 + $0xd8] sm:$0xff] %v3233_v26 }
 0xb25   : > { %v3197_v30 = vpop.f32.mrb[116].mxu1 }
 0xb26   : > { %v3234_v21 = vadd.f32 %v3197_v30, %v7128_v54  ;;  %v3199_v19 = vpop.f32.mrb[117].mxu1 }
 0xb27   : > { %v3235_v9 = vadd.f32 %v3199_v19, %v7131_v46  ;;  %v3201_v39 = vpop.f32.mrb[118].mxu1 }
 0xb28   : > { %3266 = vst [vmem:[%s6938_s21 + $0xe0] sm:$0xff] %v3234_v21  ;;  %v3236_v22 = vadd.f32 %v3201_v39, %v7119_v49  ;;  %v3203_v4 = vpop.f32.mrb[119].mxu1 }
 0xb29   : > { %3267 = vst [vmem:[%s6938_s21 + $0xe8] sm:$0xff] %v3235_v9  ;;  %v3237_v15 = vadd.f32 %v3203_v4, %v7122_v58 }
 0xb2a   : > { %3268 = vst [vmem:[%s6938_s21 + $0xf0] sm:$0xff] %v3236_v22 }
 0xb2b   : > { %3269 = vst [vmem:[%s6938_s21 + $0xf8] sm:$0xff] %v3237_v15 }
 0xbc2   : > { %v3946_v8 = vpop.f32.mrb[120].mxu1 }
 0xbc3   : > { %v3970_v11 = vpack.c.bf16 %v3946_v8, %v3946_v8  ;;  %v3948_v31 = vpop.f32.mrb[121].mxu1 }
 0xbc4   : > { %v3971_v60 = vpack.c.bf16 %v3948_v31, %v3948_v31  ;;  %v3950_v38 = vpop.f32.mrb[122].mxu1 }
 0xbc5   : > { %v4037_v29 = vsel %vm2137_vm2, %v3970_v11, 0  ;;  %v3951_v16 = vpop.f32.mrb[123].mxu1 }
 0xbc6   : > { %4663 = vmatprep.subr.msk.bf16.mxu0 %vm2137_vm2, %v3971_v60 }
 0xbc7   : > { %4043 = vmatpush1.bf16.msra.mxu0 %v4037_v29 }
 0xbca   : > { %4664 = vmatmul.mubr.msk.bf16.vlgmr.msra.gmra.mrb[96].mxu0 %vm2112_vm3, %v4764_v50 }
 0xbcb   : > { %4084 = vmatprep.mubr.bf16.mxu0 %v7401_v53 }
 0xbd2   : > { %4665 = vmatmul.mubr.msk.bf16.gmra.mrb[100].mxu0 %vm2112_vm3, %v4765_v51 }
 0xbd3   : > { %4094 = vmatprep.mubr.bf16.mxu0 %v7401_v53 }
 0xbda   : > { %4666 = vmatmul.mubr.msk.bf16.gmra.mrb[104].mxu0 %vm2112_vm3, %v4766_v33 }
 0xbdb   : > { %4104 = vmatprep.mubr.bf16.mxu0 %v7401_v53 }
 0xbe2   : > { %4667 = vmatmul.mubr.msk.bf16.gmra.mrb[108].mxu0 %vm2112_vm3, %v4767_v10 }
 0xbe3   : > { %4114 = vmatprep.mubr.bf16.mxu0 %v7401_v53 }
 0xbea   : > { %4668 = vmatmul.mubr.msk.bf16.gmra.mrb[112].mxu0 %vm2112_vm3, %v4768_v61 }
 0xbeb   : > { %4124 = vmatprep.mubr.bf16.mxu0 %v7401_v53 }
 0xbf2   : > { %4669 = vmatmul.mubr.msk.bf16.gmra.mrb[116].mxu0 %vm2112_vm3, %v4769_v57 }
 0xbf3   : > { %4134 = vmatprep.mubr.bf16.mxu0 %v7401_v53 }
 0xbfa   : > { %4670 = vmatmul.mubr.msk.bf16.gmra.mrb[120].mxu0 %vm2112_vm3, %v4770_v20 }
 0xbfb   : > { %4144 = vmatprep.mubr.bf16.mxu0 %v7401_v53 }
 0xc02   : > { %4671 = vmatmul.mubr.msk.bf16.gmra.mrb[124].mxu0 %vm2112_vm3, %v4771_v52 }
 0xc9d   : > { %v4076_v37 = vpop.f32.mrb[96].mxu0 }
 0xc9e   : > { %v4155_v23 = vadd.f32 %v4076_v37, %v6925_v40  ;;  %v4078_v53 = vpop.f32.mrb[97].mxu0 }
 0xc9f   : > { %v4156_v42 = vadd.f32 %v4078_v53, %v6928_v7  ;;  %v4080_v5 = vpop.f32.mrb[98].mxu0 }
 0xca0   : > { %4187 = vst [vmem:[%s7228_s1] sm:$0xff] %v4155_v23  ;;  %v4157_v62 = vadd.f32 %v4080_v5, %v6913_v28  ;;  %v4082_v55 = vpop.f32.mrb[99].mxu0 }
 0xca1   : > { %4188 = vst [vmem:[%s7228_s1 + $0x8] sm:$0xff] %v4156_v42  ;;  %v4158_v43 = vadd.f32 %v4082_v55, %v6916_v14 }
 0xca2   : > { %4189 = vst [vmem:[%s7228_s1 + $0x10] sm:$0xff] %v4157_v62 }
 0xca3   : > { %4190 = vst [vmem:[%s7228_s1 + $0x18] sm:$0xff] %v4158_v43 }
 0xca5   : > { %v4086_v26 = vpop.f32.mrb[100].mxu0 }
 0xca6   : > { %v4159_v40 = vadd.f32 %v4086_v26, %v6960_v56  ;;  %v4088_v30 = vpop.f32.mrb[101].mxu0 }
 0xca7   : > { %v4160_v7 = vadd.f32 %v4088_v30, %v6963_v3  ;;  %v4090_v21 = vpop.f32.mrb[102].mxu0 }
 0xca8   : > { %4191 = vst [vmem:[%s7228_s1 + $0x20] sm:$0xff] %v4159_v40  ;;  %v4161_v28 = vadd.f32 %v4090_v21, %v6951_v36  ;;  %v4092_v19 = vpop.f32.mrb[103].mxu0 }
 0xca9   : > { %4192 = vst [vmem:[%s7228_s1 + $0x28] sm:$0xff] %v4160_v7  ;;  %v4162_v14 = vadd.f32 %v4092_v19, %v6954_v13 }
 0xcaa   : > { %4193 = vst [vmem:[%s7228_s1 + $0x30] sm:$0xff] %v4161_v28 }
 0xcab   : > { %4194 = vst [vmem:[%s7228_s1 + $0x38] sm:$0xff] %v4162_v14 }
 0xcad   : > { %v4096_v9 = vpop.f32.mrb[104].mxu0 }
 0xcae   : > { %v4163_v56 = vadd.f32 %v4096_v9, %v6990_v1  ;;  %v4098_v39 = vpop.f32.mrb[105].mxu0 }
 0xcaf   : > { %v4164_v3 = vadd.f32 %v4098_v39, %v6993_v34  ;;  %v4100_v22 = vpop.f32.mrb[106].mxu0 }
 0xcb0   : > { %4195 = vst [vmem:[%s7228_s1 + $0x40] sm:$0xff] %v4163_v56  ;;  %v4165_v36 = vadd.f32 %v4100_v22, %v6982_v6  ;;  %v4102_v4 = vpop.f32.mrb[107].mxu0 }
 0xcb1   : > { %4196 = vst [vmem:[%s7228_s1 + $0x48] sm:$0xff] %v4164_v3  ;;  %v4166_v13 = vadd.f32 %v4102_v4, %v6985_v32 }
 0xcb2   : > { %4197 = vst [vmem:[%s7228_s1 + $0x50] sm:$0xff] %v4165_v36 }
 0xcb3   : > { %4198 = vst [vmem:[%s7228_s1 + $0x58] sm:$0xff] %v4166_v13 }
 0xcb5   : > { %v4106_v15 = vpop.f32.mrb[108].mxu0 }
 0xcb6   : > { %v4167_v1 = vadd.f32 %v4106_v15, %v7016_v18  ;;  %v4108_v8 = vpop.f32.mrb[109].mxu0 }
 0xcb7   : > { %v4168_v34 = vadd.f32 %v4108_v8, %v7019_v12  ;;  %v4110_v11 = vpop.f32.mrb[110].mxu0 }
 0xcb8   : > { %4199 = vst [vmem:[%s7228_s1 + $0x60] sm:$0xff] %v4167_v1  ;;  %v4169_v6 = vadd.f32 %v4110_v11, %v7007_v24  ;;  %v4112_v31 = vpop.f32.mrb[111].mxu0 }
 0xcb9   : > { %4200 = vst [vmem:[%s7228_s1 + $0x68] sm:$0xff] %v4168_v34  ;;  %v4170_v32 = vadd.f32 %v4112_v31, %v7010_v41 }
 0xcba   : > { %4201 = vst [vmem:[%s7228_s1 + $0x70] sm:$0xff] %v4169_v6 }
 0xcbb   : > { %4202 = vst [vmem:[%s7228_s1 + $0x78] sm:$0xff] %v4170_v32 }
 0xcbd   : > { %v4116_v60 = vpop.f32.mrb[112].mxu0 }
 0xcbe   : > { %v4171_v18 = vadd.f32 %v4116_v60, %v7046_v63  ;;  %v4118_v38 = vpop.f32.mrb[113].mxu0 }
 0xcbf   : > { %v4172_v12 = vadd.f32 %v4118_v38, %v7049_v25  ;;  %v4120_v29 = vpop.f32.mrb[114].mxu0 }
 0xcc0   : > { %4203 = vst [vmem:[%s7228_s1 + $0x80] sm:$0xff] %v4171_v18  ;;  %v4173_v24 = vadd.f32 %v4120_v29, %v7038_v47  ;;  %v4122_v16 = vpop.f32.mrb[115].mxu0 }
 0xcc1   : > { %4204 = vst [vmem:[%s7228_s1 + $0x88] sm:$0xff] %v4172_v12  ;;  %v4174_v41 = vadd.f32 %v4122_v16, %v7041_v59 }
 0xcc2   : > { %4205 = vst [vmem:[%s7228_s1 + $0x90] sm:$0xff] %v4173_v24 }
 0xcc3   : > { %4206 = vst [vmem:[%s7228_s1 + $0x98] sm:$0xff] %v4174_v41 }
 0xcc5   : > { %v4126_v50 = vpop.f32.mrb[116].mxu0 }
 0xcc6   : > { %v4175_v63 = vadd.f32 %v4126_v50, %v7072_v45  ;;  %v4128_v51 = vpop.f32.mrb[117].mxu0 }
 0xcc7   : > { %v4176_v25 = vadd.f32 %v4128_v51, %v7075_v0  ;;  %v4130_v33 = vpop.f32.mrb[118].mxu0 }
 0xcc8   : > { %4207 = vst [vmem:[%s7228_s1 + $0xa0] sm:$0xff] %v4175_v63  ;;  %v4177_v47 = vadd.f32 %v4130_v33, %v7063_v35  ;;  %v4132_v10 = vpop.f32.mrb[119].mxu0 }
 0xcc9   : > { %4208 = vst [vmem:[%s7228_s1 + $0xa8] sm:$0xff] %v4176_v25  ;;  %v4178_v59 = vadd.f32 %v4132_v10, %v7066_v48 }
 0xcca   : > { %4209 = vst [vmem:[%s7228_s1 + $0xb0] sm:$0xff] %v4177_v47 }
 0xccb   : > { %4210 = vst [vmem:[%s7228_s1 + $0xb8] sm:$0xff] %v4178_v59 }
 0xccd   : > { %v4136_v61 = vpop.f32.mrb[120].mxu0 }
 0xcce   : > { %v4179_v45 = vadd.f32 %v4136_v61, %v7102_v2  ;;  %v4138_v57 = vpop.f32.mrb[121].mxu0 }
 0xccf   : > { %v4180_v0 = vadd.f32 %v4138_v57, %v7105_v27  ;;  %v4140_v20 = vpop.f32.mrb[122].mxu0 }
 0xcd0   : > { %4211 = vst [vmem:[%s7228_s1 + $0xc0] sm:$0xff] %v4179_v45  ;;  %v4181_v35 = vadd.f32 %v4140_v20, %v7094_v44  ;;  %v4142_v52 = vpop.f32.mrb[123].mxu0 }
 0xcd1   : > { %4212 = vst [vmem:[%s7228_s1 + $0xc8] sm:$0xff] %v4180_v0  ;;  %v4182_v48 = vadd.f32 %v4142_v52, %v7097_v17 }
 0xcd2   : > { %4213 = vst [vmem:[%s7228_s1 + $0xd0] sm:$0xff] %v4181_v35 }
 0xcd3   : > { %4214 = vst [vmem:[%s7228_s1 + $0xd8] sm:$0xff] %v4182_v48 }
 0xcd5   : > { %v4146_v37 = vpop.f32.mrb[124].mxu0 }
 0xcd6   : > { %v4183_v2 = vadd.f32 %v4146_v37, %v7128_v54  ;;  %v4148_v23 = vpop.f32.mrb[125].mxu0 }
 0xcd7   : > { %v4184_v53 = vadd.f32 %v4148_v23, %v7131_v46  ;;  %v4150_v27 = vpop.f32.mrb[126].mxu0 }
 0xcd8   : > { %4215 = vst [vmem:[%s7228_s1 + $0xe0] sm:$0xff] %v4183_v2  ;;  %v4185_v42 = vadd.f32 %v4150_v27, %v7119_v49  ;;  %v4152_v5 = vpop.f32.mrb[127].mxu0 }
 0xcd9   : > { %4216 = vst [vmem:[%s7228_s1 + $0xe8] sm:$0xff] %v4184_v53  ;;  %v4186_v44 = vadd.f32 %v4152_v5, %v7122_v58 }
 0xcda   : > { %4217 = vst [vmem:[%s7228_s1 + $0xf0] sm:$0xff] %v4185_v42 }
 0xcdb   : > { %4218 = vst [vmem:[%s7228_s1 + $0xf8] sm:$0xff] %v4186_v44 }
 0xcdc PF: > { %s29_s27 = sadd.s32 1, %s5018_s27  }
 0xcdd   : > { %p26_p4 = scmp.ge.s32.totalorder %s29_s27, 4  }
 0xcdf   :  { %28 = sbr.rel (!%p26_p4) target bundleno = 4 (0x4), region = 151 }

</bundles_post_ra>
